<compile_context>
chip_gen: v7x
topology: tpu7x:2x2x1
jax: 0.10.0
libtpu: 0.0.40
codegen_flags: <defaults>
</compile_context>

<pallas_src>
import jax
import jax.numpy as jnp
from jax import lax
from jax.experimental import pallas as pl
from jax.experimental.pallas import tpu as pltpu

# ---------------------------------------------------------------------------
# Static geometry (in_channels=1, size=None  =>  16 / 32 channels, 28x28 in).
# ---------------------------------------------------------------------------
H_IN = 28
PAD1 = 2
H_PAD = H_IN + 2 * PAD1            # 32   zero-padded input height/width
K1, S1, C1 = 8, 2, 16              # conv1: 1 -> 16, k=8, s=2, p=2
H1 = (H_PAD - K1) // S1 + 1        # 13   conv1 output
P1 = H1 - 1                        # 12   maxpool(2, stride 1) output
K2, S2, C2 = 4, 2, 32              # conv2: 16 -> 32, k=4, s=2, p=0
H2 = (P1 - K2) // S2 + 1           # 5    conv2 output
P2 = H2 - 1                        # 4    maxpool(2, stride 1) output
HIDDEN = 32                        # fc1 width
NCLASS = 10
NPAD = 128                         # lane-padded logits width (unmasked store)


# ---------------------------------------------------------------------------
# Kernel
# ---------------------------------------------------------------------------

def _make_kernel(mxu_dtype):
    """Fused forward kernel for one block of BT images.

    `mxu_dtype` is the dtype fed to the MXU dots (float32 default; bfloat16 is
    recommended on v6e/v7x).  All accumulation stays in float32.
    """

    def kernel(xe_ref, xo_ref, w1_ref, b1_ref, w2_ref, b2_ref,
               fc1w_ref, fc1b_ref, fc2w_ref, fc2b_ref, out_ref):
        f32 = jnp.float32
        cast = lambda a: a.astype(mxu_dtype)

        xe = xe_ref[...]              # (BT, 16, 32) even padded rows
        xo = xo_ref[...]              # (BT, 16, 32) odd  padded rows
        w1 = cast(w1_ref[...])        # (256, 208)  row=(kh,w)    col=(ox,c)
        b1 = b1_ref[...]              # (1, 208)
        w2 = cast(w2_ref[...])        # (768, 160)  row=(kh,px,c) col=(qx,d)
        b2 = b2_ref[...]              # (1, 160)
        fc1w = cast(fc1w_ref[...])    # (512, 32)   row=(py,px,d)
        fc1b = fc1b_ref[...]          # (1, 32)
        fc2w = cast(fc2w_ref[...])    # (32, 128)   cols >= 10 are zero
        fc2b = fc2b_ref[...]          # (1, 128)    cols >= 10 are zero

        # Pre-extract the 16 even / 16 odd padded-image rows as (BT, 32) slabs.
        xer = [xe[:, i, :] for i in range(H_PAD // 2)]
        xod = [xo[:, i, :] for i in range(H_PAD // 2)]

        # ---- conv1 + tanh : one (BT,256)x(256,208) MXU dot per output row ----
        # X1 row for output row oy: columns kh*32 + w = padded pixel (2*oy+kh, w);
        # the stride-2 / kernel-width structure lives in the packed weight w1.
        h1 = []
        for oy in range(H1):
            x1row = jnp.concatenate(
                [xer[oy],     xod[oy],          # kh = 0, 1
                 xer[oy + 1], xod[oy + 1],      # kh = 2, 3
                 xer[oy + 2], xod[oy + 2],      # kh = 4, 5
                 xer[oy + 3], xod[oy + 3]],     # kh = 6, 7
                axis=-1)                                        # (BT, 256)
            h1.append(jnp.tanh(
                jnp.dot(cast(x1row), w1, preferred_element_type=f32) + b1))

        # ---- maxpool 2x2 stride 1 : (13,13,16) -> (12,12,16) ------------------
        # vertical max over adjacent rows, horizontal max via a 16-lane shift.
        p1 = []
        for py in range(P1):
            v = jnp.maximum(h1[py], h1[py + 1])                 # (BT, 208)
            p1.append(jnp.maximum(v[:, 0:P1 * C1], v[:, C1:H1 * C1]))  # (BT,192)

        # ---- conv2 + tanh : one (BT,768)x(768,160) MXU dot per output row ----
        h2 = []
        for qy in range(H2):
            x2row = jnp.concatenate([p1[2 * qy + kh] for kh in range(K2)],
                                    axis=-1)                    # (BT, 768)
            h2.append(jnp.tanh(
                jnp.dot(cast(x2row), w2, preferred_element_type=f32) + b2))

        # ---- maxpool 2x2 stride 1 (5x5 -> 4x4) fused into fc1 + tanh ----------
        acc = fc1b                                              # (1, 32)
        for py in range(P2):
            v = jnp.maximum(h2[py], h2[py + 1])                 # (BT, 160)
            p2row = jnp.maximum(v[:, 0:P2 * C2], v[:, C2:H2 * C2])   # (BT, 128)
            acc = acc + jnp.dot(cast(p2row),
                                fc1w[py * P2 * C2:(py + 1) * P2 * C2, :],
                                preferred_element_type=f32)
        h3 = jnp.tanh(acc)                                      # (BT, 32)

        # ---- fc2 : logits into a 128-lane padded slab (unmasked store) --------
        out_ref[...] = (jnp.dot(cast(h3), fc2w, preferred_element_type=f32)
                        + fc2b)

    return kernel


# ---------------------------------------------------------------------------
# Weight standardization + packing (small XLA ops, once per forward call)
# ---------------------------------------------------------------------------

def _weight_standardize(w):
    """PyTorch Conv2d-WS: center over (in, kh, kw) per output channel, divide by
    the unbiased std + 1e-5 (the second centering in the torch code is a no-op)."""
    o = w.shape[0]
    mean = jnp.mean(w, axis=(1, 2, 3), keepdims=True)
    wc = w - mean
    n = w[0].size
    var = jnp.sum(wc.reshape(o, -1) ** 2, axis=1) / (n - 1)
    std = jnp.sqrt(var).reshape(o, 1, 1, 1) + 1e-5
    return wc / std


def _pack_params(params):
    """Standardize and repack PyTorch-layout parameters into the matmul-ready
    layouts consumed by the kernel."""
    f32 = jnp.float32
    w1s = _weight_standardize(jnp.asarray(params["w1"], f32))   # (16, 1, 8, 8)
    w2s = _weight_standardize(jnp.asarray(params["w2"], f32))   # (32, 16, 4, 4)

    # conv1 structured weight: row = kh*32 + w (padded column), col = ox*16 + c
    w1t = jnp.transpose(w1s[:, 0], (1, 2, 0))                   # (kh, kw, c)
    col = jnp.arange(H_PAD)[:, None]                            # (32, 1)
    ox = jnp.arange(H1)[None, :]                                # (1, 13)
    kw = col - S1 * ox                                          # (32, 13)
    valid = (kw >= 0) & (kw < K1)
    w1big = jnp.where(valid[None, :, :, None],
                      w1t[:, jnp.clip(kw, 0, K1 - 1), :], 0.0)  # (8, 32, 13, 16)
    w1big = w1big.reshape(K1 * H_PAD, H1 * C1)                  # (256, 208)

    # conv2 structured weight: row = kh*192 + px*16 + c, col = qx*32 + d
    w2t = jnp.transpose(w2s, (2, 3, 1, 0))                      # (kh, kw, c, d)
    px = jnp.arange(P1)[:, None]                                # (12, 1)
    qx = jnp.arange(H2)[None, :]                                # (1, 5)
    kw2 = px - S2 * qx                                          # (12, 5)
    valid2 = (kw2 >= 0) & (kw2 < K2)
    w2big = jnp.where(valid2[None, :, :, None, None],
                      w2t[:, jnp.clip(kw2, 0, K2 - 1), :, :], 0.0)  # (4,12,5,16,32)
    w2big = jnp.transpose(w2big, (0, 1, 3, 2, 4))               # (kh, px, c, qx, d)
    w2big = w2big.reshape(K2 * P1 * C1, H2 * C2)                # (768, 160)

    # biases tiled to the (spatial, channel) lane layouts
    b1row = jnp.tile(jnp.asarray(params["b1"], f32), H1).reshape(1, H1 * C1)
    b2row = jnp.tile(jnp.asarray(params["b2"], f32), H2).reshape(1, H2 * C2)

    # fc1: rows permuted from torch's (channel, py, px) flatten to the kernel's
    # (py, px, channel) order.
    fc1w = (jnp.asarray(params["fc1_w"], f32)
            .reshape(HIDDEN, C2, P2, P2)          # (h, d, py, px)
            .transpose(2, 3, 1, 0)                # (py, px, d, h)
            .reshape(P2 * P2 * C2, HIDDEN))       # (512, 32)
    fc1b = jnp.asarray(params["fc1_b"], f32).reshape(1, HIDDEN)

    # fc2: zero-padded to 128 output lanes so the kernel's output store is dense.
    fc2w = jnp.zeros((HIDDEN, NPAD), f32).at[:, :NCLASS].set(
        jnp.asarray(params["fc2_w"], f32).T)
    fc2b = jnp.zeros((1, NPAD), f32).at[0, :NCLASS].set(
        jnp.asarray(params["fc2_b"], f32))

    return w1big, b1row, w2big, b2row, fc1w, fc1b, fc2w, fc2b


# ---------------------------------------------------------------------------
# Forward wrapper: one fused pallas_call over batch blocks
# ---------------------------------------------------------------------------

def mnist_cnn_ws_forward(x, params, *, block_batch=128, mxu_dtype=jnp.float32):
    """x: (B, 1, 28, 28) float32 -> logits (B, 10)."""
    B = x.shape[0]
    assert x.shape[1:] == (1, H_IN, H_IN), x.shape
    f32 = jnp.float32

    bt = B if B <= block_batch else block_batch         # images per grid step
    b_pad = ((B + bt - 1) // bt) * bt

    # conv1 zero-padding + stride-2 row-phase split done once in the wrapper:
    # the kernel never zeroes scratch and never does a strided access.
    img = jnp.asarray(x, f32).reshape(B, H_IN, H_IN)
    xpad = jnp.zeros((b_pad, H_PAD, H_PAD), f32)
    xpad = xpad.at[:B, PAD1:PAD1 + H_IN, PAD1:PAD1 + H_IN].set(img)
    xe = xpad[:, 0::2, :]                                # (b_pad, 16, 32)
    xo = xpad[:, 1::2, :]                                # (b_pad, 16, 32)

    packed = _pack_params(params)                        # WS + repack (tiny XLA)

    def full_spec(a):
        nd = a.ndim
        return pl.BlockSpec(a.shape, lambda i, _nd=nd: (0,) * _nd)

    out = pl.pallas_call(
        _make_kernel(mxu_dtype),
        out_shape=jax.ShapeDtypeStruct((b_pad, NPAD), f32),
        grid=(b_pad // bt,),
        in_specs=[
            pl.BlockSpec((bt, H_PAD // 2, H_PAD), lambda i: (i, 0, 0)),
            pl.BlockSpec((bt, H_PAD // 2, H_PAD), lambda i: (i, 0, 0)),
        ] + [full_spec(a) for a in packed],
        out_specs=pl.BlockSpec((bt, NPAD), lambda i: (i, 0)),
        compiler_params=pltpu.CompilerParams(
            dimension_semantics=("parallel",)),
    )(xe, xo, *packed)

    return out[:B, :NCLASS]


# ---------------------------------------------------------------------------
# Pure-JAX reference (for the correctness check)
# ---------------------------------------------------------------------------

def _ws_ref(w):
    o = w.shape[0]
    m = jnp.mean(w, axis=(1, 2, 3), keepdims=True)
    wc = w - m
    var = jnp.var(wc.reshape(o, -1), axis=1, ddof=1).reshape(o, 1, 1, 1)
    return wc / (jnp.sqrt(var) + 1e-5)


def _maxpool_ref(y):
    return jnp.maximum(jnp.maximum(y[:, :, :-1, :-1], y[:, :, 1:, :-1]),
                       jnp.maximum(y[:, :, :-1, 1:], y[:, :, 1:, 1:]))


def ref_forward(x, p):
    dn = ("NCHW", "OIHW", "NCHW")
    y = lax.conv_general_dilated(x, _ws_ref(p["w1"]), (S1, S1),
                                 [(PAD1, PAD1), (PAD1, PAD1)],
                                 dimension_numbers=dn)
    y = jnp.tanh(y + p["b1"][None, :, None, None])
    y = _maxpool_ref(y)
    y = lax.conv_general_dilated(y, _ws_ref(p["w2"]), (S2, S2),
                                 [(0, 0), (0, 0)], dimension_numbers=dn)
    y = jnp.tanh(y + p["b2"][None, :, None, None])
    y = _maxpool_ref(y)
    y = y.reshape(y.shape[0], -1)
    y = jnp.tanh(y @ p["fc1_w"].T + p["fc1_b"])
    return y @ p["fc2_w"].T + p["fc2_b"]


# ---------------------------------------------------------------------------
# Main
# ---------------------------------------------------------------------------

if __name__ == "__main__":
    key = jax.random.PRNGKey(0)
    ks = jax.random.split(key, 9)

    # Deterministic synthetic parameters (PyTorch (out, in, ...) convention).
    params = {
        "w1": 0.1 * jax.random.normal(ks[0], (C1, 1, K1, K1), jnp.float32),
        "b1": 0.1 * jax.random.normal(ks[1], (C1,), jnp.float32),
        "w2": 0.1 * jax.random.normal(ks[2], (C2, C1, K2, K2), jnp.float32),
        "b2": 0.1 * jax.random.normal(ks[3], (C2,), jnp.float32),
        "fc1_w": 0.05 * jax.random.normal(ks[4], (HIDDEN, C2 * P2 * P2), jnp.float32),
        "fc1_b": 0.05 * jax.random.normal(ks[5], (HIDDEN,), jnp.float32),
        "fc2_w": 0.05 * jax.random.normal(ks[6], (NCLASS, HIDDEN), jnp.float32),
        "fc2_b": 0.05 * jax.random.normal(ks[7], (NCLASS,), jnp.float32),
    }

    # MNIST-shaped input: batch=2, 1 channel, 28x28 (required by the 512-wide flatten).
    x = jax.random.normal(ks[8], (2, 1, H_IN, H_IN), jnp.float32)

    fwd = jax.jit(lambda xx, pp: mnist_cnn_ws_forward(xx, pp))
    out = jax.block_until_ready(fwd(x, params))
    assert out.shape == (2, NCLASS), out.shape

    ref = jax.block_until_ready(ref_forward(x, params))
    max_diff = float(jnp.max(jnp.abs(out - ref)))
    assert jnp.allclose(out, ref, atol=1e-3, rtol=1e-3), (
        f"max abs diff = {max_diff}"
    )

    print("KERNEL_OK")
</pallas_src>

<mosaic_0001>
module attributes {stable_mosaic.version = 11 : i64} {
  func.func @kernel(%arg0: i32, %arg1: memref<2x16x32xf32, #tpu.memory_space<vmem>>, %arg2: memref<2x16x32xf32, #tpu.memory_space<vmem>>, %arg3: memref<256x208xf32, #tpu.memory_space<vmem>>, %arg4: memref<1x208xf32, #tpu.memory_space<vmem>>, %arg5: memref<768x160xf32, #tpu.memory_space<vmem>>, %arg6: memref<1x160xf32, #tpu.memory_space<vmem>>, %arg7: memref<512x32xf32, #tpu.memory_space<vmem>>, %arg8: memref<1x32xf32, #tpu.memory_space<vmem>>, %arg9: memref<32x128xf32, #tpu.memory_space<vmem>>, %arg10: memref<1x128xf32, #tpu.memory_space<vmem>>, %arg11: memref<2x128xf32, #tpu.memory_space<vmem>>) attributes {dimension_semantics = [#tpu.dimension_semantics<parallel>], iteration_bounds = array<i64: 1>, scalar_prefetch = 0 : i64, scratch_operands = 0 : i64, tpu.core_type = #tpu.core_type<tc>, window_params = [{transform_indices = @transform_0, window_bounds = array<i64: 2, 16, 32>}, {transform_indices = @transform_1, window_bounds = array<i64: 2, 16, 32>}, {pipeline_mode = #tpu.pipeline_mode<synchronous>, transform_indices = @transform_2, window_bounds = array<i64: 256, 208>}, {pipeline_mode = #tpu.pipeline_mode<synchronous>, transform_indices = @transform_3, window_bounds = array<i64: 1, 208>}, {pipeline_mode = #tpu.pipeline_mode<synchronous>, transform_indices = @transform_4, window_bounds = array<i64: 768, 160>}, {pipeline_mode = #tpu.pipeline_mode<synchronous>, transform_indices = @transform_5, window_bounds = array<i64: 1, 160>}, {pipeline_mode = #tpu.pipeline_mode<synchronous>, transform_indices = @transform_6, window_bounds = array<i64: 512, 32>}, {pipeline_mode = #tpu.pipeline_mode<synchronous>, transform_indices = @transform_7, window_bounds = array<i64: 1, 32>}, {pipeline_mode = #tpu.pipeline_mode<synchronous>, transform_indices = @transform_8, window_bounds = array<i64: 32, 128>}, {pipeline_mode = #tpu.pipeline_mode<synchronous>, transform_indices = @transform_9, window_bounds = array<i64: 1, 128>}, {transform_indices = @transform_10, window_bounds = array<i64: 2, 128>}]} {
    %c0 = arith.constant 0 : index
    %c0_0 = arith.constant 0 : index
    %c0_1 = arith.constant 0 : index
    %0 = vector.load %arg1[%c0, %c0_0, %c0_1] : memref<2x16x32xf32, #tpu.memory_space<vmem>>, vector<2x16x32xf32>
    %c0_2 = arith.constant 0 : index
    %c0_3 = arith.constant 0 : index
    %c0_4 = arith.constant 0 : index
    %1 = vector.load %arg2[%c0_2, %c0_3, %c0_4] : memref<2x16x32xf32, #tpu.memory_space<vmem>>, vector<2x16x32xf32>
    %c0_5 = arith.constant 0 : index
    %c0_6 = arith.constant 0 : index
    %2 = vector.load %arg3[%c0_5, %c0_6] : memref<256x208xf32, #tpu.memory_space<vmem>>, vector<256x208xf32>
    %c0_7 = arith.constant 0 : index
    %c0_8 = arith.constant 0 : index
    %3 = vector.load %arg4[%c0_7, %c0_8] : memref<1x208xf32, #tpu.memory_space<vmem>>, vector<1x208xf32>
    %c0_9 = arith.constant 0 : index
    %c0_10 = arith.constant 0 : index
    %4 = vector.load %arg5[%c0_9, %c0_10] : memref<768x160xf32, #tpu.memory_space<vmem>>, vector<768x160xf32>
    %c0_11 = arith.constant 0 : index
    %c0_12 = arith.constant 0 : index
    %5 = vector.load %arg6[%c0_11, %c0_12] : memref<1x160xf32, #tpu.memory_space<vmem>>, vector<1x160xf32>
    %c0_13 = arith.constant 0 : index
    %c0_14 = arith.constant 0 : index
    %6 = vector.load %arg7[%c0_13, %c0_14] : memref<512x32xf32, #tpu.memory_space<vmem>>, vector<512x32xf32>
    %c0_15 = arith.constant 0 : index
    %c0_16 = arith.constant 0 : index
    %7 = vector.load %arg8[%c0_15, %c0_16] : memref<1x32xf32, #tpu.memory_space<vmem>>, vector<1x32xf32>
    %c0_17 = arith.constant 0 : index
    %c0_18 = arith.constant 0 : index
    %8 = vector.load %arg9[%c0_17, %c0_18] : memref<32x128xf32, #tpu.memory_space<vmem>>, vector<32x128xf32>
    %c0_19 = arith.constant 0 : index
    %c0_20 = arith.constant 0 : index
    %9 = vector.load %arg10[%c0_19, %c0_20] : memref<1x128xf32, #tpu.memory_space<vmem>>, vector<1x128xf32>
    %10 = vector.extract_strided_slice %0 {offsets = [0, 0, 0], sizes = [2, 1, 32], strides = [1, 1, 1]} : vector<2x16x32xf32> to vector<2x1x32xf32>
    %11 = vector.shape_cast %10 : vector<2x1x32xf32> to vector<2x32xf32>
    %12 = vector.extract_strided_slice %0 {offsets = [0, 1, 0], sizes = [2, 1, 32], strides = [1, 1, 1]} : vector<2x16x32xf32> to vector<2x1x32xf32>
    %13 = vector.shape_cast %12 : vector<2x1x32xf32> to vector<2x32xf32>
    %14 = vector.extract_strided_slice %0 {offsets = [0, 2, 0], sizes = [2, 1, 32], strides = [1, 1, 1]} : vector<2x16x32xf32> to vector<2x1x32xf32>
    %15 = vector.shape_cast %14 : vector<2x1x32xf32> to vector<2x32xf32>
    %16 = vector.extract_strided_slice %0 {offsets = [0, 3, 0], sizes = [2, 1, 32], strides = [1, 1, 1]} : vector<2x16x32xf32> to vector<2x1x32xf32>
    %17 = vector.shape_cast %16 : vector<2x1x32xf32> to vector<2x32xf32>
    %18 = vector.extract_strided_slice %0 {offsets = [0, 4, 0], sizes = [2, 1, 32], strides = [1, 1, 1]} : vector<2x16x32xf32> to vector<2x1x32xf32>
    %19 = vector.shape_cast %18 : vector<2x1x32xf32> to vector<2x32xf32>
    %20 = vector.extract_strided_slice %0 {offsets = [0, 5, 0], sizes = [2, 1, 32], strides = [1, 1, 1]} : vector<2x16x32xf32> to vector<2x1x32xf32>
    %21 = vector.shape_cast %20 : vector<2x1x32xf32> to vector<2x32xf32>
    %22 = vector.extract_strided_slice %0 {offsets = [0, 6, 0], sizes = [2, 1, 32], strides = [1, 1, 1]} : vector<2x16x32xf32> to vector<2x1x32xf32>
    %23 = vector.shape_cast %22 : vector<2x1x32xf32> to vector<2x32xf32>
    %24 = vector.extract_strided_slice %0 {offsets = [0, 7, 0], sizes = [2, 1, 32], strides = [1, 1, 1]} : vector<2x16x32xf32> to vector<2x1x32xf32>
    %25 = vector.shape_cast %24 : vector<2x1x32xf32> to vector<2x32xf32>
    %26 = vector.extract_strided_slice %0 {offsets = [0, 8, 0], sizes = [2, 1, 32], strides = [1, 1, 1]} : vector<2x16x32xf32> to vector<2x1x32xf32>
    %27 = vector.shape_cast %26 : vector<2x1x32xf32> to vector<2x32xf32>
    %28 = vector.extract_strided_slice %0 {offsets = [0, 9, 0], sizes = [2, 1, 32], strides = [1, 1, 1]} : vector<2x16x32xf32> to vector<2x1x32xf32>
    %29 = vector.shape_cast %28 : vector<2x1x32xf32> to vector<2x32xf32>
    %30 = vector.extract_strided_slice %0 {offsets = [0, 10, 0], sizes = [2, 1, 32], strides = [1, 1, 1]} : vector<2x16x32xf32> to vector<2x1x32xf32>
    %31 = vector.shape_cast %30 : vector<2x1x32xf32> to vector<2x32xf32>
    %32 = vector.extract_strided_slice %0 {offsets = [0, 11, 0], sizes = [2, 1, 32], strides = [1, 1, 1]} : vector<2x16x32xf32> to vector<2x1x32xf32>
    %33 = vector.shape_cast %32 : vector<2x1x32xf32> to vector<2x32xf32>
    %34 = vector.extract_strided_slice %0 {offsets = [0, 12, 0], sizes = [2, 1, 32], strides = [1, 1, 1]} : vector<2x16x32xf32> to vector<2x1x32xf32>
    %35 = vector.shape_cast %34 : vector<2x1x32xf32> to vector<2x32xf32>
    %36 = vector.extract_strided_slice %0 {offsets = [0, 13, 0], sizes = [2, 1, 32], strides = [1, 1, 1]} : vector<2x16x32xf32> to vector<2x1x32xf32>
    %37 = vector.shape_cast %36 : vector<2x1x32xf32> to vector<2x32xf32>
    %38 = vector.extract_strided_slice %0 {offsets = [0, 14, 0], sizes = [2, 1, 32], strides = [1, 1, 1]} : vector<2x16x32xf32> to vector<2x1x32xf32>
    %39 = vector.shape_cast %38 : vector<2x1x32xf32> to vector<2x32xf32>
    %40 = vector.extract_strided_slice %0 {offsets = [0, 15, 0], sizes = [2, 1, 32], strides = [1, 1, 1]} : vector<2x16x32xf32> to vector<2x1x32xf32>
    %41 = vector.shape_cast %40 : vector<2x1x32xf32> to vector<2x32xf32>
    %42 = vector.extract_strided_slice %1 {offsets = [0, 0, 0], sizes = [2, 1, 32], strides = [1, 1, 1]} : vector<2x16x32xf32> to vector<2x1x32xf32>
    %43 = vector.shape_cast %42 : vector<2x1x32xf32> to vector<2x32xf32>
    %44 = vector.extract_strided_slice %1 {offsets = [0, 1, 0], sizes = [2, 1, 32], strides = [1, 1, 1]} : vector<2x16x32xf32> to vector<2x1x32xf32>
    %45 = vector.shape_cast %44 : vector<2x1x32xf32> to vector<2x32xf32>
    %46 = vector.extract_strided_slice %1 {offsets = [0, 2, 0], sizes = [2, 1, 32], strides = [1, 1, 1]} : vector<2x16x32xf32> to vector<2x1x32xf32>
    %47 = vector.shape_cast %46 : vector<2x1x32xf32> to vector<2x32xf32>
    %48 = vector.extract_strided_slice %1 {offsets = [0, 3, 0], sizes = [2, 1, 32], strides = [1, 1, 1]} : vector<2x16x32xf32> to vector<2x1x32xf32>
    %49 = vector.shape_cast %48 : vector<2x1x32xf32> to vector<2x32xf32>
    %50 = vector.extract_strided_slice %1 {offsets = [0, 4, 0], sizes = [2, 1, 32], strides = [1, 1, 1]} : vector<2x16x32xf32> to vector<2x1x32xf32>
    %51 = vector.shape_cast %50 : vector<2x1x32xf32> to vector<2x32xf32>
    %52 = vector.extract_strided_slice %1 {offsets = [0, 5, 0], sizes = [2, 1, 32], strides = [1, 1, 1]} : vector<2x16x32xf32> to vector<2x1x32xf32>
    %53 = vector.shape_cast %52 : vector<2x1x32xf32> to vector<2x32xf32>
    %54 = vector.extract_strided_slice %1 {offsets = [0, 6, 0], sizes = [2, 1, 32], strides = [1, 1, 1]} : vector<2x16x32xf32> to vector<2x1x32xf32>
    %55 = vector.shape_cast %54 : vector<2x1x32xf32> to vector<2x32xf32>
    %56 = vector.extract_strided_slice %1 {offsets = [0, 7, 0], sizes = [2, 1, 32], strides = [1, 1, 1]} : vector<2x16x32xf32> to vector<2x1x32xf32>
    %57 = vector.shape_cast %56 : vector<2x1x32xf32> to vector<2x32xf32>
    %58 = vector.extract_strided_slice %1 {offsets = [0, 8, 0], sizes = [2, 1, 32], strides = [1, 1, 1]} : vector<2x16x32xf32> to vector<2x1x32xf32>
    %59 = vector.shape_cast %58 : vector<2x1x32xf32> to vector<2x32xf32>
    %60 = vector.extract_strided_slice %1 {offsets = [0, 9, 0], sizes = [2, 1, 32], strides = [1, 1, 1]} : vector<2x16x32xf32> to vector<2x1x32xf32>
    %61 = vector.shape_cast %60 : vector<2x1x32xf32> to vector<2x32xf32>
    %62 = vector.extract_strided_slice %1 {offsets = [0, 10, 0], sizes = [2, 1, 32], strides = [1, 1, 1]} : vector<2x16x32xf32> to vector<2x1x32xf32>
    %63 = vector.shape_cast %62 : vector<2x1x32xf32> to vector<2x32xf32>
    %64 = vector.extract_strided_slice %1 {offsets = [0, 11, 0], sizes = [2, 1, 32], strides = [1, 1, 1]} : vector<2x16x32xf32> to vector<2x1x32xf32>
    %65 = vector.shape_cast %64 : vector<2x1x32xf32> to vector<2x32xf32>
    %66 = vector.extract_strided_slice %1 {offsets = [0, 12, 0], sizes = [2, 1, 32], strides = [1, 1, 1]} : vector<2x16x32xf32> to vector<2x1x32xf32>
    %67 = vector.shape_cast %66 : vector<2x1x32xf32> to vector<2x32xf32>
    %68 = vector.extract_strided_slice %1 {offsets = [0, 13, 0], sizes = [2, 1, 32], strides = [1, 1, 1]} : vector<2x16x32xf32> to vector<2x1x32xf32>
    %69 = vector.shape_cast %68 : vector<2x1x32xf32> to vector<2x32xf32>
    %70 = vector.extract_strided_slice %1 {offsets = [0, 14, 0], sizes = [2, 1, 32], strides = [1, 1, 1]} : vector<2x16x32xf32> to vector<2x1x32xf32>
    %71 = vector.shape_cast %70 : vector<2x1x32xf32> to vector<2x32xf32>
    %72 = vector.extract_strided_slice %1 {offsets = [0, 15, 0], sizes = [2, 1, 32], strides = [1, 1, 1]} : vector<2x16x32xf32> to vector<2x1x32xf32>
    %73 = vector.shape_cast %72 : vector<2x1x32xf32> to vector<2x32xf32>
    %74 = tpu.concatenate %11, %43, %13, %45, %15, %47, %17, %49 in 1 : vector<2x32xf32>, vector<2x32xf32>, vector<2x32xf32>, vector<2x32xf32>, vector<2x32xf32>, vector<2x32xf32>, vector<2x32xf32>, vector<2x32xf32> -> vector<2x256xf32>
    %cst = arith.constant dense<0.000000e+00> : vector<2x208xf32>
    %75 = tpu.matmul %74, %2, %cst {dimension_numbers = #tpu.dot_dimension_numbers<[1], [0], [0], [1], [0, 0, 1, 1], [], []>} : vector<2x256xf32>, vector<256x208xf32>, vector<2x208xf32> -> vector<2x208xf32>
    %76 = vector.broadcast %3 : vector<1x208xf32> to vector<2x208xf32>
    %77 = arith.addf %75, %76 : vector<2x208xf32>
    %78 = math.tanh %77 : vector<2x208xf32>
    %79 = tpu.concatenate %13, %45, %15, %47, %17, %49, %19, %51 in 1 : vector<2x32xf32>, vector<2x32xf32>, vector<2x32xf32>, vector<2x32xf32>, vector<2x32xf32>, vector<2x32xf32>, vector<2x32xf32>, vector<2x32xf32> -> vector<2x256xf32>
    %cst_21 = arith.constant dense<0.000000e+00> : vector<2x208xf32>
    %80 = tpu.matmul %79, %2, %cst_21 {dimension_numbers = #tpu.dot_dimension_numbers<[1], [0], [0], [1], [0, 0, 1, 1], [], []>} : vector<2x256xf32>, vector<256x208xf32>, vector<2x208xf32> -> vector<2x208xf32>
    %81 = vector.broadcast %3 : vector<1x208xf32> to vector<2x208xf32>
    %82 = arith.addf %80, %81 : vector<2x208xf32>
    %83 = math.tanh %82 : vector<2x208xf32>
    %84 = tpu.concatenate %15, %47, %17, %49, %19, %51, %21, %53 in 1 : vector<2x32xf32>, vector<2x32xf32>, vector<2x32xf32>, vector<2x32xf32>, vector<2x32xf32>, vector<2x32xf32>, vector<2x32xf32>, vector<2x32xf32> -> vector<2x256xf32>
    %cst_22 = arith.constant dense<0.000000e+00> : vector<2x208xf32>
    %85 = tpu.matmul %84, %2, %cst_22 {dimension_numbers = #tpu.dot_dimension_numbers<[1], [0], [0], [1], [0, 0, 1, 1], [], []>} : vector<2x256xf32>, vector<256x208xf32>, vector<2x208xf32> -> vector<2x208xf32>
    %86 = vector.broadcast %3 : vector<1x208xf32> to vector<2x208xf32>
    %87 = arith.addf %85, %86 : vector<2x208xf32>
    %88 = math.tanh %87 : vector<2x208xf32>
    %89 = tpu.concatenate %17, %49, %19, %51, %21, %53, %23, %55 in 1 : vector<2x32xf32>, vector<2x32xf32>, vector<2x32xf32>, vector<2x32xf32>, vector<2x32xf32>, vector<2x32xf32>, vector<2x32xf32>, vector<2x32xf32> -> vector<2x256xf32>
    %cst_23 = arith.constant dense<0.000000e+00> : vector<2x208xf32>
    %90 = tpu.matmul %89, %2, %cst_23 {dimension_numbers = #tpu.dot_dimension_numbers<[1], [0], [0], [1], [0, 0, 1, 1], [], []>} : vector<2x256xf32>, vector<256x208xf32>, vector<2x208xf32> -> vector<2x208xf32>
    %91 = vector.broadcast %3 : vector<1x208xf32> to vector<2x208xf32>
    %92 = arith.addf %90, %91 : vector<2x208xf32>
    %93 = math.tanh %92 : vector<2x208xf32>
    %94 = tpu.concatenate %19, %51, %21, %53, %23, %55, %25, %57 in 1 : vector<2x32xf32>, vector<2x32xf32>, vector<2x32xf32>, vector<2x32xf32>, vector<2x32xf32>, vector<2x32xf32>, vector<2x32xf32>, vector<2x32xf32> -> vector<2x256xf32>
    %cst_24 = arith.constant dense<0.000000e+00> : vector<2x208xf32>
    %95 = tpu.matmul %94, %2, %cst_24 {dimension_numbers = #tpu.dot_dimension_numbers<[1], [0], [0], [1], [0, 0, 1, 1], [], []>} : vector<2x256xf32>, vector<256x208xf32>, vector<2x208xf32> -> vector<2x208xf32>
    %96 = vector.broadcast %3 : vector<1x208xf32> to vector<2x208xf32>
    %97 = arith.addf %95, %96 : vector<2x208xf32>
    %98 = math.tanh %97 : vector<2x208xf32>
    %99 = tpu.concatenate %21, %53, %23, %55, %25, %57, %27, %59 in 1 : vector<2x32xf32>, vector<2x32xf32>, vector<2x32xf32>, vector<2x32xf32>, vector<2x32xf32>, vector<2x32xf32>, vector<2x32xf32>, vector<2x32xf32> -> vector<2x256xf32>
    %cst_25 = arith.constant dense<0.000000e+00> : vector<2x208xf32>
    %100 = tpu.matmul %99, %2, %cst_25 {dimension_numbers = #tpu.dot_dimension_numbers<[1], [0], [0], [1], [0, 0, 1, 1], [], []>} : vector<2x256xf32>, vector<256x208xf32>, vector<2x208xf32> -> vector<2x208xf32>
    %101 = vector.broadcast %3 : vector<1x208xf32> to vector<2x208xf32>
    %102 = arith.addf %100, %101 : vector<2x208xf32>
    %103 = math.tanh %102 : vector<2x208xf32>
    %104 = tpu.concatenate %23, %55, %25, %57, %27, %59, %29, %61 in 1 : vector<2x32xf32>, vector<2x32xf32>, vector<2x32xf32>, vector<2x32xf32>, vector<2x32xf32>, vector<2x32xf32>, vector<2x32xf32>, vector<2x32xf32> -> vector<2x256xf32>
    %cst_26 = arith.constant dense<0.000000e+00> : vector<2x208xf32>
    %105 = tpu.matmul %104, %2, %cst_26 {dimension_numbers = #tpu.dot_dimension_numbers<[1], [0], [0], [1], [0, 0, 1, 1], [], []>} : vector<2x256xf32>, vector<256x208xf32>, vector<2x208xf32> -> vector<2x208xf32>
    %106 = vector.broadcast %3 : vector<1x208xf32> to vector<2x208xf32>
    %107 = arith.addf %105, %106 : vector<2x208xf32>
    %108 = math.tanh %107 : vector<2x208xf32>
    %109 = tpu.concatenate %25, %57, %27, %59, %29, %61, %31, %63 in 1 : vector<2x32xf32>, vector<2x32xf32>, vector<2x32xf32>, vector<2x32xf32>, vector<2x32xf32>, vector<2x32xf32>, vector<2x32xf32>, vector<2x32xf32> -> vector<2x256xf32>
    %cst_27 = arith.constant dense<0.000000e+00> : vector<2x208xf32>
    %110 = tpu.matmul %109, %2, %cst_27 {dimension_numbers = #tpu.dot_dimension_numbers<[1], [0], [0], [1], [0, 0, 1, 1], [], []>} : vector<2x256xf32>, vector<256x208xf32>, vector<2x208xf32> -> vector<2x208xf32>
    %111 = vector.broadcast %3 : vector<1x208xf32> to vector<2x208xf32>
    %112 = arith.addf %110, %111 : vector<2x208xf32>
    %113 = math.tanh %112 : vector<2x208xf32>
    %114 = tpu.concatenate %27, %59, %29, %61, %31, %63, %33, %65 in 1 : vector<2x32xf32>, vector<2x32xf32>, vector<2x32xf32>, vector<2x32xf32>, vector<2x32xf32>, vector<2x32xf32>, vector<2x32xf32>, vector<2x32xf32> -> vector<2x256xf32>
    %cst_28 = arith.constant dense<0.000000e+00> : vector<2x208xf32>
    %115 = tpu.matmul %114, %2, %cst_28 {dimension_numbers = #tpu.dot_dimension_numbers<[1], [0], [0], [1], [0, 0, 1, 1], [], []>} : vector<2x256xf32>, vector<256x208xf32>, vector<2x208xf32> -> vector<2x208xf32>
    %116 = vector.broadcast %3 : vector<1x208xf32> to vector<2x208xf32>
    %117 = arith.addf %115, %116 : vector<2x208xf32>
    %118 = math.tanh %117 : vector<2x208xf32>
    %119 = tpu.concatenate %29, %61, %31, %63, %33, %65, %35, %67 in 1 : vector<2x32xf32>, vector<2x32xf32>, vector<2x32xf32>, vector<2x32xf32>, vector<2x32xf32>, vector<2x32xf32>, vector<2x32xf32>, vector<2x32xf32> -> vector<2x256xf32>
    %cst_29 = arith.constant dense<0.000000e+00> : vector<2x208xf32>
    %120 = tpu.matmul %119, %2, %cst_29 {dimension_numbers = #tpu.dot_dimension_numbers<[1], [0], [0], [1], [0, 0, 1, 1], [], []>} : vector<2x256xf32>, vector<256x208xf32>, vector<2x208xf32> -> vector<2x208xf32>
    %121 = vector.broadcast %3 : vector<1x208xf32> to vector<2x208xf32>
    %122 = arith.addf %120, %121 : vector<2x208xf32>
    %123 = math.tanh %122 : vector<2x208xf32>
    %124 = tpu.concatenate %31, %63, %33, %65, %35, %67, %37, %69 in 1 : vector<2x32xf32>, vector<2x32xf32>, vector<2x32xf32>, vector<2x32xf32>, vector<2x32xf32>, vector<2x32xf32>, vector<2x32xf32>, vector<2x32xf32> -> vector<2x256xf32>
    %cst_30 = arith.constant dense<0.000000e+00> : vector<2x208xf32>
    %125 = tpu.matmul %124, %2, %cst_30 {dimension_numbers = #tpu.dot_dimension_numbers<[1], [0], [0], [1], [0, 0, 1, 1], [], []>} : vector<2x256xf32>, vector<256x208xf32>, vector<2x208xf32> -> vector<2x208xf32>
    %126 = vector.broadcast %3 : vector<1x208xf32> to vector<2x208xf32>
    %127 = arith.addf %125, %126 : vector<2x208xf32>
    %128 = math.tanh %127 : vector<2x208xf32>
    %129 = tpu.concatenate %33, %65, %35, %67, %37, %69, %39, %71 in 1 : vector<2x32xf32>, vector<2x32xf32>, vector<2x32xf32>, vector<2x32xf32>, vector<2x32xf32>, vector<2x32xf32>, vector<2x32xf32>, vector<2x32xf32> -> vector<2x256xf32>
    %cst_31 = arith.constant dense<0.000000e+00> : vector<2x208xf32>
    %130 = tpu.matmul %129, %2, %cst_31 {dimension_numbers = #tpu.dot_dimension_numbers<[1], [0], [0], [1], [0, 0, 1, 1], [], []>} : vector<2x256xf32>, vector<256x208xf32>, vector<2x208xf32> -> vector<2x208xf32>
    %131 = vector.broadcast %3 : vector<1x208xf32> to vector<2x208xf32>
    %132 = arith.addf %130, %131 : vector<2x208xf32>
    %133 = math.tanh %132 : vector<2x208xf32>
    %134 = tpu.concatenate %35, %67, %37, %69, %39, %71, %41, %73 in 1 : vector<2x32xf32>, vector<2x32xf32>, vector<2x32xf32>, vector<2x32xf32>, vector<2x32xf32>, vector<2x32xf32>, vector<2x32xf32>, vector<2x32xf32> -> vector<2x256xf32>
    %cst_32 = arith.constant dense<0.000000e+00> : vector<2x208xf32>
    %135 = tpu.matmul %134, %2, %cst_32 {dimension_numbers = #tpu.dot_dimension_numbers<[1], [0], [0], [1], [0, 0, 1, 1], [], []>} : vector<2x256xf32>, vector<256x208xf32>, vector<2x208xf32> -> vector<2x208xf32>
    %136 = vector.broadcast %3 : vector<1x208xf32> to vector<2x208xf32>
    %137 = arith.addf %135, %136 : vector<2x208xf32>
    %138 = math.tanh %137 : vector<2x208xf32>
    %139 = arith.maximumf %78, %83 : vector<2x208xf32>
    %140 = vector.extract_strided_slice %139 {offsets = [0, 0], sizes = [2, 192], strides = [1, 1]} : vector<2x208xf32> to vector<2x192xf32>
    %141 = vector.extract_strided_slice %139 {offsets = [0, 16], sizes = [2, 192], strides = [1, 1]} : vector<2x208xf32> to vector<2x192xf32>
    %142 = arith.maximumf %140, %141 : vector<2x192xf32>
    %143 = arith.maximumf %83, %88 : vector<2x208xf32>
    %144 = vector.extract_strided_slice %143 {offsets = [0, 0], sizes = [2, 192], strides = [1, 1]} : vector<2x208xf32> to vector<2x192xf32>
    %145 = vector.extract_strided_slice %143 {offsets = [0, 16], sizes = [2, 192], strides = [1, 1]} : vector<2x208xf32> to vector<2x192xf32>
    %146 = arith.maximumf %144, %145 : vector<2x192xf32>
    %147 = arith.maximumf %88, %93 : vector<2x208xf32>
    %148 = vector.extract_strided_slice %147 {offsets = [0, 0], sizes = [2, 192], strides = [1, 1]} : vector<2x208xf32> to vector<2x192xf32>
    %149 = vector.extract_strided_slice %147 {offsets = [0, 16], sizes = [2, 192], strides = [1, 1]} : vector<2x208xf32> to vector<2x192xf32>
    %150 = arith.maximumf %148, %149 : vector<2x192xf32>
    %151 = arith.maximumf %93, %98 : vector<2x208xf32>
    %152 = vector.extract_strided_slice %151 {offsets = [0, 0], sizes = [2, 192], strides = [1, 1]} : vector<2x208xf32> to vector<2x192xf32>
    %153 = vector.extract_strided_slice %151 {offsets = [0, 16], sizes = [2, 192], strides = [1, 1]} : vector<2x208xf32> to vector<2x192xf32>
    %154 = arith.maximumf %152, %153 : vector<2x192xf32>
    %155 = arith.maximumf %98, %103 : vector<2x208xf32>
    %156 = vector.extract_strided_slice %155 {offsets = [0, 0], sizes = [2, 192], strides = [1, 1]} : vector<2x208xf32> to vector<2x192xf32>
    %157 = vector.extract_strided_slice %155 {offsets = [0, 16], sizes = [2, 192], strides = [1, 1]} : vector<2x208xf32> to vector<2x192xf32>
    %158 = arith.maximumf %156, %157 : vector<2x192xf32>
    %159 = arith.maximumf %103, %108 : vector<2x208xf32>
    %160 = vector.extract_strided_slice %159 {offsets = [0, 0], sizes = [2, 192], strides = [1, 1]} : vector<2x208xf32> to vector<2x192xf32>
    %161 = vector.extract_strided_slice %159 {offsets = [0, 16], sizes = [2, 192], strides = [1, 1]} : vector<2x208xf32> to vector<2x192xf32>
    %162 = arith.maximumf %160, %161 : vector<2x192xf32>
    %163 = arith.maximumf %108, %113 : vector<2x208xf32>
    %164 = vector.extract_strided_slice %163 {offsets = [0, 0], sizes = [2, 192], strides = [1, 1]} : vector<2x208xf32> to vector<2x192xf32>
    %165 = vector.extract_strided_slice %163 {offsets = [0, 16], sizes = [2, 192], strides = [1, 1]} : vector<2x208xf32> to vector<2x192xf32>
    %166 = arith.maximumf %164, %165 : vector<2x192xf32>
    %167 = arith.maximumf %113, %118 : vector<2x208xf32>
    %168 = vector.extract_strided_slice %167 {offsets = [0, 0], sizes = [2, 192], strides = [1, 1]} : vector<2x208xf32> to vector<2x192xf32>
    %169 = vector.extract_strided_slice %167 {offsets = [0, 16], sizes = [2, 192], strides = [1, 1]} : vector<2x208xf32> to vector<2x192xf32>
    %170 = arith.maximumf %168, %169 : vector<2x192xf32>
    %171 = arith.maximumf %118, %123 : vector<2x208xf32>
    %172 = vector.extract_strided_slice %171 {offsets = [0, 0], sizes = [2, 192], strides = [1, 1]} : vector<2x208xf32> to vector<2x192xf32>
    %173 = vector.extract_strided_slice %171 {offsets = [0, 16], sizes = [2, 192], strides = [1, 1]} : vector<2x208xf32> to vector<2x192xf32>
    %174 = arith.maximumf %172, %173 : vector<2x192xf32>
    %175 = arith.maximumf %123, %128 : vector<2x208xf32>
    %176 = vector.extract_strided_slice %175 {offsets = [0, 0], sizes = [2, 192], strides = [1, 1]} : vector<2x208xf32> to vector<2x192xf32>
    %177 = vector.extract_strided_slice %175 {offsets = [0, 16], sizes = [2, 192], strides = [1, 1]} : vector<2x208xf32> to vector<2x192xf32>
    %178 = arith.maximumf %176, %177 : vector<2x192xf32>
    %179 = arith.maximumf %128, %133 : vector<2x208xf32>
    %180 = vector.extract_strided_slice %179 {offsets = [0, 0], sizes = [2, 192], strides = [1, 1]} : vector<2x208xf32> to vector<2x192xf32>
    %181 = vector.extract_strided_slice %179 {offsets = [0, 16], sizes = [2, 192], strides = [1, 1]} : vector<2x208xf32> to vector<2x192xf32>
    %182 = arith.maximumf %180, %181 : vector<2x192xf32>
    %183 = arith.maximumf %133, %138 : vector<2x208xf32>
    %184 = vector.extract_strided_slice %183 {offsets = [0, 0], sizes = [2, 192], strides = [1, 1]} : vector<2x208xf32> to vector<2x192xf32>
    %185 = vector.extract_strided_slice %183 {offsets = [0, 16], sizes = [2, 192], strides = [1, 1]} : vector<2x208xf32> to vector<2x192xf32>
    %186 = arith.maximumf %184, %185 : vector<2x192xf32>
    %187 = tpu.concatenate %142, %146, %150, %154 in 1 : vector<2x192xf32>, vector<2x192xf32>, vector<2x192xf32>, vector<2x192xf32> -> vector<2x768xf32>
    %cst_33 = arith.constant dense<0.000000e+00> : vector<2x160xf32>
    %188 = tpu.matmul %187, %4, %cst_33 {dimension_numbers = #tpu.dot_dimension_numbers<[1], [0], [0], [1], [0, 0, 1, 1], [], []>} : vector<2x768xf32>, vector<768x160xf32>, vector<2x160xf32> -> vector<2x160xf32>
    %189 = vector.broadcast %5 : vector<1x160xf32> to vector<2x160xf32>
    %190 = arith.addf %188, %189 : vector<2x160xf32>
    %191 = math.tanh %190 : vector<2x160xf32>
    %192 = tpu.concatenate %150, %154, %158, %162 in 1 : vector<2x192xf32>, vector<2x192xf32>, vector<2x192xf32>, vector<2x192xf32> -> vector<2x768xf32>
    %cst_34 = arith.constant dense<0.000000e+00> : vector<2x160xf32>
    %193 = tpu.matmul %192, %4, %cst_34 {dimension_numbers = #tpu.dot_dimension_numbers<[1], [0], [0], [1], [0, 0, 1, 1], [], []>} : vector<2x768xf32>, vector<768x160xf32>, vector<2x160xf32> -> vector<2x160xf32>
    %194 = vector.broadcast %5 : vector<1x160xf32> to vector<2x160xf32>
    %195 = arith.addf %193, %194 : vector<2x160xf32>
    %196 = math.tanh %195 : vector<2x160xf32>
    %197 = tpu.concatenate %158, %162, %166, %170 in 1 : vector<2x192xf32>, vector<2x192xf32>, vector<2x192xf32>, vector<2x192xf32> -> vector<2x768xf32>
    %cst_35 = arith.constant dense<0.000000e+00> : vector<2x160xf32>
    %198 = tpu.matmul %197, %4, %cst_35 {dimension_numbers = #tpu.dot_dimension_numbers<[1], [0], [0], [1], [0, 0, 1, 1], [], []>} : vector<2x768xf32>, vector<768x160xf32>, vector<2x160xf32> -> vector<2x160xf32>
    %199 = vector.broadcast %5 : vector<1x160xf32> to vector<2x160xf32>
    %200 = arith.addf %198, %199 : vector<2x160xf32>
    %201 = math.tanh %200 : vector<2x160xf32>
    %202 = tpu.concatenate %166, %170, %174, %178 in 1 : vector<2x192xf32>, vector<2x192xf32>, vector<2x192xf32>, vector<2x192xf32> -> vector<2x768xf32>
    %cst_36 = arith.constant dense<0.000000e+00> : vector<2x160xf32>
    %203 = tpu.matmul %202, %4, %cst_36 {dimension_numbers = #tpu.dot_dimension_numbers<[1], [0], [0], [1], [0, 0, 1, 1], [], []>} : vector<2x768xf32>, vector<768x160xf32>, vector<2x160xf32> -> vector<2x160xf32>
    %204 = vector.broadcast %5 : vector<1x160xf32> to vector<2x160xf32>
    %205 = arith.addf %203, %204 : vector<2x160xf32>
    %206 = math.tanh %205 : vector<2x160xf32>
    %207 = tpu.concatenate %174, %178, %182, %186 in 1 : vector<2x192xf32>, vector<2x192xf32>, vector<2x192xf32>, vector<2x192xf32> -> vector<2x768xf32>
    %cst_37 = arith.constant dense<0.000000e+00> : vector<2x160xf32>
    %208 = tpu.matmul %207, %4, %cst_37 {dimension_numbers = #tpu.dot_dimension_numbers<[1], [0], [0], [1], [0, 0, 1, 1], [], []>} : vector<2x768xf32>, vector<768x160xf32>, vector<2x160xf32> -> vector<2x160xf32>
    %209 = vector.broadcast %5 : vector<1x160xf32> to vector<2x160xf32>
    %210 = arith.addf %208, %209 : vector<2x160xf32>
    %211 = math.tanh %210 : vector<2x160xf32>
    %212 = arith.maximumf %191, %196 : vector<2x160xf32>
    %213 = vector.extract_strided_slice %212 {offsets = [0, 0], sizes = [2, 128], strides = [1, 1]} : vector<2x160xf32> to vector<2x128xf32>
    %214 = vector.extract_strided_slice %212 {offsets = [0, 32], sizes = [2, 128], strides = [1, 1]} : vector<2x160xf32> to vector<2x128xf32>
    %215 = arith.maximumf %213, %214 : vector<2x128xf32>
    %216 = vector.extract_strided_slice %6 {offsets = [0, 0], sizes = [128, 32], strides = [1, 1]} : vector<512x32xf32> to vector<128x32xf32>
    %cst_38 = arith.constant dense<0.000000e+00> : vector<2x32xf32>
    %217 = tpu.matmul %215, %216, %cst_38 {dimension_numbers = #tpu.dot_dimension_numbers<[1], [0], [0], [1], [0, 0, 1, 1], [], []>} : vector<2x128xf32>, vector<128x32xf32>, vector<2x32xf32> -> vector<2x32xf32>
    %218 = vector.broadcast %7 : vector<1x32xf32> to vector<2x32xf32>
    %219 = arith.addf %218, %217 : vector<2x32xf32>
    %220 = arith.maximumf %196, %201 : vector<2x160xf32>
    %221 = vector.extract_strided_slice %220 {offsets = [0, 0], sizes = [2, 128], strides = [1, 1]} : vector<2x160xf32> to vector<2x128xf32>
    %222 = vector.extract_strided_slice %220 {offsets = [0, 32], sizes = [2, 128], strides = [1, 1]} : vector<2x160xf32> to vector<2x128xf32>
    %223 = arith.maximumf %221, %222 : vector<2x128xf32>
    %224 = vector.extract_strided_slice %6 {offsets = [128, 0], sizes = [128, 32], strides = [1, 1]} : vector<512x32xf32> to vector<128x32xf32>
    %cst_39 = arith.constant dense<0.000000e+00> : vector<2x32xf32>
    %225 = tpu.matmul %223, %224, %cst_39 {dimension_numbers = #tpu.dot_dimension_numbers<[1], [0], [0], [1], [0, 0, 1, 1], [], []>} : vector<2x128xf32>, vector<128x32xf32>, vector<2x32xf32> -> vector<2x32xf32>
    %226 = arith.addf %219, %225 : vector<2x32xf32>
    %227 = arith.maximumf %201, %206 : vector<2x160xf32>
    %228 = vector.extract_strided_slice %227 {offsets = [0, 0], sizes = [2, 128], strides = [1, 1]} : vector<2x160xf32> to vector<2x128xf32>
    %229 = vector.extract_strided_slice %227 {offsets = [0, 32], sizes = [2, 128], strides = [1, 1]} : vector<2x160xf32> to vector<2x128xf32>
    %230 = arith.maximumf %228, %229 : vector<2x128xf32>
    %231 = vector.extract_strided_slice %6 {offsets = [256, 0], sizes = [128, 32], strides = [1, 1]} : vector<512x32xf32> to vector<128x32xf32>
    %cst_40 = arith.constant dense<0.000000e+00> : vector<2x32xf32>
    %232 = tpu.matmul %230, %231, %cst_40 {dimension_numbers = #tpu.dot_dimension_numbers<[1], [0], [0], [1], [0, 0, 1, 1], [], []>} : vector<2x128xf32>, vector<128x32xf32>, vector<2x32xf32> -> vector<2x32xf32>
    %233 = arith.addf %226, %232 : vector<2x32xf32>
    %234 = arith.maximumf %206, %211 : vector<2x160xf32>
    %235 = vector.extract_strided_slice %234 {offsets = [0, 0], sizes = [2, 128], strides = [1, 1]} : vector<2x160xf32> to vector<2x128xf32>
    %236 = vector.extract_strided_slice %234 {offsets = [0, 32], sizes = [2, 128], strides = [1, 1]} : vector<2x160xf32> to vector<2x128xf32>
    %237 = arith.maximumf %235, %236 : vector<2x128xf32>
    %238 = vector.extract_strided_slice %6 {offsets = [384, 0], sizes = [128, 32], strides = [1, 1]} : vector<512x32xf32> to vector<128x32xf32>
    %cst_41 = arith.constant dense<0.000000e+00> : vector<2x32xf32>
    %239 = tpu.matmul %237, %238, %cst_41 {dimension_numbers = #tpu.dot_dimension_numbers<[1], [0], [0], [1], [0, 0, 1, 1], [], []>} : vector<2x128xf32>, vector<128x32xf32>, vector<2x32xf32> -> vector<2x32xf32>
    %240 = arith.addf %233, %239 : vector<2x32xf32>
    %241 = math.tanh %240 : vector<2x32xf32>
    %cst_42 = arith.constant dense<0.000000e+00> : vector<2x128xf32>
    %242 = tpu.matmul %241, %8, %cst_42 {dimension_numbers = #tpu.dot_dimension_numbers<[1], [0], [0], [1], [0, 0, 1, 1], [], []>} : vector<2x32xf32>, vector<32x128xf32>, vector<2x128xf32> -> vector<2x128xf32>
    %243 = vector.broadcast %9 : vector<1x128xf32> to vector<2x128xf32>
    %244 = arith.addf %242, %243 : vector<2x128xf32>
    %c0_43 = arith.constant 0 : index
    %c0_44 = arith.constant 0 : index
    %245 = vector.load %arg11[%c0_43, %c0_44] : memref<2x128xf32, #tpu.memory_space<vmem>>, vector<2x128xf32>
    tpu.vector_store %arg11[%c0_43, %c0_44], %244 {strides = array<i32>} : memref<2x128xf32, #tpu.memory_space<vmem>>, vector<2x128xf32>,
    return
  }
  func.func @transform_0(%arg0: i32) -> (i32, i32, i32) {
    %c0_i32 = arith.constant 0 : i32
    %c0_i32_0 = arith.constant 0 : i32
    %c0_i32_1 = arith.constant 0 : i32
    return %arg0, %c0_i32, %c0_i32_0 : i32, i32, i32
  }
  func.func @transform_1(%arg0: i32) -> (i32, i32, i32) {
    %c0_i32 = arith.constant 0 : i32
    %c0_i32_0 = arith.constant 0 : i32
    %c0_i32_1 = arith.constant 0 : i32
    return %arg0, %c0_i32, %c0_i32_0 : i32, i32, i32
  }
  func.func @transform_2(%arg0: i32) -> (i32, i32) {
    %c0_i32 = arith.constant 0 : i32
    %c0_i32_0 = arith.constant 0 : i32
    %c0_i32_1 = arith.constant 0 : i32
    return %c0_i32, %c0_i32_0 : i32, i32
  }
  func.func @transform_3(%arg0: i32) -> (i32, i32) {
    %c0_i32 = arith.constant 0 : i32
    %c0_i32_0 = arith.constant 0 : i32
    %c0_i32_1 = arith.constant 0 : i32
    return %c0_i32, %c0_i32_0 : i32, i32
  }
  func.func @transform_4(%arg0: i32) -> (i32, i32) {
    %c0_i32 = arith.constant 0 : i32
    %c0_i32_0 = arith.constant 0 : i32
    %c0_i32_1 = arith.constant 0 : i32
    return %c0_i32, %c0_i32_0 : i32, i32
  }
  func.func @transform_5(%arg0: i32) -> (i32, i32) {
    %c0_i32 = arith.constant 0 : i32
    %c0_i32_0 = arith.constant 0 : i32
    %c0_i32_1 = arith.constant 0 : i32
    return %c0_i32, %c0_i32_0 : i32, i32
  }
  func.func @transform_6(%arg0: i32) -> (i32, i32) {
    %c0_i32 = arith.constant 0 : i32
    %c0_i32_0 = arith.constant 0 : i32
    %c0_i32_1 = arith.constant 0 : i32
    return %c0_i32, %c0_i32_0 : i32, i32
  }
  func.func @transform_7(%arg0: i32) -> (i32, i32) {
    %c0_i32 = arith.constant 0 : i32
    %c0_i32_0 = arith.constant 0 : i32
    %c0_i32_1 = arith.constant 0 : i32
    return %c0_i32, %c0_i32_0 : i32, i32
  }
  func.func @transform_8(%arg0: i32) -> (i32, i32) {
    %c0_i32 = arith.constant 0 : i32
    %c0_i32_0 = arith.constant 0 : i32
    %c0_i32_1 = arith.constant 0 : i32
    return %c0_i32, %c0_i32_0 : i32, i32
  }
  func.func @transform_9(%arg0: i32) -> (i32, i32) {
    %c0_i32 = arith.constant 0 : i32
    %c0_i32_0 = arith.constant 0 : i32
    %c0_i32_1 = arith.constant 0 : i32
    return %c0_i32, %c0_i32_0 : i32, i32
  }
  func.func @transform_10(%arg0: i32) -> (i32, i32) {
    %c0_i32 = arith.constant 0 : i32
    %c0_i32_0 = arith.constant 0 : i32
    return %arg0, %c0_i32 : i32, i32
  }
}

</mosaic_0001>

<bundles_post_ra>
// kernel: tile.13
= control target key start
LH: loop header
LB: loop body
LE: loop exit
PB: predicated region body
PF: predicated region fallthrough
CT: control target
= control target key end

     0   :  { %s28_s0 = inlined_call_operand.vmem [shape: f32[16], index: 0, kind: input, shape index: {}]   ;;  %s29_s1 = inlined_call_operand.vmem [shape: f32[13,16], index: 1, kind: output, shape index: {}]  }
   0x1   :  { %v4_v0 = vld [vmem:[%s28_s0] ss:$0 sm:$0xff] }
   0x2   :  { %5 = vst [vmem:[%s29_s1] sm:$0xff] %v4_v0  ;;  %8 = vst [vmem:[%s29_s1 + $0x8] sm:$0xff] %v4_v0 }

// kernel: tile.14
= control target key start
LH: loop header
LB: loop body
LE: loop exit
PB: predicated region body
PF: predicated region fallthrough
CT: control target
= control target key end

     0   :  { %s78_s10 = smov 112   ;;  %s79_s11 = smov 80   ;;  %vm4_vm0 = vcmask 130048   ;;  %vm10_vm1 = vcmask 1048448   ;;  %vm16_vm2 = vcmask 917248   ;;  %vm22_vm3 = vcmask 786048   ;;  %s125_s0 = inlined_call_operand.vmem [shape: f32[13,16], index: 0, kind: input, shape index: {}]   ;;  %s126_s1 = inlined_call_operand.vmem [shape: f32[1,208], index: 1, kind: output, shape index: {}]  }
   0x1   :  { %v63_v0 = vld [vmem:[%s125_s0 + $0x7] sm:$0x1]   ;;  %v65_v1 = vld [vmem:[%s125_s0 + $0x5] sm:$0x1]   ;;  %s25_s12 = smov 3  ;;  %s32_s17 = smov 3 }
   0x2   :  { %8 = vrot.lane.b32.xlu0 %v63_v0, %s78_s10  ;;  %20 = vrot.lane.b32.xlu1 %v65_v1, %s79_s11  ;;  %v64_v2 = vld [vmem:[%s125_s0 + $0x6] sm:$0x1]   ;;  %s39_s18 = smov 3  ;;  %s80_s19 = smov 96   ;;  %vm29_vm4 = vcmask 654848   ;;  %vm36_vm5 = vcmask 523648  }
   0x3   :  { %v66_v3 = vld [vmem:[%s125_s0 + $0x4] ss:$8 sm:%s25_s12]   ;;  %s81_s20 = smov 64   ;;  %v67_v4 = vld [vmem:[%s125_s0 + $0x3] ss:$8 sm:%s32_s17]   ;;  %s2_s23 = smov 3 }
   0x4   :  { %v68_v5 = vld [vmem:[%s125_s0 + $0x2] ss:$8 sm:%s39_s18]   ;;  %v3_v6 = vld [vmem:[%s125_s0] ss:$8 sm:%s2_s23]   ;;  %s46_s28 = smov 3  ;;  %s82_s29 = smov 48  }
   0x5   :  { %5 = vst.msk [vmem:[#allocation0] ss:$8 sm:$0x3] %vm4_vm0, %v3_v6   ;;  %s83_s30 = smov 32   ;;  %v69_v7 = vld [vmem:[%s125_s0 + $0x1] ss:$8 sm:%s46_s28]  }
   0x6   :  { %14 = vrot.lane.b32.xlu0 %v64_v2, %s80_s19  ;;  %27 = vrot.lane.b32.xlu1 %v66_v3, %s81_s20  ;;  %s84_s0 = smov 16   ;;  %vm43_vm6 = vcmask 392448   ;;  %vm50_vm7 = vcmask 261248  }
   0xa   :  { %34 = vrot.lane.b32.xlu0 %v67_v4, %s82_s29  ;;  %41 = vrot.lane.b32.xlu1 %v68_v5, %s83_s30 }
   0xe   :  { %48 = vrot.lane.b32.xlu0 %v69_v7, %s84_s0 }
  0x74   :  { %v9_v8 = vpop.permute.xlu0 %8   ;;  %v21_v9 = vpop.permute.xlu1 %20  }
  0x75   :  { %11 = vst.msk [vmem:[#allocation0] sm:$0x1] %vm10_vm1, %v9_v8  }
  0x78   :  { %v15_v10 = vpop.permute.xlu0 %14   ;;  %v28_v11 = vpop.permute.xlu1 %27  }
  0x79   :  { %17 = vst.msk [vmem:[#allocation0] sm:$0x1] %vm16_vm2, %v15_v10  }
  0x7a   :  { %23 = vst.msk [vmem:[#allocation0] sm:$0x1] %vm22_vm3, %v21_v9  }
  0x7b   :  { %30 = vst.msk [vmem:[#allocation0] ss:$8 sm:$0x3] %vm29_vm4, %v28_v11  }
  0x7c   :  { %v35_v12 = vpop.permute.xlu0 %34   ;;  %v42_v13 = vpop.permute.xlu1 %41  }
  0x7d   :  { %37 = vst.msk [vmem:[#allocation0] ss:$8 sm:$0x3] %vm36_vm5, %v35_v12  }
  0x7e   :  { %44 = vst.msk [vmem:[#allocation0] ss:$8 sm:$0x3] %vm43_vm6, %v42_v13  }
  0x80   :  { %v49_v14 = vpop.permute.xlu0 %48  }
  0x81   :  { %51 = vst.msk [vmem:[#allocation0] ss:$8 sm:$0x3] %vm50_vm7, %v49_v14  }
  0x88   :  { %v55_v15 = vld [vmem:[#allocation0] sm:$0x1]  ;;  %v59_v16 = vld [vmem:[#allocation0 + $0x8] sm:$0x1] }
  0x89   :  { %57 = vst [vmem:[%s126_s1] sm:$0x1] %v55_v15  ;;  %70 = vst [vmem:[%s126_s1 + $0x1] sm:$0x1] %v59_v16 }

// kernel: tile.18
= control target key start
LH: loop header
LB: loop body
LE: loop exit
PB: predicated region body
PF: predicated region fallthrough
CT: control target
= control target key end

     0   :  { %s22_s0 = inlined_call_operand.vmem [shape: f32[32], index: 0, kind: input, shape index: {}]   ;;  %s23_s1 = inlined_call_operand.vmem [shape: f32[5,32], index: 1, kind: output, shape index: {}]  }
   0x1   :  { %v4_v0 = vld [vmem:[%s22_s0] ss:$0 sm:$0xff] }
   0x2   :  { %5 = vst [vmem:[%s23_s1] sm:$0xff] %v4_v0 }

// kernel: tile.19
= control target key start
LH: loop header
LB: loop body
LE: loop exit
PB: predicated region body
PF: predicated region fallthrough
CT: control target
= control target key end

     0   :  { %s42_s8 = smov 96   ;;  %s2_s11 = smov 3  ;;  %vm4_vm0 = vcmask 261120   ;;  %vm10_vm1 = vcmask 1048320   ;;  %vm16_vm2 = vcmask 785920   ;;  %vm22_vm3 = vcmask 523520   ;;  %s73_s0 = inlined_call_operand.vmem [shape: f32[5,32], index: 0, kind: input, shape index: {}]   ;;  %s74_s1 = inlined_call_operand.vmem [shape: f32[1,160], index: 1, kind: output, shape index: {}]  }
   0x1   :  { %v35_v0 = vld [vmem:[%s73_s0 + $0x3] sm:$0x1]   ;;  %v37_v1 = vld [vmem:[%s73_s0 + $0x1] sm:$0x1]   ;;  %v36_v2 = vld [vmem:[%s73_s0 + $0x2] sm:$0x1]  }
   0x2   :  { %8 = vrot.lane.b32.xlu0 %v35_v0, %s42_s8  ;;  %s43_s14 = smov 32   ;;  %v3_v3 = vld [vmem:[%s73_s0] ss:$4 sm:%s2_s11]   ;;  %s44_s0 = smov 64  }
   0x3   :  { %20 = vrot.lane.b32.xlu1 %v37_v1, %s43_s14  ;;  %5 = vst.msk [vmem:[#allocation0] ss:$8 sm:$0x3] %vm4_vm0, %v3_v3  }
   0x6   :  { %14 = vrot.lane.b32.xlu0 %v36_v2, %s44_s0 }
   0xa   :  { %v31_v4 = vld [vmem:[#allocation0 + $0x8] sm:$0x1] }
   0xb   :  { %38 = vst [vmem:[%s74_s1 + $0x1] sm:$0x1] %v31_v4 }
  0x74   :  { %v9_v5 = vpop.permute.xlu0 %8  }
  0x75   :  { %11 = vst.msk [vmem:[#allocation0] sm:$0x1] %vm10_vm1, %v9_v5   ;;  %v21_v6 = vpop.permute.xlu1 %20  }
  0x78   :  { %v15_v7 = vpop.permute.xlu0 %14  }
  0x79   :  { %17 = vst.msk [vmem:[#allocation0] sm:$0x1] %vm16_vm2, %v15_v7  }
  0x7a   :  { %23 = vst.msk [vmem:[#allocation0] sm:$0x1] %vm22_vm3, %v21_v6  }
  0x81   :  { %v27_v8 = vld [vmem:[#allocation0] sm:$0x1] }
  0x82   :  { %29 = vst [vmem:[%s74_s1] sm:$0x1] %v27_v8 }

// kernel: _lambda_.1
= control target key start
LH: loop header
LB: loop body
LE: loop exit
PB: predicated region body
PF: predicated region fallthrough
CT: control target
= control target key end

     0   :  { %vm375_vm0 = vcmask 1041409   ;;  %vm510_vm1 = vcmask 1042434   ;;  %s6214_s13 = smov 32   ;;  %s6215_s14 = smov 96   ;;  %vm624_vm2 = vcmask 1043459   ;;  %vm738_vm3 = vcmask 1044484   ;;  %s9543_s0 = inlined_call_operand.vmem [shape: f32[2,16,32], index: 0, kind: input, shape index: {}]   ;;  %s9544_s1 = inlined_call_operand.vmem [shape: f32[2,16,32], index: 1, kind: input, shape index: {}]   ;;  %s9545_s2 = inlined_call_operand.vmem [shape: f32[256,208], index: 2, kind: input, shape index: {}]   ;;  %s9546_s3 = inlined_call_operand.vmem [shape: f32[1,208], index: 3, kind: input, shape index: {}]   ;;  %s9547_s4 = inlined_call_operand.vmem [shape: f32[768,160], index: 4, kind: input, shape index: {}]   ;;  %s9548_s5 = inlined_call_operand.vmem [shape: f32[1,160], index: 5, kind: input, shape index: {}]   ;;  %s9549_s6 = inlined_call_operand.vmem [shape: f32[512,32], index: 6, kind: input, shape index: {}]   ;;  %s9550_s7 = inlined_call_operand.vmem [shape: f32[1,32], index: 7, kind: input, shape index: {}]   ;;  %s9551_s8 = inlined_call_operand.vmem [shape: f32[32,128], index: 8, kind: input, shape index: {}]   ;;  %s9552_s9 = inlined_call_operand.vmem [shape: f32[1,128], index: 9, kind: input, shape index: {}]   ;;  %s9553_s10 = inlined_call_operand.hbm [shape: f32[2,128], index: 10, kind: output, shape index: {}]  }
   0x1   :  { %v6280_v0 = vld [vmem:[%s9544_s1] sm:$0xff]  ;;  %v6285_v1 = vld [vmem:[%s9544_s1 + $0x10] sm:$0xff]  ;;  %v45_v19 = vld [vmem:[%s9545_s2 + $0x8] sm:$0xff]  ;;  %s6216_s23 = smov 64   ;;  %vm966_vm4 = vcmask 1046534  }
   0x2   :  { %v6290_v2 = vld [vmem:[%s9543_s0] sm:$0xff]  ;;  %v6293_v3 = vrot.slane %v6285_v1, 7  ;;  %v6296_v4 = vrot.slane %v6280_v0, 2  ;;  %v6299_v5 = vrot.slane %v6285_v1, 1  ;;  %v6302_v6 = vrot.slane %v6280_v0, 1  ;;  %v6307_v7 = vld [vmem:[%s9543_s0 + $0x10] sm:$0xff] }
   0x3   :  { %v6310_v8 = vrot.slane %v6280_v0, 3  ;;  %v6313_v9 = vrot.slane %v6285_v1, 2  ;;  %v6316_v10 = vrot.slane %v6290_v2, 1  ;;  %v6319_v11 = vrot.slane %v6290_v2, 3  ;;  %v47_v20 = vld [vmem:[%s9545_s2 + $0x18] sm:$0xff]  ;;  %v44_v21 = vld [vmem:[%s9545_s2] sm:$0xff] }
   0x4   :  { %v381_v12 = vsel %vm375_vm0, %v6293_v3, %v6280_v0  ;;  %v401_v13 = vsel %vm375_vm0, %v6299_v5, %v6296_v4  ;;  %v391_v14 = vsel %vm375_vm0, %v6285_v1, %v6302_v6  ;;  %v6331_v15 = vrot.slane %v6307_v7, 2  ;;  %v46_v26 = vld [vmem:[%s9545_s2 + $0x10] sm:$0xff]  ;;  %v49_v27 = vld [vmem:[%s9545_s2 + $0x28] sm:$0xff]  ;;  %v51_v28 = vld [vmem:[%s9545_s2 + $0x38] sm:$0xff] }
   0x5   :  { %v5805_v16 = vpack.i.bf16 %v381_v12, %v401_v13  ;;  %v413_v17 = vsel %vm375_vm0, %v6313_v9, %v6310_v8  ;;  %v386_v18 = vsel %vm375_vm0, %v6307_v7, %v6316_v10  ;;  %v513_v24 = vsel %vm510_vm1, %v6293_v3, %v6280_v0  ;;  %v48_v35 = vld [vmem:[%s9545_s2 + $0x20] sm:$0xff]  ;;  %v50_v36 = vld [vmem:[%s9545_s2 + $0x30] sm:$0xff]  ;;  %v53_v40 = vld [vmem:[%s9545_s2 + $0x48] sm:$0xff] }
   0x6   :  { %v5815_v22 = vpack.i.bf16 %v391_v14, %v413_v17  ;;  %v407_v23 = vsel %vm375_vm0, %v6331_v15, %v6319_v11  ;;  %v527_v25 = vsel %vm510_vm1, %v6299_v5, %v6296_v4  ;;  %v517_v30 = vsel %vm510_vm1, %v6307_v7, %v6316_v10  ;;  %v55_v41 = vld [vmem:[%s9545_s2 + $0x58] sm:$0xff]  ;;  %v52_v50 = vld [vmem:[%s9545_s2 + $0x40] sm:$0xff]  ;;  %v54_v51 = vld [vmem:[%s9545_s2 + $0x50] sm:$0xff] }
   0x7   :  { %5806 = vrot.lane.b32.xlu0 %v5805_v16, %s6214_s13  ;;  %v5810_v29 = vpack.i.bf16 %v386_v18, %v407_v23  ;;  %v531_v31 = vsel %vm510_vm1, %v6331_v15, %v6319_v11  ;;  %v5820_v32 = vpack.i.bf16 %v513_v24, %v527_v25  ;;  %v521_v33 = vsel %vm510_vm1, %v6285_v1, %v6302_v6  ;;  %v57_v52 = vld [vmem:[%s9545_s2 + $0x68] sm:$0xff]  ;;  %v59_v53 = vld [vmem:[%s9545_s2 + $0x78] sm:$0xff]  ;;  %v56_v62 = vld [vmem:[%s9545_s2 + $0x60] sm:$0xff] }
   0x8   :  { %5816 = vrot.lane.b32.xlu1 %v5815_v22, %s6215_s14  ;;  %v6377_v34 = vpack.c.bf16 %v47_v20, %v45_v19  ;;  %v535_v37 = vsel %vm510_vm1, %v6313_v9, %v6310_v8  ;;  %v6388_v38 = vpack.c.bf16 %v46_v26, %v44_v21  ;;  %v6390_v39 = vpack.c.bf16 %v51_v28, %v49_v27  ;;  %v58_v63 = vld [vmem:[%s9545_s2 + $0x70] sm:$0xff]  ;;  %v61_v12 = vld [vmem:[%s9545_s2 + $0x88] sm:$0xff]  ;;  %v63_v13 = vld [vmem:[%s9545_s2 + $0x98] sm:$0xff] }
   0x9   :  { %v5825_v42 = vpack.i.bf16 %v517_v30, %v531_v31  ;;  %v627_v43 = vsel %vm624_vm2, %v6293_v3, %v6280_v0  ;;  %v641_v44 = vsel %vm624_vm2, %v6299_v5, %v6296_v4  ;;  %v631_v45 = vsel %vm624_vm2, %v6307_v7, %v6316_v10  ;;  %v60_v21 = vld [vmem:[%s9545_s2 + $0x80] sm:$0xff]  ;;  %v62_v22 = vld [vmem:[%s9545_s2 + $0x90] sm:$0xff]  ;;  %v65_v25 = vld [vmem:[%s9545_s2 + $0xa8] sm:$0xff] }
   0xa   :  { %9857 = vst [vmem:[#allocation5_spill] sm:$0xff] %v6377_v34  ;;  %3867 = vmatprep.subr.bf16.mxu0 %v6377_v34  ;;  %v645_v46 = vsel %vm624_vm2, %v6331_v15, %v6319_v11  ;;  %v6413_v47 = vpack.c.bf16 %v50_v36, %v48_v35  ;;  %v5830_v48 = vpack.i.bf16 %v521_v33, %v535_v37  ;;  %v67_v26 = vld [vmem:[%s9545_s2 + $0xb8] sm:$0xff]  ;;  %v66_v30 = vld [vmem:[%s9545_s2 + $0xb0] sm:$0xff]  ;;  %v69_v33 = vld [vmem:[%s9545_s2 + $0xc8] sm:$0xff] }
   0xb   :  { %5811 = vrot.lane.b32.xlu0 %v5810_v29, %s6216_s23  ;;  %3869 = vmatpush1.bf16.msra.mxu0 %v6388_v38  ;;  %v6417_v49 = vpack.c.bf16 %v55_v41, %v53_v40  ;;  %v5835_v54 = vpack.i.bf16 %v627_v43, %v641_v44  ;;  %v5840_v55 = vpack.i.bf16 %v631_v45, %v645_v46  ;;  %v64_v29 = vld [vmem:[%s9545_s2 + $0xa0] sm:$0xff]  ;;  %v71_v35 = vld [vmem:[%s9545_s2 + $0xd8] sm:$0xff]  ;;  %v6524_v36 = vld [vmem:[%s9543_s0 + $0x8] sm:$0xff] }
   0xc   :  { %5821 = vrot.lane.b32.xlu1 %v5820_v32, %s6214_s13  ;;  %3871 = vmatprep.subr.bf16.mxu0 %v6390_v39  ;;  %v635_v56 = vsel %vm624_vm2, %v6285_v1, %v6302_v6  ;;  %v649_v57 = vsel %vm624_vm2, %v6313_v9, %v6310_v8  ;;  %v6441_v58 = vpack.c.bf16 %v54_v51, %v52_v50  ;;  %v6536_v41 = vld [vmem:[%s9543_s0 + $0x18] sm:$0xff]  ;;  %v6544_v43 = vld [vmem:[%s9544_s1 + $0x8] sm:$0xff] }
   0xd   :  { %9858 = vst [vmem:[#allocation6_spill] sm:$0xff] %v6417_v49  ;;  %3931 = vmatprep.subr.bf16.mxu1 %v6377_v34  ;;  %v741_v59 = vsel %vm738_vm3, %v6293_v3, %v6280_v0  ;;  %v755_v60 = vsel %vm738_vm3, %v6299_v5, %v6296_v4  ;;  %v6451_v61 = vpack.c.bf16 %v59_v53, %v57_v52  ;;  %9863 = vst [vmem:[#allocation11_spill] sm:$0xff] %v6524_v36  ;;  %v6549_v44 = vld [vmem:[%s9544_s1 + $0x18] sm:$0xff] }
   0xe   :  { %3933 = vmatpush1.bf16.msra.mxu1 %v6388_v38  ;;  %9859 = vst [vmem:[#allocation7_spill] sm:$0xff] %v6441_v58  ;;  %v5845_v14 = vpack.i.bf16 %v635_v56, %v649_v57  ;;  %v5850_v16 = vpack.i.bf16 %v741_v59, %v755_v60  ;;  %v6469_v17 = vpack.c.bf16 %v58_v63, %v56_v62  ;;  %9864 = vst [vmem:[#allocation12_spill] sm:$0xff] %v6536_v41 }
   0xf   :  { %5826 = vrot.lane.b32.xlu0 %v5825_v42, %s6216_s23  ;;  %3873 = vmatpush1.bf16.msra.mxu0 %v6413_v47  ;;  %9860 = vst [vmem:[#allocation8_spill] sm:$0xff] %v6451_v61  ;;  %v745_v18 = vsel %vm738_vm3, %v6307_v7, %v6316_v10  ;;  %v759_v19 = vsel %vm738_vm3, %v6331_v15, %v6319_v11  ;;  %v6539_v42 = vrot.slane %v6524_v36, 3  ;;  %v6556_v46 = vrot.slane %v6536_v41, 2 }
  0x10   :  { %5831 = vrot.lane.b32.xlu1 %v5830_v48, %s6215_s14  ;;  %3875 = vmatprep.subr.bf16.mxu0 %v6417_v49  ;;  %9861 = vst [vmem:[#allocation9_spill] sm:$0xff] %v6469_v17  ;;  %v6479_v20 = vpack.c.bf16 %v63_v13, %v61_v12  ;;  %v749_v23 = vsel %vm738_vm3, %v6285_v1, %v6302_v6  ;;  %v6559_v48 = vrot.slane %v6544_v43, 3 }
  0x11   :  { %3935 = vmatprep.subr.bf16.mxu1 %v6390_v39  ;;  %v763_v24 = vsel %vm738_vm3, %v6313_v9, %v6310_v8  ;;  %v5855_v27 = vpack.i.bf16 %v745_v18, %v759_v19  ;;  %v6503_v28 = vpack.c.bf16 %v62_v22, %v60_v21  ;;  %v6513_v32 = vpack.c.bf16 %v67_v26, %v65_v25 }
  0x12   :  { %3937 = vmatpush1.bf16.msra.mxu1 %v6413_v47  ;;  %9862 = vst [vmem:[#allocation10_spill] sm:$0xff] %v6479_v20  ;;  %v5860_v31 = vpack.i.bf16 %v749_v23, %v763_v24  ;;  %v969_v37 = vsel %vm966_vm4, %v6293_v3, %v6280_v0  ;;  %v983_v40 = vsel %vm966_vm4, %v6299_v5, %v6296_v4  ;;  %9865 = vst [vmem:[#allocation13_spill] sm:$0xff] %v6539_v42 }
  0x13   :  { %5836 = vrot.lane.b32.xlu0 %v5835_v54, %s6214_s13  ;;  %3877 = vmatpush1.bf16.msra.mxu0 %v6441_v58  ;;  %v973_v45 = vsel %vm966_vm4, %v6307_v7, %v6316_v10  ;;  %9866 = vst [vmem:[#allocation14_spill] sm:$0xff] %v6556_v46  ;;  %9867 = vst [vmem:[#allocation15_spill] sm:$0xff] %v6559_v48 }
  0x14   :  { %5841 = vrot.lane.b32.xlu1 %v5840_v55, %s6216_s23  ;;  %3879 = vmatprep.subr.bf16.mxu0 %v6451_v61 }
  0x15   :  { %3939 = vmatprep.subr.bf16.mxu1 %v6417_v49 }
  0x16   :  { %3941 = vmatpush1.bf16.msra.mxu1 %v6441_v58 }
  0x17   :  { %5846 = vrot.lane.b32.xlu0 %v5845_v14, %s6215_s14  ;;  %3881 = vmatpush1.bf16.msra.mxu0 %v6469_v17 }
  0x18   :  { %5851 = vrot.lane.b32.xlu1 %v5850_v16, %s6214_s13  ;;  %3883 = vmatprep.subr.bf16.mxu0 %v6479_v20 }
  0x19   :  { %3943 = vmatprep.subr.bf16.mxu1 %v6451_v61 }
  0x1a   :  { %3945 = vmatpush1.bf16.msra.mxu1 %v6469_v17 }
  0x1b   :  { %15 = vsyncpa [#allocation3], 0  ;;  %5856 = vrot.lane.b32.xlu0 %v5855_v27, %s6216_s23  ;;  %3885 = vmatpush1.bf16.msra.mxu0 %v6503_v28  ;;  %v6563_v50 = vpack.c.bf16 %v66_v30, %v64_v29  ;;  %v6566_v51 = vrot.slane %v6549_v44, 2  ;;  %vm852_vm5 = vcmask 1045509   ;;  %v6570_v52 = vpack.c.bf16 %v71_v35, %v69_v33  ;;  %v68_v53 = vld [vmem:[%s9545_s2 + $0xc0] sm:$0xff]  ;;  %v70_v54 = vld [vmem:[%s9545_s2 + $0xd0] sm:$0xff] }
  0x1c   :  { %5861 = vrot.lane.b32.xlu1 %v5860_v31, %s6215_s14  ;;  %3887 = vmatprep.subr.bf16.mxu0 %v6513_v32  ;;  %v5865_v55 = vpack.i.bf16 %v969_v37, %v983_v40  ;;  %v991_v56 = vsel %vm966_vm4, %v6556_v46, %v6539_v42  ;;  %v73_v57 = vld [vmem:[%s9545_s2 + $0xe8] sm:$0xff]  ;;  %v75_v59 = vld [vmem:[%s9545_s2 + $0xf8] sm:$0xff]  ;;  %v977_v62 = vsel %vm966_vm4, %v6285_v1, %v6302_v6  ;;  %v72_v18 = vld [vmem:[%s9545_s2 + $0xe0] sm:$0xff]  ;;  %vm1088_vm6 = vcmask 1047559   ;;  %s6217_s30 = smov 112  }
  0x1d   :  { %9868 = vst [vmem:[#allocation16_spill] sm:$0xff] %v6566_v51  ;;  %3947 = vmatprep.subr.bf16.mxu1 %v6479_v20  ;;  %v5870_v60 = vpack.i.bf16 %v973_v45, %v991_v56  ;;  %v999_v63 = vsel %vm966_vm4, %v6566_v51, %v6559_v48  ;;  %v855_v12 = vsel %vm852_vm5, %v6293_v3, %v6280_v0  ;;  %v74_v19 = vld [vmem:[%s9545_s2 + $0xf0] sm:$0xff]  ;;  %v79_v21 = vld [vmem:[%s9545_s2 + $0x118] sm:$0xff]  ;;  %v80_v37 = vld [vmem:[%s9545_s2 + $0x120] sm:$0xff]  ;;  %vm417_vm7 = vcmask 261120  }
  0x1e   :  { %3949 = vmatpush1.bf16.msra.mxu1 %v6503_v28  ;;  %v869_v13 = vsel %vm852_vm5, %v6299_v5, %v6296_v4  ;;  %v6602_v14 = vpack.c.bf16 %v70_v54, %v68_v53  ;;  %v6606_v16 = vpack.c.bf16 %v75_v59, %v73_v57  ;;  %v5875_v4 = vpack.i.bf16 %v977_v62, %v999_v63  ;;  %v77_v5 = vld [vmem:[%s9545_s2 + $0x108] sm:$0xff]  ;;  %v83_v30 = vld [vmem:[%s9545_s2 + $0x138] sm:$0xff]  ;;  %v82_v40 = vld [vmem:[%s9545_s2 + $0x130] sm:$0xff] }
  0x1f   :  { %3889 = vmatpush1.bf16.msra.mxu0 %v6563_v50  ;;  %3951 = vmatprep.subr.bf16.mxu1 %v6513_v32  ;;  %v5880_v22 = vpack.i.bf16 %v855_v12, %v869_v13  ;;  %v859_v23 = vsel %vm852_vm5, %v6307_v7, %v6316_v10  ;;  %v873_v24 = vsel %vm852_vm5, %v6331_v15, %v6319_v11  ;;  %v76_v11 = vld [vmem:[%s9545_s2 + $0x100] sm:$0xff]  ;;  %v78_v15 = vld [vmem:[%s9545_s2 + $0x110] sm:$0xff]  ;;  %v85_v45 = vld [vmem:[%s9545_s2 + $0x148] sm:$0xff]  ;;  %vm419_vm8 = vcmask 523264  }
  0x20   :  { %3891 = vmatprep.subr.bf16.mxu0 %v6570_v52  ;;  %5866 = vrot.lane.b32.xlu0 %v5865_v55, %s6214_s13  ;;  %v863_v25 = vsel %vm852_vm5, %v6285_v1, %v6302_v6  ;;  %v877_v26 = vsel %vm852_vm5, %v6313_v9, %v6310_v8  ;;  %v6636_v27 = vpack.c.bf16 %v74_v19, %v72_v18  ;;  %v81_v9 = vld [vmem:[%s9545_s2 + $0x128] sm:$0xff]  ;;  %v87_v53 = vld [vmem:[%s9545_s2 + $0x158] sm:$0xff]  ;;  %v84_v56 = vld [vmem:[%s9545_s2 + $0x140] sm:$0xff]  ;;  %vm421_vm9 = vcmask 785408  }
  0x21   :  { %5871 = vrot.lane.b32.xlu1 %v5870_v60, %s6216_s23  ;;  %v6640_v29 = vpack.c.bf16 %v79_v21, %v77_v5  ;;  %v5885_v8 = vpack.i.bf16 %v859_v23, %v873_v24  ;;  %v5890_v31 = vpack.i.bf16 %v863_v25, %v877_v26  ;;  %v6658_v33 = vpack.c.bf16 %v78_v15, %v76_v11  ;;  %v86_v57 = vld [vmem:[%s9545_s2 + $0x150] sm:$0xff]  ;;  %v89_v59 = vld [vmem:[%s9545_s2 + $0x168] sm:$0xff]  ;;  %v91_v60 = vld [vmem:[%s9545_s2 + $0x178] sm:$0xff] }
  0x22   :  { %3953 = vmatpush1.bf16.msra.mxu1 %v6563_v50  ;;  %v6662_v35 = vpack.c.bf16 %v83_v30, %v81_v9  ;;  %v6680_v54 = vpack.c.bf16 %v82_v40, %v80_v37  ;;  %v6684_v55 = vpack.c.bf16 %v87_v53, %v85_v45  ;;  %v6700_v62 = vpack.c.bf16 %v86_v57, %v84_v56  ;;  %v88_v12 = vld [vmem:[%s9545_s2 + $0x160] sm:$0xff]  ;;  %v90_v13 = vld [vmem:[%s9545_s2 + $0x170] sm:$0xff]  ;;  %v93_v18 = vld [vmem:[%s9545_s2 + $0x188] sm:$0xff] }
  0x23   :  { %3893 = vmatpush1.bf16.msra.mxu0 %v6602_v14  ;;  %3955 = vmatprep.subr.bf16.mxu1 %v6570_v52  ;;  %v6704_v63 = vpack.c.bf16 %v91_v60, %v89_v59  ;;  %v95_v19 = vld [vmem:[%s9545_s2 + $0x198] sm:$0xff]  ;;  %v92_v21 = vld [vmem:[%s9545_s2 + $0x180] sm:$0xff]  ;;  %v97_v23 = vld [vmem:[%s9545_s2 + $0x1a8] sm:$0xff]  ;;  %v6759_v30 = vrot.slane %v6544_v43, 2  ;;  %v5900_v60 = vpack.i.bf16 %v6293_v3, %v6280_v0  ;;  %vm1264_vm10 = vcmask 1040384  }
  0x24   :  { %3895 = vmatprep.subr.bf16.mxu0 %v6606_v16  ;;  %5876 = vrot.lane.b32.xlu0 %v5875_v4, %s6215_s14  ;;  %v6720_v4 = vpack.c.bf16 %v90_v13, %v88_v12  ;;  %v6724_v5 = vpack.c.bf16 %v95_v19, %v93_v18  ;;  %v99_v24 = vld [vmem:[%s9545_s2 + $0x1b8] sm:$0xff]  ;;  %v96_v11 = vld [vmem:[%s9545_s2 + $0x1a0] sm:$0xff]  ;;  %v98_v15 = vld [vmem:[%s9545_s2 + $0x1b0] sm:$0xff]  ;;  %v5905_v13 = vpack.i.bf16 %v6556_v46, %v6539_v42  ;;  %vm1915_vm11 = vcmask 916480  }
  0x25   :  { %5881 = vrot.lane.b32.xlu1 %v5880_v22, %s6214_s13  ;;  %9869 = vst [vmem:[#allocation17_spill] sm:$0xff] %v6704_v63  ;;  %v94_v22 = vld [vmem:[%s9545_s2 + $0x190] sm:$0xff]  ;;  %v6744_v26 = vpack.c.bf16 %v99_v24, %v97_v23  ;;  %v103_v9 = vld [vmem:[%s9545_s2 + $0x1d8] sm:$0xff]  ;;  %v6766_v37 = vpack.c.bf16 %v98_v15, %v96_v11  ;;  %v100_v53 = vld [vmem:[%s9545_s2 + $0x1c0] sm:$0xff]  ;;  %v5915_v11 = vpack.i.bf16 %v6566_v51, %v6559_v48  ;;  %v6822_v15 = vrot.slane %v6544_v43, 1 }
  0x26   :  { %3957 = vmatpush1.bf16.msra.mxu1 %v6602_v14  ;;  %v6740_v25 = vpack.c.bf16 %v94_v22, %v92_v21  ;;  %v102_v56 = vld [vmem:[%s9545_s2 + $0x1d0] sm:$0xff]  ;;  %v105_v57 = vld [vmem:[%s9545_s2 + $0x1e8] sm:$0xff]  ;;  %v107_v59 = vld [vmem:[%s9545_s2 + $0x1f8] sm:$0xff]  ;;  %v6807_v22 = vrot.slane %v6524_v36, 1  ;;  %vm6219_vm12 = vmmov 0  }
  0x27   :  { %3897 = vmatpush1.bf16.msra.mxu0 %v6636_v27  ;;  %3959 = vmatprep.subr.bf16.mxu1 %v6606_v16  ;;  %v6791_v12 = vpack.c.bf16 %v102_v56, %v100_v53  ;;  %v6797_v18 = vpack.c.bf16 %v107_v59, %v105_v57  ;;  %v104_v19 = vld [vmem:[%s9545_s2 + $0x1e0] sm:$0xff]  ;;  %v106_v21 = vld [vmem:[%s9545_s2 + $0x1f0] sm:$0xff]  ;;  %9874 = vst [vmem:[#allocation22_spill] sm:$0xff] %v6822_v15 }
  0x28   :  { %3899 = vmatprep.subr.bf16.mxu0 %v6640_v29  ;;  %5886 = vrot.lane.b32.xlu0 %v5885_v8, %s6216_s23  ;;  %v101_v8 = vld [vmem:[%s9545_s2 + $0x1c8] sm:$0xff]  ;;  %9872 = vst [vmem:[#allocation20_spill] sm:$0xff] %v6807_v22  ;;  %v5910_v23 = vpack.i.bf16 %v6536_v41, %v6807_v22  ;;  %v6814_v24 = vpack.c.bf16 %v106_v21, %v104_v19 }
  0x29   :  { %5891 = vrot.lane.b32.xlu1 %v5890_v31, %s6215_s14  ;;  %v6762_v31 = vrot.slane %v6549_v44, 1  ;;  %v6772_v45 = vpack.c.bf16 %v103_v9, %v101_v8  ;;  %9870 = vst [vmem:[#allocation18_spill] sm:$0xff] %v6791_v12  ;;  %9871 = vst [vmem:[#allocation19_spill] sm:$0xff] %v6797_v18  ;;  %v5920_v8 = vpack.i.bf16 %v6549_v44, %v6822_v15 }
  0x2a   :  { %3961 = vmatpush1.bf16.msra.mxu1 %v6636_v27  ;;  %9873 = vst [vmem:[#allocation21_spill] sm:$0xff] %v6814_v24  ;;  %v1091_v9 = vsel %vm1088_vm6, %v6293_v3, %v6280_v0  ;;  %v1095_v56 = vsel %vm1088_vm6, %v6307_v7, %v6316_v10  ;;  %v1113_v0 = vsel %vm1088_vm6, %v6556_v46, %v6539_v42  ;;  %v6856_v10 = vrot.slane %v6307_v7, 7 }
  0x2b   :  { %3901 = vmatpush1.bf16.msra.mxu0 %v6658_v33  ;;  %3963 = vmatprep.subr.bf16.mxu1 %v6640_v29  ;;  %v5895_v40 = vpack.i.bf16 %v6762_v31, %v6759_v30  ;;  %v1099_v3 = vsel %vm1088_vm6, %v6285_v1, %v6302_v6  ;;  %v1117_v57 = vsel %vm1088_vm6, %v6566_v51, %v6559_v48  ;;  %v6862_v1 = vrot.slane %v6307_v7, 1 }
  0x2c   :  { %3903 = vmatprep.subr.bf16.mxu0 %v6662_v35  ;;  %v5930_v59 = vpack.i.bf16 %v1095_v56, %v1113_v0  ;;  %v511_v7 = vsel %vm510_vm1, %v6856_v10, %v6290_v2 }
  0x2d   :  { %5896 = vrot.lane.b32.xlu0 %v5895_v40, %s6214_s13  ;;  %5901 = vrot.lane.b32.xlu1 %v5900_v60, %s6214_s13  ;;  %v1109_v40 = vsel %vm1088_vm6, %v6762_v31, %v6759_v30  ;;  %v5935_v60 = vpack.i.bf16 %v1099_v3, %v1117_v57 }
  0x2e   :  { %3965 = vmatpush1.bf16.msra.mxu1 %v6658_v33  ;;  %v5925_v53 = vpack.i.bf16 %v1091_v9, %v1109_v40 }
  0x2f   :  { %3905 = vmatpush1.bf16.msra.mxu0 %v6680_v54  ;;  %3967 = vmatprep.subr.bf16.mxu1 %v6662_v35 }
  0x30   :  { %3907 = vmatprep.subr.bf16.mxu0 %v6684_v55 }
  0x31   :  { %5906 = vrot.lane.b32.xlu0 %v5905_v13, %s6216_s23  ;;  %5911 = vrot.lane.b32.xlu1 %v5910_v23, %s6216_s23  ;;  %v6859_v13 = vrot.slane %v6290_v2, 2 }
  0x32   :  { %3969 = vmatpush1.bf16.msra.mxu1 %v6680_v54 }
  0x33   :  { %3909 = vmatpush1.bf16.msra.mxu0 %v6700_v62  ;;  %3971 = vmatprep.subr.bf16.mxu1 %v6684_v55  ;;  %v525_v57 = vsel %vm510_vm1, %v6862_v1, %v6859_v13 }
  0x34   :  { %3911 = vmatprep.subr.bf16.mxu0 %v6704_v63 }
  0x35   :  { %5916 = vrot.lane.b32.xlu0 %v5915_v11, %s6215_s14  ;;  %5921 = vrot.lane.b32.xlu1 %v5920_v8, %s6215_s14  ;;  %v397_v11 = vsel %vm375_vm0, %v6862_v1, %v6859_v13  ;;  %v376_v8 = vsel %vm375_vm0, %v6856_v10, %v6290_v2 }
  0x36   :  { %3973 = vmatpush1.bf16.msra.mxu1 %v6700_v62 }
  0x37   :  { %3913 = vmatpush1.bf16.msra.mxu0 %v6720_v4  ;;  %3975 = vmatprep.subr.bf16.mxu1 %v6704_v63 }
  0x38   :  { %3915 = vmatprep.subr.bf16.mxu0 %v6724_v5 }
  0x39   :  { %5926 = vrot.lane.b32.xlu0 %v5925_v53, %s6214_s13  ;;  %5931 = vrot.lane.b32.xlu1 %v5930_v59, %s6216_s23 }
  0x3a   :  { %3977 = vmatpush1.bf16.msra.mxu1 %v6720_v4 }
  0x3b   :  { %3917 = vmatpush1.bf16.msra.mxu0 %v6740_v25  ;;  %3979 = vmatprep.subr.bf16.mxu1 %v6724_v5 }
  0x3c   :  { %3919 = vmatprep.subr.bf16.mxu0 %v6744_v26 }
  0x3d   :  { %5936 = vrot.lane.b32.xlu0 %v5935_v60, %s6215_s14 }
  0x3e   :  { %3981 = vmatpush1.bf16.msra.mxu1 %v6740_v25 }
  0x3f   :  { %3921 = vmatpush1.bf16.msra.mxu0 %v6766_v37  ;;  %3983 = vmatprep.subr.bf16.mxu1 %v6744_v26 }
  0x40   :  { %3923 = vmatprep.subr.bf16.mxu0 %v6772_v45 }
  0x42   :  { %3985 = vmatpush1.bf16.msra.mxu1 %v6766_v37 }
  0x43   :  { %3925 = vmatpush1.bf16.msra.mxu0 %v6791_v12  ;;  %3987 = vmatprep.subr.bf16.mxu1 %v6772_v45 }
  0x44   :  { %3927 = vmatprep.subr.bf16.mxu0 %v6797_v18 }
  0x46   :  { %3989 = vmatpush1.bf16.msra.mxu1 %v6791_v12 }
  0x47   :  { %3929 = vmatpush1.bf16.msra.mxu0 %v6814_v24  ;;  %3991 = vmatprep.subr.bf16.mxu1 %v6797_v18 }
  0x48   :  { %3995 = vmatprep.subr.bf16.mxu0 %v6377_v34 }
  0x4a   :  { %3993 = vmatpush1.bf16.msra.mxu1 %v6814_v24 }
  0x4b   :  { %4059 = vmatprep.subr.bf16.mxu1 %v6377_v34 }
  0x79   :  { %v5807_v6 = vpop.permute.xlu0 %5806 }
  0x7a   :  { %v5817_v19 = vpop.permute.xlu1 %5816  ;;  %v5809_v21 = vunpack.i.h.bf16 %v5807_v6  ;;  %v5808_v23 = vunpack.i.l.bf16 %v5807_v6 }
  0x7b   :  { %v5819_v9 = vunpack.i.h.bf16 %v5817_v19  ;;  %v5818_v40 = vunpack.i.l.bf16 %v5817_v19 }
  0x7c   :  { %v423_v6 = vsel %vm417_vm7, %v397_v11, %v5808_v23  ;;  %v418_v19 = vsel %vm417_vm7, %v376_v8, %v5809_v21 }
  0x7d   :  { %v5812_v53 = vpop.permute.xlu0 %5811 }
  0x7e   :  { %v5814_v56 = vunpack.i.h.bf16 %v5812_v53  ;;  %v5813_v0 = vunpack.i.l.bf16 %v5812_v53  ;;  %v5822_v3 = vpop.permute.xlu1 %5821 }
  0x7f   :  { %v5824_v59 = vunpack.i.h.bf16 %v5822_v3  ;;  %v5823_v60 = vunpack.i.l.bf16 %v5822_v3 }
  0x80   :  { %v424_v36 = vsel %vm419_vm8, %v423_v6, %v5813_v0  ;;  %v420_v51 = vsel %vm419_vm8, %v418_v19, %v5814_v56 }
  0x81   :  { %v539_v48 = vsel %vm417_vm7, %v511_v7, %v5824_v59  ;;  %v5827_v15 = vpop.permute.xlu0 %5826  ;;  %v425_v53 = vsel %vm421_vm9, %v424_v36, %v5818_v40  ;;  %v422_v46 = vsel %vm421_vm9, %v420_v51, %v5819_v9  ;;  %v542_v42 = vsel %vm417_vm7, %v525_v57, %v5823_v60 }
  0x82   :  { %v5829_v41 = vunpack.i.h.bf16 %v5827_v15  ;;  %v5828_v22 = vunpack.i.l.bf16 %v5827_v15  ;;  %v5832_v3 = vpop.permute.xlu1 %5831  ;;  %501 = vmatprep.mubr.f32.mxu0 %v425_v53  ;;  %v639_v15 = vsel %vm624_vm2, %v6862_v1, %v6859_v13  ;;  %v753_v57 = vsel %vm738_vm3, %v6862_v1, %v6859_v13 }
  0x83   :  { %v5834_v23 = vunpack.i.h.bf16 %v5832_v3  ;;  %v5833_v11 = vunpack.i.l.bf16 %v5832_v3  ;;  %502 = vmatmul.mubr.f32.vlgmr.msra.gmra.mrb[0].mxu0 %v422_v46 }
  0x84   :  { %v540_v21 = vsel %vm419_vm8, %v539_v48, %v5829_v41  ;;  %3997 = vmatpush1.bf16.msra.mxu0 %v6388_v38  ;;  %v543_v8 = vsel %vm419_vm8, %v542_v42, %v5828_v22 }
  0x85   :  { %3999 = vmatprep.subr.bf16.mxu0 %v6390_v39  ;;  %v544_v36 = vsel %vm421_vm9, %v543_v8, %v5833_v11  ;;  %v541_v51 = vsel %vm421_vm9, %v540_v21, %v5834_v23  ;;  %v6893_v9 = vpop.permute.xlu0 %5836 }
  0x86   :  { %v548_v40 = vrot.slane %v544_v36, 1  ;;  %v547_v46 = vrot.slane %v541_v51, 1  ;;  %v5838_v41 = vunpack.i.l.bf16 %v6893_v9  ;;  %v6896_v48 = vpop.permute.xlu1 %5841 }
  0x87   :  { %v5843_v42 = vunpack.i.l.bf16 %v6896_v48 }
  0x88   :  { %4001 = vmatpush1.bf16.msra.mxu0 %v6413_v47  ;;  %615 = vmatprep.mubr.f32.mxu1 %v548_v40  ;;  %v656_v22 = vsel %vm417_vm7, %v639_v15, %v5838_v41  ;;  %v967_v15 = vsel %vm966_vm4, %v6856_v10, %v6290_v2 }
  0x89   :  { %616 = vmatmul.mubr.f32.vlgmr.msra.gmra.mrb[0].mxu1 %v547_v46  ;;  %4003 = vmatprep.subr.bf16.mxu0 %v6417_v49  ;;  %v657_v7 = vsel %vm419_vm8, %v656_v22, %v5843_v42  ;;  %v6903_v56 = vpop.permute.xlu0 %5846 }
  0x8a   :  { %4061 = vmatpush1.bf16.msra.mxu1 %v6388_v38  ;;  %v5848_v0 = vunpack.i.l.bf16 %v6903_v56  ;;  %v6910_v59 = vpop.permute.xlu1 %5851 }
  0x8b   :  { %4063 = vmatprep.subr.bf16.mxu1 %v6390_v39  ;;  %v5853_v60 = vunpack.i.l.bf16 %v6910_v59 }
  0x8c   :  { %4005 = vmatpush1.bf16.msra.mxu0 %v6441_v58  ;;  %v658_v6 = vsel %vm421_vm9, %v657_v7, %v5848_v0 }
  0x8d   :  { %4007 = vmatprep.subr.bf16.mxu0 %v6451_v61  ;;  %v770_v19 = vsel %vm417_vm7, %v753_v57, %v5853_v60  ;;  %v662_v53 = vrot.slane %v658_v6, 2  ;;  %v6918_v3 = vpop.permute.xlu0 %5856 }
  0x8e   :  { %4065 = vmatpush1.bf16.msra.mxu1 %v6413_v47  ;;  %v5858_v23 = vunpack.i.l.bf16 %v6918_v3  ;;  %v6922_v11 = vpop.permute.xlu1 %5861 }
  0x8f   :  { %4067 = vmatprep.subr.bf16.mxu1 %v6417_v49  ;;  %729 = vmatprep.mubr.f32.mxu0 %v662_v53  ;;  %v5863_v21 = vunpack.i.l.bf16 %v6922_v11 }
  0x90   :  { %4009 = vmatpush1.bf16.msra.mxu0 %v6469_v17  ;;  %v771_v8 = vsel %vm419_vm8, %v770_v19, %v5858_v23 }
  0x91   :  { %4011 = vmatprep.subr.bf16.mxu0 %v6479_v20  ;;  %v772_v36 = vsel %vm421_vm9, %v771_v8, %v5863_v21 }
  0x92   :  { %4069 = vmatpush1.bf16.msra.mxu1 %v6441_v58  ;;  %v776_v51 = vrot.slane %v772_v36, 3  ;;  %v6934_v40 = vpop.permute.xlu0 %5866 }
  0x93   :  { %4071 = vmatprep.subr.bf16.mxu1 %v6451_v61  ;;  %v5869_v46 = vunpack.i.h.bf16 %v6934_v40  ;;  %v6938_v41 = vpop.permute.xlu1 %5871 }
  0x94   :  { %4013 = vmatpush1.bf16.msra.mxu0 %v6503_v28  ;;  %843 = vmatprep.mubr.f32.mxu1 %v776_v51  ;;  %v5874_v42 = vunpack.i.h.bf16 %v6938_v41  ;;  %v5839_v51 = vunpack.i.h.bf16 %v6893_v9 }
  0x95   :  { %4015 = vmatprep.subr.bf16.mxu0 %v6513_v32  ;;  %v1003_v22 = vsel %vm417_vm7, %v967_v15, %v5869_v46  ;;  %v867_v15 = vsel %vm852_vm5, %v6862_v1, %v6859_v13  ;;  %v625_v46 = vsel %vm624_vm2, %v6856_v10, %v6290_v2 }
  0x96   :  { %4073 = vmatpush1.bf16.msra.mxu1 %v6469_v17  ;;  %v1004_v7 = vsel %vm419_vm8, %v1003_v22, %v5874_v42  ;;  %v6946_v0 = vpop.permute.xlu0 %5876 }
  0x97   :  { %4075 = vmatprep.subr.bf16.mxu1 %v6479_v20  ;;  %v5879_v57 = vunpack.i.h.bf16 %v6946_v0  ;;  %v6970_v6 = vpop.permute.xlu1 %5881 }
  0x98   :  { %4017 = vmatpush1.bf16.msra.mxu0 %v6563_v50  ;;  %9876 = vst [vmem:[#allocation24_spill] sm:$0xff] %v6970_v6  ;;  %v5883_v23 = vunpack.i.l.bf16 %v6970_v6 }
  0x99   :  { %4019 = vmatprep.subr.bf16.mxu0 %v6570_v52  ;;  %v6953_v60 = vsel %vm421_vm9, %v1004_v7, %v5879_v57  ;;  %v5844_v57 = vunpack.i.h.bf16 %v6896_v48  ;;  %v5868_v48 = vunpack.i.l.bf16 %v6934_v40  ;;  %v5859_v40 = vunpack.i.h.bf16 %v6918_v3 }
  0x9a   :  { %9875 = vst [vmem:[#allocation23_spill] sm:$0xff] %v6953_v60  ;;  %4077 = vmatpush1.bf16.msra.mxu1 %v6503_v28  ;;  %v6986_v21 = vpop.permute.xlu0 %5886 }
  0x9b   :  { %4079 = vmatprep.subr.bf16.mxu1 %v6513_v32  ;;  %v6978_v19 = vpop.permute.xlu1 %5891  ;;  %9877 = vst [vmem:[#allocation25_spill] sm:$0xff] %v6986_v21  ;;  %v5888_v42 = vunpack.i.l.bf16 %v6986_v21  ;;  %v5854_v21 = vunpack.i.h.bf16 %v6910_v59 }
  0x9c   :  { %4021 = vmatpush1.bf16.msra.mxu0 %v6602_v14 }
  0x9d   :  { %4023 = vmatprep.subr.bf16.mxu0 %v6606_v16 }
  0x9e   :  { %4081 = vmatpush1.bf16.msra.mxu1 %v6563_v50 }
  0x9f   :  { %4083 = vmatprep.subr.bf16.mxu1 %v6570_v52  ;;  %v5902_v53 = vpop.permute.xlu1 %5901 }
  0xa0   :  { %4025 = vmatpush1.bf16.msra.mxu0 %v6636_v27  ;;  %v5904_v8 = vunpack.i.h.bf16 %v5902_v53  ;;  %v5903_v36 = vunpack.i.l.bf16 %v5902_v53  ;;  %v884_v53 = vsel %vm417_vm7, %v867_v15, %v5883_v23 }
  0xa1   :  { %4027 = vmatprep.subr.bf16.mxu0 %v6640_v29  ;;  %v885_v59 = vsel %vm419_vm8, %v884_v53, %v5888_v42 }
  0xa2   :  { %4085 = vmatpush1.bf16.msra.mxu1 %v6602_v14  ;;  %v1249_v22 = vsel %vm417_vm7, %v6856_v10, %v5904_v8  ;;  %v1248_v9 = vsel %vm417_vm7, %v6290_v2, %v5903_v36  ;;  %v739_v8 = vsel %vm738_vm3, %v6856_v10, %v6290_v2  ;;  %v5893_v36 = vunpack.i.l.bf16 %v6978_v19 }
  0xa3   :  { %4087 = vmatprep.subr.bf16.mxu1 %v6606_v16  ;;  %v5912_v7 = vpop.permute.xlu1 %5911  ;;  %v981_v2 = vsel %vm966_vm4, %v6862_v1, %v6859_v13 }
  0xa4   :  { %4029 = vmatpush1.bf16.msra.mxu0 %v6658_v33  ;;  %v5914_v60 = vunpack.i.h.bf16 %v5912_v7  ;;  %v5913_v6 = vunpack.i.l.bf16 %v5912_v7  ;;  %v1006_v13 = vsel %vm417_vm7, %v981_v2, %v5868_v48  ;;  %v886_v1 = vsel %vm421_vm9, %v885_v59, %v5893_v36 }
  0xa5   :  { %4031 = vmatprep.subr.bf16.mxu0 %v6662_v35  ;;  %v890_v53 = vrot.slane %v886_v1, 4  ;;  %v1471_v2 = vsel %vm510_vm1, %v6762_v31, %v6759_v30  ;;  %v9884_v1 = vld [vmem:[#allocation16_spill] sm:$0xff] }
  0xa6   :  { %4089 = vmatpush1.bf16.msra.mxu1 %v6636_v27  ;;  %v1250_v23 = vsel %vm419_vm8, %v1248_v9, %v5913_v6  ;;  %v1251_v15 = vsel %vm419_vm8, %v1249_v22, %v5914_v60  ;;  %v5873_v60 = vunpack.i.l.bf16 %v6938_v41  ;;  %v5878_v22 = vunpack.i.l.bf16 %v6946_v0 }
  0xa7   :  { %4091 = vmatprep.subr.bf16.mxu1 %v6640_v29 }
  0xa8   :  { %4033 = vmatpush1.bf16.msra.mxu0 %v6680_v54 }
  0xa9   :  { %4035 = vmatprep.subr.bf16.mxu0 %v6684_v55 }
  0xaa   :  { %4093 = vmatpush1.bf16.msra.mxu1 %v6658_v33 }
  0xab   :  { %4095 = vmatprep.subr.bf16.mxu1 %v6662_v35 }
  0xac   :  { %4037 = vmatpush1.bf16.msra.mxu0 %v6700_v62 }
  0xad   :  { %4039 = vmatprep.subr.bf16.mxu0 %v6704_v63 }
  0xae   :  { %4097 = vmatpush1.bf16.msra.mxu1 %v6680_v54 }
  0xaf   :  { %4099 = vmatprep.subr.bf16.mxu1 %v6684_v55 }
  0xb0   :  { %4041 = vmatpush1.bf16.msra.mxu0 %v6720_v4 }
  0xb1   :  { %4043 = vmatprep.subr.bf16.mxu0 %v6724_v5 }
  0xb2   :  { %4101 = vmatpush1.bf16.msra.mxu1 %v6700_v62 }
  0xb3   :  { %4103 = vmatprep.subr.bf16.mxu1 %v6704_v63  ;;  %v653_v63 = vsel %vm417_vm7, %v625_v46, %v5839_v51  ;;  %v5849_v51 = vunpack.i.h.bf16 %v6903_v56  ;;  %v5922_v46 = vpop.permute.xlu1 %5921  ;;  %v767_v56 = vsel %vm417_vm7, %v739_v8, %v5854_v21  ;;  %v5864_v21 = vunpack.i.h.bf16 %v6922_v11 }
  0xb4   :  { %4045 = vmatpush1.bf16.msra.mxu0 %v6740_v25  ;;  %v654_v7 = vsel %vm419_vm8, %v653_v63, %v5844_v57  ;;  %v5924_v6 = vunpack.i.h.bf16 %v5922_v46  ;;  %v5923_v9 = vunpack.i.l.bf16 %v5922_v46  ;;  %v768_v41 = vsel %vm419_vm8, %v767_v56, %v5859_v40  ;;  %v9878_v46 = vld [vmem:[#allocation20_spill] sm:$0xff] }
  0xb5   :  { %4047 = vmatprep.subr.bf16.mxu0 %v6744_v26  ;;  %v655_v3 = vsel %vm421_vm9, %v654_v7, %v5849_v51  ;;  %v1007_v57 = vsel %vm419_vm8, %v1006_v13, %v5873_v60  ;;  %v769_v48 = vsel %vm421_vm9, %v768_v41, %v5864_v21  ;;  %v9879_v7 = vld [vmem:[#allocation12_spill] sm:$0xff]  ;;  %v9882_v60 = vld [vmem:[#allocation22_spill] sm:$0xff]  ;;  %v9883_v13 = vld [vmem:[#allocation15_spill] sm:$0xff] }
  0xb6   :  { %4105 = vmatpush1.bf16.msra.mxu1 %v6720_v4  ;;  %v7033_v63 = vsel %vm421_vm9, %v1250_v23, %v5923_v9  ;;  %v7036_v42 = vsel %vm421_vm9, %v1251_v15, %v5924_v6  ;;  %v661_v8 = vrot.slane %v655_v3, 2  ;;  %v1008_v11 = vsel %vm421_vm9, %v1007_v57, %v5878_v22  ;;  %v7081_v15 = vpop.permute.xlu0 %5896  ;;  %v9880_v6 = vld [vmem:[#allocation13_spill] sm:$0xff]  ;;  %v9881_v9 = vld [vmem:[#allocation14_spill] sm:$0xff] }
  0xb7   :  { %4107 = vmatprep.subr.bf16.mxu1 %v6724_v5  ;;  %v775_v0 = vrot.slane %v769_v48, 3  ;;  %v1012_v36 = vrot.slane %v1008_v11, 5  ;;  %v7077_v23 = vrot.slane %v6549_v44, 7  ;;  %v1461_v40 = vsel %vm510_vm1, %v9879_v7, %v9878_v46  ;;  %v9885_v57 = vld [vmem:[#allocation17_spill] sm:$0xff] }
  0xb8   :  { %4049 = vmatpush1.bf16.msra.mxu0 %v6766_v37  ;;  %v1475_v56 = vsel %vm510_vm1, %v9881_v9, %v9880_v6  ;;  %v1479_v3 = vsel %vm510_vm1, %v9884_v1, %v9883_v13  ;;  %v7130_v48 = vrot.slane %v9879_v7, 1  ;;  %v7147_v7 = vpop.permute.xlu1 %5931 }
  0xb9   :  { %4051 = vmatprep.subr.bf16.mxu0 %v6772_v45  ;;  %v1457_v51 = vsel %vm510_vm1, %v7077_v23, %v6544_v43  ;;  %v1465_v43 = vsel %vm510_vm1, %v6549_v44, %v9882_v60  ;;  %v5945_v21 = vpack.i.bf16 %v1461_v40, %v1475_v56  ;;  %v9890_v56 = vld [vmem:[#allocation25_spill] sm:$0xff] }
  0xba   :  { %4109 = vmatpush1.bf16.msra.mxu1 %v6740_v25  ;;  %v5940_v59 = vpack.i.bf16 %v1457_v51, %v1471_v2  ;;  %v5950_v41 = vpack.i.bf16 %v1465_v43, %v1479_v3  ;;  %v7109_v22 = vpop.permute.xlu0 %5906  ;;  %9888 = vst [vmem:[#allocation12_spill] sm:$0xff] %v7130_v48  ;;  %v7140_v51 = vld [vmem:[%s9543_s0] sm:$0xff]  ;;  %v5889_v43 = vunpack.i.h.bf16 %v9890_v56 }
  0xbb   :  { %4111 = vmatprep.subr.bf16.mxu1 %v6744_v26  ;;  %5946 = vrot.lane.b32.xlu0 %v5945_v21, %s6216_s23  ;;  %v853_v2 = vsel %vm852_vm5, %v6856_v10, %v7140_v51  ;;  %v5933_v21 = vunpack.i.l.bf16 %v7147_v7 }
  0xbc   :  { %4053 = vmatpush1.bf16.msra.mxu0 %v6791_v12  ;;  %5941 = vrot.lane.b32.xlu1 %v5940_v59, %s6214_s13 }
  0xbd   :  { %4055 = vmatprep.subr.bf16.mxu0 %v6797_v18 }
  0xbe   :  { %4113 = vmatpush1.bf16.msra.mxu1 %v6766_v37  ;;  %v7118_v44 = vpop.permute.xlu0 %5916 }
  0xbf   :  { %4115 = vmatprep.subr.bf16.mxu1 %v6772_v45 }
  0xc0   :  { %4057 = vmatpush1.bf16.msra.mxu0 %v6814_v24  ;;  %5951 = vrot.lane.b32.xlu1 %v5950_v41, %s6215_s14 }
  0xc1   :  { %4123 = vmatprep.subr.bf16.mxu0 %v6377_v34 }
  0xc2   :  { %4117 = vmatpush1.bf16.msra.mxu1 %v6791_v12  ;;  %v7132_v11 = vpop.permute.xlu0 %5926 }
  0xc3   :  { %730 = vmatmul.mubr.f32.vlgmr.msra.gmra.mrb[2].mxu0 %v661_v8  ;;  %4119 = vmatprep.subr.bf16.mxu1 %v6797_v18  ;;  %v5928_v59 = vunpack.i.l.bf16 %v7132_v11 }
  0xc4   :  { %4125 = vmatpush1.bf16.msra.mxu0 %v6388_v38  ;;  %957 = vmatprep.mubr.f32.mxu0 %v890_v53  ;;  %v9886_v53 = vld [vmem:[#allocation11_spill] sm:$0xff] }
  0xc5   :  { %4127 = vmatprep.subr.bf16.mxu0 %v6390_v39  ;;  %v7127_v8 = vrot.slane %v9886_v53, 2 }
  0xc6   :  { %4121 = vmatpush1.bf16.msra.mxu1 %v6814_v24  ;;  %v7158_v41 = vpop.permute.xlu0 %5936 }
  0xc7   :  { %4187 = vmatprep.subr.bf16.mxu1 %v6377_v34  ;;  %9887 = vst [vmem:[#allocation20_spill] sm:$0xff] %v7127_v8  ;;  %v1105_v40 = vsel %vm1088_vm6, %v7130_v48, %v7127_v8 }
  0xc8   :  { %4129 = vmatpush1.bf16.msra.mxu0 %v6413_v47  ;;  %v1124_v53 = vsel %vm417_vm7, %v1105_v40, %v5928_v59 }
  0xc9   :  { %844 = vmatmul.mubr.f32.vlgmr.msra.gmra.mrb[2].mxu1 %v775_v0  ;;  %4131 = vmatprep.subr.bf16.mxu0 %v6417_v49  ;;  %v9889_v0 = vld [vmem:[#allocation24_spill] sm:$0xff] }
  0xca   :  { %4189 = vmatpush1.bf16.msra.mxu1 %v6388_v38  ;;  %1079 = vmatprep.mubr.f32.mxu1 %v1012_v36  ;;  %v5884_v36 = vunpack.i.h.bf16 %v9889_v0  ;;  %v5894_v0 = vunpack.i.h.bf16 %v6978_v19 }
  0xcb   :  { %4191 = vmatprep.subr.bf16.mxu1 %v6390_v39 }
  0xcc   :  { %4133 = vmatpush1.bf16.msra.mxu0 %v6441_v58  ;;  %v881_v3 = vsel %vm417_vm7, %v853_v2, %v5884_v36  ;;  %v5938_v36 = vunpack.i.l.bf16 %v7158_v41  ;;  %v1125_v2 = vsel %vm419_vm8, %v1124_v53, %v5933_v21  ;;  %v5899_v53 = vunpack.i.h.bf16 %v7081_v15 }
  0xcd   :  { %4135 = vmatprep.subr.bf16.mxu0 %v6451_v61  ;;  %v882_v56 = vsel %vm419_vm8, %v881_v3, %v5889_v43  ;;  %v9891_v3 = vld [vmem:[#allocation23_spill] sm:$0xff] }
  0xce   :  { %4193 = vmatpush1.bf16.msra.mxu1 %v6413_v47  ;;  %v883_v59 = vsel %vm421_vm9, %v882_v56, %v5894_v0  ;;  %v1126_v19 = vsel %vm421_vm9, %v1125_v2, %v5938_v36  ;;  %v1011_v21 = vrot.slane %v9891_v3, 5  ;;  %v5898_v0 = vunpack.i.l.bf16 %v7081_v15 }
  0xcf   :  { %4195 = vmatprep.subr.bf16.mxu1 %v6417_v49  ;;  %v889_v40 = vrot.slane %v883_v59, 4  ;;  %v1130_v43 = vrot.slane %v1126_v19, 6  ;;  %v5909_v56 = vunpack.i.h.bf16 %v7109_v22  ;;  %v5908_v36 = vunpack.i.l.bf16 %v7109_v22 }
  0xd0   :  { %4137 = vmatpush1.bf16.msra.mxu0 %v6469_v17  ;;  %v1255_v2 = vsel %vm417_vm7, %v7130_v48, %v5899_v53  ;;  %v1254_v59 = vsel %vm417_vm7, %v7127_v8, %v5898_v0  ;;  %v5919_v15 = vunpack.i.h.bf16 %v7118_v44  ;;  %v5918_v19 = vunpack.i.l.bf16 %v7118_v44 }
  0xd1   :  { %4139 = vmatprep.subr.bf16.mxu0 %v6479_v20  ;;  %v1256_v22 = vsel %vm419_vm8, %v1254_v59, %v5908_v36  ;;  %v1265_v44 = vrot.slane %v7033_v63, 7  ;;  %v7228_v63 = vld [vmem:[%s9544_s1 + $0x8] sm:$0xff] }
  0xd2   :  { %4197 = vmatpush1.bf16.msra.mxu1 %v6441_v58 }
  0xd3   :  { %4199 = vmatprep.subr.bf16.mxu1 %v6451_v61 }
  0xd4   :  { %4141 = vmatpush1.bf16.msra.mxu0 %v6503_v28 }
  0xd5   :  { %4143 = vmatprep.subr.bf16.mxu0 %v6513_v32 }
  0xd6   :  { %4201 = vmatpush1.bf16.msra.mxu1 %v6469_v17 }
  0xd7   :  { %4203 = vmatprep.subr.bf16.mxu1 %v6479_v20 }
  0xd8   :  { %4145 = vmatpush1.bf16.msra.mxu0 %v6563_v50 }
  0xd9   :  { %4147 = vmatprep.subr.bf16.mxu0 %v6570_v52 }
  0xda   :  { %4205 = vmatpush1.bf16.msra.mxu1 %v6503_v28 }
  0xdb   :  { %4207 = vmatprep.subr.bf16.mxu1 %v6513_v32 }
  0xdc   :  { %4149 = vmatpush1.bf16.msra.mxu0 %v6602_v14 }
  0xdd   :  { %4151 = vmatprep.subr.bf16.mxu0 %v6606_v16 }
  0xde   :  { %4209 = vmatpush1.bf16.msra.mxu1 %v6563_v50 }
  0xdf   :  { %4211 = vmatprep.subr.bf16.mxu1 %v6570_v52 }
  0xe0   :  { %4153 = vmatpush1.bf16.msra.mxu0 %v6636_v27 }
  0xe1   :  { %4155 = vmatprep.subr.bf16.mxu0 %v6640_v29 }
  0xe2   :  { %4213 = vmatpush1.bf16.msra.mxu1 %v6602_v14 }
  0xe3   :  { %4215 = vmatprep.subr.bf16.mxu1 %v6606_v16 }
  0xe4   :  { %4157 = vmatpush1.bf16.msra.mxu0 %v6658_v33 }
  0xe5   :  { %4159 = vmatprep.subr.bf16.mxu0 %v6662_v35 }
  0xe6   :  { %4217 = vmatpush1.bf16.msra.mxu1 %v6636_v27 }
  0xe7   :  { %4219 = vmatprep.subr.bf16.mxu1 %v6640_v29 }
  0xe8   :  { %4161 = vmatpush1.bf16.msra.mxu0 %v6680_v54 }
  0xe9   :  { %4163 = vmatprep.subr.bf16.mxu0 %v6684_v55 }
  0xea   :  { %4221 = vmatpush1.bf16.msra.mxu1 %v6658_v33 }
  0xeb   :  { %4223 = vmatprep.subr.bf16.mxu1 %v6662_v35 }
  0xec   :  { %4165 = vmatpush1.bf16.msra.mxu0 %v6700_v62 }
  0xed   :  { %4167 = vmatprep.subr.bf16.mxu0 %v9885_v57 }
  0xee   :  { %4225 = vmatpush1.bf16.msra.mxu1 %v6680_v54 }
  0xef   :  { %4227 = vmatprep.subr.bf16.mxu1 %v6684_v55 }
  0xf0   :  { %4169 = vmatpush1.bf16.msra.mxu0 %v6720_v4 }
  0xf1   :  { %4171 = vmatprep.subr.bf16.mxu0 %v6724_v5 }
  0xf2   :  { %4229 = vmatpush1.bf16.msra.mxu1 %v6700_v62 }
  0xf3   :  { %4231 = vmatprep.subr.bf16.mxu1 %v9885_v57 }
  0xf4   :  { %4173 = vmatpush1.bf16.msra.mxu0 %v6740_v25 }
  0xf5   :  { %4175 = vmatprep.subr.bf16.mxu0 %v6744_v26 }
  0xf6   :  { %4233 = vmatpush1.bf16.msra.mxu1 %v6720_v4 }
  0xf7   :  { %4235 = vmatprep.subr.bf16.mxu1 %v6724_v5 }
  0xf8   :  { %4177 = vmatpush1.bf16.msra.mxu0 %v6766_v37 }
  0xf9   :  { %4179 = vmatprep.subr.bf16.mxu0 %v6772_v45 }
  0xfa   :  { %4237 = vmatpush1.bf16.msra.mxu1 %v6740_v25 }
  0xfb   :  { %4239 = vmatprep.subr.bf16.mxu1 %v6744_v26 }
  0xfc   :  { %4181 = vmatpush1.bf16.msra.mxu0 %v6791_v12 }
  0xfd   :  { %4183 = vmatprep.subr.bf16.mxu0 %v6797_v18 }
  0xfe   :  { %4241 = vmatpush1.bf16.msra.mxu1 %v6766_v37 }
  0xff   :  { %4243 = vmatprep.subr.bf16.mxu1 %v6772_v45 }
 0x100   :  { %4185 = vmatpush1.bf16.msra.mxu0 %v6814_v24 }
 0x101   :  { %4251 = vmatprep.subr.bf16.mxu0 %v6377_v34 }
 0x102   :  { %4245 = vmatpush1.bf16.msra.mxu1 %v6791_v12 }
 0x103   :  { %958 = vmatmul.mubr.f32.vlgmr.msra.gmra.mrb[4].mxu0 %v889_v40  ;;  %4247 = vmatprep.subr.bf16.mxu1 %v6797_v18  ;;  %v1257_v40 = vsel %vm419_vm8, %v1255_v2, %v5909_v56  ;;  %v1697_v2 = vsel %vm738_vm3, %v6762_v31, %v6759_v30 }
 0x104   :  { %4253 = vmatpush1.bf16.msra.mxu0 %v6388_v38  ;;  %1197 = vmatprep.mubr.f32.mxu0 %v1130_v43  ;;  %v1258_v43 = vsel %vm421_vm9, %v1256_v22, %v5918_v19  ;;  %v1259_v3 = vsel %vm421_vm9, %v1257_v40, %v5919_v15  ;;  %v7243_v15 = vld [vmem:[%s9543_s0 + $0x18] sm:$0xff]  ;;  %v1701_v22 = vsel %vm738_vm3, %v9881_v9, %v9880_v6 }
 0x105   :  { %4255 = vmatprep.subr.bf16.mxu0 %v6390_v39  ;;  %v1268_v53 = vrot.slane %v1258_v43, 7  ;;  %v1269_v0 = vrot.slane %v1259_v3, 7  ;;  %v1687_v19 = vsel %vm738_vm3, %v7243_v15, %v9878_v46  ;;  %v7254_v40 = vld [vmem:[%s9544_s1 + $0x18] sm:$0xff] }
 0x106   :  { %4249 = vmatpush1.bf16.msra.mxu1 %v6814_v24  ;;  %v1691_v43 = vsel %vm738_vm3, %v7254_v40, %v9882_v60  ;;  %v5960_v3 = vpack.i.bf16 %v1687_v19, %v1701_v22  ;;  %v5929_v19 = vunpack.i.h.bf16 %v7132_v11  ;;  %v1089_v22 = vsel %vm1088_vm6, %v6856_v10, %v7140_v51 }
 0x107   :  { %4315 = vmatprep.subr.bf16.mxu1 %v6377_v34  ;;  %v1270_v56 = vsel %vm1264_vm10, %v1268_v53, %v1269_v0  ;;  %v1350_v53 = vsel %vm375_vm0, %v7077_v23, %v7228_v63  ;;  %v1364_v0 = vsel %vm375_vm0, %v6762_v31, %v6759_v30  ;;  %v5939_v11 = vunpack.i.h.bf16 %v7158_v41 }
 0x108   :  { %4257 = vmatpush1.bf16.msra.mxu0 %v6413_v47  ;;  %5961 = vrot.lane.b32.xlu1 %v5960_v3, %s6216_s23  ;;  %v1121_v3 = vsel %vm417_vm7, %v1089_v22, %v5929_v19  ;;  %v427_v41 = vlaneseq }
 0x109   :  { %4259 = vmatprep.subr.bf16.mxu0 %v6417_v49  ;;  %1080 = vmatmul.mubr.f32.vlgmr.msra.gmra.mrb[4].mxu1 %v1011_v21  ;;  %v1266_v21 = vrot.slane %v7036_v42, 7  ;;  %v1683_v42 = vsel %vm738_vm3, %v7077_v23, %v7228_v63 }
 0x10a   :  { %4317 = vmatpush1.bf16.msra.mxu1 %v6388_v38  ;;  %1337 = vmatprep.mubr.f32.mxu1 %v1270_v56  ;;  %v5955_v59 = vpack.i.bf16 %v1683_v42, %v1697_v2  ;;  %v5975_v56 = vpack.i.bf16 %v1350_v53, %v1364_v0  ;;  %v1358_v42 = vsel %vm375_vm0, %v7254_v40, %v9882_v60 }
 0x10b   :  { %4319 = vmatprep.subr.bf16.mxu1 %v6390_v39  ;;  %v7223_v36 = vsel %vm1264_vm10, %v1265_v44, %v1266_v21  ;;  %v1705_v44 = vsel %vm738_vm3, %v9884_v1, %v9883_v13  ;;  %v1372_v2 = vsel %vm375_vm0, %v9884_v1, %v9883_v13  ;;  %v1469_v0 = vsel %vm510_vm1, %v7130_v48, %v7127_v8 }
 0x10c   :  { %4261 = vmatpush1.bf16.msra.mxu0 %v6441_v58  ;;  %5956 = vrot.lane.b32.xlu0 %v5955_v59, %s6214_s13  ;;  %v5965_v21 = vpack.i.bf16 %v1691_v43, %v1705_v44  ;;  %v5985_v59 = vpack.i.bf16 %v1358_v42, %v1372_v2  ;;  %v5934_v43 = vunpack.i.h.bf16 %v7147_v7  ;;  %v7332_v44 = vshrl.u32 %v427_v41, 7 }
 0x10d   :  { %4263 = vmatprep.subr.bf16.mxu0 %v6451_v61 }
 0x10e   :  { %4321 = vmatpush1.bf16.msra.mxu1 %v6413_v47  ;;  %v1122_v10 = vsel %vm419_vm8, %v1121_v3, %v5934_v43  ;;  %9892 = vst [vmem:[#allocation13_spill] sm:$0xff] %v7332_v44  ;;  %v9573_v53 = vsub.s32 1, %v7332_v44 }
 0x10f   :  { %4323 = vmatprep.subr.bf16.mxu1 %v6417_v49  ;;  %v1123_v51 = vsel %vm421_vm9, %v1122_v10, %v5939_v11 }
 0x110   :  { %4265 = vmatpush1.bf16.msra.mxu0 %v6469_v17  ;;  %5966 = vrot.lane.b32.xlu0 %v5965_v21, %s6215_s14  ;;  %v1129_v7 = vrot.slane %v1123_v51, 6  ;;  %v108_v21 = vld [vmem:[%s9546_s3] sm:$0x3] }
 0x111   :  { %4267 = vmatprep.subr.bf16.mxu0 %v6479_v20  ;;  %v7362_v22 = vrot.slane %v108_v21, %v9573_v53 }
 0x112   :  { %4325 = vmatpush1.bf16.msra.mxu1 %v6441_v58 }
 0x113   :  { %4327 = vmatprep.subr.bf16.mxu1 %v6451_v61  ;;  %9894 = vst [vmem:[#allocation22_spill] sm:$0xff] %v7362_v22 }
 0x114   :  { %4269 = vmatpush1.bf16.msra.mxu0 %v6503_v28  ;;  %5976 = vrot.lane.b32.xlu0 %v5975_v56, %s6214_s13 }
 0x115   :  { %4271 = vmatprep.subr.bf16.mxu0 %v6513_v32 }
 0x116   :  { %4329 = vmatpush1.bf16.msra.mxu1 %v6469_v17 }
 0x117   :  { %4331 = vmatprep.subr.bf16.mxu1 %v6479_v20 }
 0x118   :  { %4273 = vmatpush1.bf16.msra.mxu0 %v6563_v50  ;;  %5986 = vrot.lane.b32.xlu0 %v5985_v59, %s6215_s14 }
 0x119   :  { %4275 = vmatprep.subr.bf16.mxu0 %v6570_v52 }
 0x11a   :  { %4333 = vmatpush1.bf16.msra.mxu1 %v6503_v28 }
 0x11b   :  { %4335 = vmatprep.subr.bf16.mxu1 %v6513_v32 }
 0x11c   :  { %4277 = vmatpush1.bf16.msra.mxu0 %v6602_v14 }
 0x11d   :  { %4279 = vmatprep.subr.bf16.mxu0 %v6606_v16 }
 0x11e   :  { %4337 = vmatpush1.bf16.msra.mxu1 %v6563_v50 }
 0x11f   :  { %4339 = vmatprep.subr.bf16.mxu1 %v6570_v52 }
 0x120   :  { %4281 = vmatpush1.bf16.msra.mxu0 %v6636_v27 }
 0x121   :  { %4283 = vmatprep.subr.bf16.mxu0 %v6640_v29 }
 0x122   :  { %4341 = vmatpush1.bf16.msra.mxu1 %v6602_v14 }
 0x123   :  { %4343 = vmatprep.subr.bf16.mxu1 %v6606_v16 }
 0x124   :  { %4285 = vmatpush1.bf16.msra.mxu0 %v6658_v33 }
 0x125   :  { %4287 = vmatprep.subr.bf16.mxu0 %v6662_v35 }
 0x126   :  { %4345 = vmatpush1.bf16.msra.mxu1 %v6636_v27 }
 0x127   :  { %4347 = vmatprep.subr.bf16.mxu1 %v6640_v29 }
 0x128   :  { %4289 = vmatpush1.bf16.msra.mxu0 %v6680_v54 }
 0x129   :  { %4291 = vmatprep.subr.bf16.mxu0 %v6684_v55 }
 0x12a   :  { %4349 = vmatpush1.bf16.msra.mxu1 %v6658_v33 }
 0x12b   :  { %4351 = vmatprep.subr.bf16.mxu1 %v6662_v35 }
 0x12c   :  { %4293 = vmatpush1.bf16.msra.mxu0 %v6700_v62 }
 0x12d   :  { %4295 = vmatprep.subr.bf16.mxu0 %v9885_v57  ;;  %v7357_v59 = vpop.permute.xlu0 %5946 }
 0x12e   :  { %4353 = vmatpush1.bf16.msra.mxu1 %v6680_v54  ;;  %v7349_v56 = vpop.permute.xlu1 %5941  ;;  %v5948_v3 = vunpack.i.l.bf16 %v7357_v59 }
 0x12f   :  { %4355 = vmatprep.subr.bf16.mxu1 %v6684_v55  ;;  %v5943_v42 = vunpack.i.l.bf16 %v7349_v56 }
 0x130   :  { %4297 = vmatpush1.bf16.msra.mxu0 %v6720_v4 }
 0x131   :  { %4299 = vmatprep.subr.bf16.mxu0 %v6724_v5  ;;  %v1486_v43 = vsel %vm417_vm7, %v1469_v0, %v5943_v42 }
 0x132   :  { %4357 = vmatpush1.bf16.msra.mxu1 %v6700_v62  ;;  %v7368_v10 = vpop.permute.xlu1 %5951  ;;  %v1487_v51 = vsel %vm419_vm8, %v1486_v43, %v5948_v3 }
 0x133   :  { %4359 = vmatprep.subr.bf16.mxu1 %v9885_v57  ;;  %v5953_v41 = vunpack.i.l.bf16 %v7368_v10 }
 0x134   :  { %4301 = vmatpush1.bf16.msra.mxu0 %v6740_v25 }
 0x135   :  { %4303 = vmatprep.subr.bf16.mxu0 %v6744_v26  ;;  %v1488_v0 = vsel %vm421_vm9, %v1487_v51, %v5953_v41 }
 0x136   :  { %4361 = vmatpush1.bf16.msra.mxu1 %v6720_v4  ;;  %v1492_v53 = vrot.slane %v1488_v0, 1  ;;  %v7417_v0 = vrot.slane %v7243_v15, 7 }
 0x137   :  { %4363 = vmatprep.subr.bf16.mxu1 %v6724_v5 }
 0x138   :  { %4305 = vmatpush1.bf16.msra.mxu0 %v6766_v37 }
 0x139   :  { %4307 = vmatprep.subr.bf16.mxu0 %v6772_v45 }
 0x13a   :  { %4365 = vmatpush1.bf16.msra.mxu1 %v6740_v25 }
 0x13b   :  { %4367 = vmatprep.subr.bf16.mxu1 %v6744_v26 }
 0x13c   :  { %4309 = vmatpush1.bf16.msra.mxu0 %v6791_v12 }
 0x13d   :  { %4311 = vmatprep.subr.bf16.mxu0 %v6797_v18 }
 0x13e   :  { %4369 = vmatpush1.bf16.msra.mxu1 %v6766_v37 }
 0x13f   :  { %4371 = vmatprep.subr.bf16.mxu1 %v6772_v45 }
 0x140   :  { %4313 = vmatpush1.bf16.msra.mxu0 %v6814_v24 }
 0x141   :  { %4379 = vmatprep.subr.bf16.mxu0 %v6377_v34 }
 0x142   :  { %4373 = vmatpush1.bf16.msra.mxu1 %v6791_v12 }
 0x143   :  { %1198 = vmatmul.mubr.f32.vlgmr.msra.gmra.mrb[6].mxu0 %v1129_v7  ;;  %4375 = vmatprep.subr.bf16.mxu1 %v6797_v18 }
 0x144   :  { %4381 = vmatpush1.bf16.msra.mxu0 %v6388_v38 }
 0x145   :  { %4383 = vmatprep.subr.bf16.mxu0 %v6390_v39 }
 0x146   :  { %4377 = vmatpush1.bf16.msra.mxu1 %v6814_v24 }
 0x147   :  { %4443 = vmatprep.subr.bf16.mxu1 %v6377_v34 }
 0x148   :  { %4385 = vmatpush1.bf16.msra.mxu0 %v6413_v47 }
 0x149   :  { %1338 = vmatmul.mubr.f32.vlgmr.msra.gmra.mrb[6].mxu1 %v7223_v36  ;;  %4387 = vmatprep.subr.bf16.mxu0 %v6417_v49  ;;  %v9574_v36 = vsub.s32 0, %v7332_v44 }
 0x14a   :  { %4445 = vmatpush1.bf16.msra.mxu1 %v6388_v38  ;;  %1559 = vmatprep.mubr.f32.mxu1 %v1492_v53 }
 0x14b   :  { %4447 = vmatprep.subr.bf16.mxu1 %v6390_v39  ;;  %v7355_v2 = vrot.slane %v108_v21, %v9574_v36 }
 0x14c   :  { %4389 = vmatpush1.bf16.msra.mxu0 %v6441_v58 }
 0x14d   :  { %4391 = vmatprep.subr.bf16.mxu0 %v6451_v61  ;;  %9893 = vst [vmem:[#allocation14_spill] sm:$0xff] %v7355_v2 }
 0x14e   :  { %4449 = vmatpush1.bf16.msra.mxu1 %v6413_v47 }
 0x14f   :  { %4451 = vmatprep.subr.bf16.mxu1 %v6417_v49 }
 0x150   :  { %4393 = vmatpush1.bf16.msra.mxu0 %v6469_v17 }
 0x151   :  { %4395 = vmatprep.subr.bf16.mxu0 %v6479_v20 }
 0x152   :  { %4453 = vmatpush1.bf16.msra.mxu1 %v6441_v58 }
 0x153   :  { %4455 = vmatprep.subr.bf16.mxu1 %v6451_v61 }
 0x154   :  { %4397 = vmatpush1.bf16.msra.mxu0 %v6503_v28 }
 0x155   :  { %4399 = vmatprep.subr.bf16.mxu0 %v6513_v32 }
 0x156   :  { %v503_v19 = vpop.f32.mrb[0].mxu0  ;;  %4457 = vmatpush1.bf16.msra.mxu1 %v6469_v17 }
 0x157   :  { %v505_v11 = vpop.f32.mrb[1].mxu0  ;;  %4459 = vmatprep.subr.bf16.mxu1 %v6479_v20  ;;  %v504_v7 = vadd.f32 %v503_v19, %v7355_v2 }
 0x158   :  { %4401 = vmatpush1.bf16.msra.mxu0 %v6563_v50  ;;  %v506_v21 = vadd.f32 %v505_v11, %v7362_v22 }
 0x159   :  { %4403 = vmatprep.subr.bf16.mxu0 %v6570_v52  ;;  %6110 = vtanh.f32 %v504_v7 }
 0x15a   :  { %4461 = vmatpush1.bf16.msra.mxu1 %v6503_v28  ;;  %6112 = vtanh.f32 %v506_v21 }
 0x15b   :  { %4463 = vmatprep.subr.bf16.mxu1 %v6513_v32 }
 0x15c   :  { %v617_v42 = vpop.f32.mrb[0].mxu1  ;;  %4405 = vmatpush1.bf16.msra.mxu0 %v6602_v14 }
 0x15d   :  { %v618_v43 = vadd.f32 %v617_v42, %v7355_v2  ;;  %v619_v19 = vpop.f32.mrb[1].mxu1  ;;  %4407 = vmatprep.subr.bf16.mxu0 %v6606_v16  ;;  %v5944_v42 = vunpack.i.h.bf16 %v7349_v56 }
 0x15e   :  { %v620_v3 = vadd.f32 %v619_v19, %v7362_v22  ;;  %4465 = vmatpush1.bf16.msra.mxu1 %v6563_v50 }
 0x15f   :  { %6114 = vtanh.f32 %v618_v43  ;;  %4467 = vmatprep.subr.bf16.mxu1 %v6570_v52  ;;  %v7427_v43 = vld [vmem:[%s9543_s0 + $0x8] sm:$0xff] }
 0x160   :  { %6116 = vtanh.f32 %v620_v3  ;;  %4409 = vmatpush1.bf16.msra.mxu0 %v6636_v27  ;;  %v1455_v19 = vsel %vm510_vm1, %v7417_v0, %v7427_v43  ;;  %v5949_v3 = vunpack.i.h.bf16 %v7357_v59 }
 0x161   :  { %4411 = vmatprep.subr.bf16.mxu0 %v6640_v29  ;;  %v1483_v56 = vsel %vm417_vm7, %v1455_v19, %v5944_v42 }
 0x162   :  { %4469 = vmatpush1.bf16.msra.mxu1 %v6602_v14 }
 0x163   :  { %4471 = vmatprep.subr.bf16.mxu1 %v6606_v16  ;;  %v6111_v11 = vpop.eup %6110 }
 0x164   :  { %4413 = vmatpush1.bf16.msra.mxu0 %v6658_v33  ;;  %v6113_v53 = vpop.eup %6112 }
 0x165   :  { %4415 = vmatprep.subr.bf16.mxu0 %v6662_v35 }
 0x166   :  { %4473 = vmatpush1.bf16.msra.mxu1 %v6636_v27 }
 0x167   :  { %4475 = vmatprep.subr.bf16.mxu1 %v6640_v29 }
 0x168   :  { %4417 = vmatpush1.bf16.msra.mxu0 %v6680_v54 }
 0x169   :  { %v7394_v51 = vpop.eup %6114  ;;  %4419 = vmatprep.subr.bf16.mxu0 %v6684_v55 }
 0x16a   :  { %v7397_v7 = vpop.eup %6116  ;;  %v7400_v41 = vmax.f32 %v6111_v11, %v7394_v51  ;;  %4477 = vmatpush1.bf16.msra.mxu1 %v6658_v33  ;;  %v5954_v11 = vunpack.i.h.bf16 %v7368_v10  ;;  %v1695_v10 = vsel %vm738_vm3, %v7130_v48, %v7127_v8 }
 0x16b   :  { %v7404_v21 = vmax.f32 %v6113_v53, %v7397_v7  ;;  %4479 = vmatprep.subr.bf16.mxu1 %v6662_v35  ;;  %v1484_v53 = vsel %vm419_vm8, %v1483_v56, %v5949_v3 }
 0x16c   :  { %9895 = vst [vmem:[#allocation15_spill] sm:$0xff] %v7400_v41  ;;  %4421 = vmatpush1.bf16.msra.mxu0 %v6700_v62  ;;  %v1485_v59 = vsel %vm421_vm9, %v1484_v53, %v5954_v11 }
 0x16d   :  { %9896 = vst [vmem:[#allocation16_spill] sm:$0xff] %v7404_v21  ;;  %4423 = vmatprep.subr.bf16.mxu0 %v9885_v57  ;;  %v1491_v42 = vrot.slane %v1485_v59, 1 }
 0x16e   :  { %4481 = vmatpush1.bf16.msra.mxu1 %v6680_v54 }
 0x16f   :  { %4483 = vmatprep.subr.bf16.mxu1 %v6684_v55 }
 0x170   :  { %4425 = vmatpush1.bf16.msra.mxu0 %v6720_v4 }
 0x171   :  { %4427 = vmatprep.subr.bf16.mxu0 %v6724_v5 }
 0x172   :  { %4485 = vmatpush1.bf16.msra.mxu1 %v6700_v62 }
 0x173   :  { %4487 = vmatprep.subr.bf16.mxu1 %v9885_v57 }
 0x174   :  { %4429 = vmatpush1.bf16.msra.mxu0 %v6740_v25 }
 0x175   :  { %4431 = vmatprep.subr.bf16.mxu0 %v6744_v26 }
 0x176   :  { %4489 = vmatpush1.bf16.msra.mxu1 %v6720_v4 }
 0x177   :  { %4491 = vmatprep.subr.bf16.mxu1 %v6724_v5 }
 0x178   :  { %4433 = vmatpush1.bf16.msra.mxu0 %v6766_v37 }
 0x179   :  { %4435 = vmatprep.subr.bf16.mxu0 %v6772_v45 }
 0x17a   :  { %4493 = vmatpush1.bf16.msra.mxu1 %v6740_v25  ;;  %v7463_v11 = vpop.permute.xlu1 %5961 }
 0x17b   :  { %4495 = vmatprep.subr.bf16.mxu1 %v6744_v26  ;;  %v5963_v59 = vunpack.i.l.bf16 %v7463_v11 }
 0x17c   :  { %4437 = vmatpush1.bf16.msra.mxu0 %v6791_v12 }
 0x17d   :  { %4439 = vmatprep.subr.bf16.mxu0 %v6797_v18 }
 0x17e   :  { %4497 = vmatpush1.bf16.msra.mxu1 %v6766_v37  ;;  %v7458_v19 = vpop.permute.xlu0 %5956 }
 0x17f   :  { %4499 = vmatprep.subr.bf16.mxu1 %v6772_v45  ;;  %v5958_v3 = vunpack.i.l.bf16 %v7458_v19 }
 0x180   :  { %4441 = vmatpush1.bf16.msra.mxu0 %v6814_v24 }
 0x181   :  { %4507 = vmatprep.subr.bf16.mxu0 %v6377_v34  ;;  %v1712_v56 = vsel %vm417_vm7, %v1695_v10, %v5958_v3 }
 0x182   :  { %4501 = vmatpush1.bf16.msra.mxu1 %v6791_v12  ;;  %v1713_v10 = vsel %vm419_vm8, %v1712_v56, %v5963_v59 }
 0x183   :  { %4503 = vmatprep.subr.bf16.mxu1 %v6797_v18 }
 0x186   :  { %4505 = vmatpush1.bf16.msra.mxu1 %v6814_v24 }
 0x187   :  { %4571 = vmatprep.subr.bf16.mxu1 %v6377_v34 }
 0x189   :  { %1560 = vmatmul.mubr.f32.vlgmr.msra.gmra.mrb[8].mxu1 %v1491_v42  ;;  %v7467_v42 = vpop.permute.xlu0 %5966 }
 0x18a   :  { %4573 = vmatpush1.bf16.msra.mxu1 %v6388_v38  ;;  %v5968_v34 = vunpack.i.l.bf16 %v7467_v42 }
 0x18b   :  { %4575 = vmatprep.subr.bf16.mxu1 %v6390_v39 }
 0x18c   :  { %v1714_v3 = vsel %vm421_vm9, %v1713_v10, %v5968_v34  ;;  %v1570_v10 = vsel %vm624_vm2, %v7077_v23, %v7228_v63 }
 0x18e   :  { %4577 = vmatpush1.bf16.msra.mxu1 %v6413_v47 }
 0x18f   :  { %4579 = vmatprep.subr.bf16.mxu1 %v6417_v49 }
 0x192   :  { %4581 = vmatpush1.bf16.msra.mxu1 %v6441_v58 }
 0x193   :  { %4583 = vmatprep.subr.bf16.mxu1 %v6451_v61 }
 0x196   :  { %v731_v53 = vpop.f32.mrb[2].mxu0  ;;  %4585 = vmatpush1.bf16.msra.mxu1 %v6469_v17  ;;  %v1718_v17 = vrot.slane %v1714_v3, 3  ;;  %v1584_v3 = vsel %vm624_vm2, %v6762_v31, %v6759_v30 }
 0x197   :  { %v732_v36 = vadd.f32 %v731_v53, %v7355_v2  ;;  %v733_v44 = vpop.f32.mrb[3].mxu0  ;;  %4587 = vmatprep.subr.bf16.mxu1 %v6479_v20 }
 0x198   :  { %v734_v61 = vadd.f32 %v733_v44, %v7362_v22  ;;  %1785 = vmatprep.mubr.f32.mxu1 %v1718_v17  ;;  %v1354_v17 = vsel %vm375_vm0, %v7243_v15, %v9878_v46 }
 0x199   :  { %6118 = vtanh.f32 %v732_v36 }
 0x19a   :  { %6120 = vtanh.f32 %v734_v61  ;;  %4589 = vmatpush1.bf16.msra.mxu1 %v6503_v28 }
 0x19b   :  { %4591 = vmatprep.subr.bf16.mxu1 %v6513_v32 }
 0x19c   :  { %v845_v58 = vpop.f32.mrb[2].mxu1 }
 0x19d   :  { %v846_v53 = vadd.f32 %v845_v58, %v7355_v2  ;;  %v847_v20 = vpop.f32.mrb[3].mxu1 }
 0x19e   :  { %v848_v49 = vadd.f32 %v847_v20, %v7362_v22  ;;  %4593 = vmatpush1.bf16.msra.mxu1 %v6563_v50 }
 0x19f   :  { %6122 = vtanh.f32 %v846_v53  ;;  %4595 = vmatprep.subr.bf16.mxu1 %v6570_v52  ;;  %v5990_v53 = vpack.i.bf16 %v7400_v41, %v7404_v21  ;;  %v131_v41 = vld [vmem:[%s9547_s4 + $0xb0] sm:$0xff] }
 0x1a0   :  { %6124 = vtanh.f32 %v848_v49  ;;  %v1368_v49 = vsel %vm375_vm0, %v9881_v9, %v9880_v6 }
 0x1a2   :  { %4597 = vmatpush1.bf16.msra.mxu1 %v6602_v14 }
 0x1a3   :  { %v6119_v34 = vpop.eup %6118  ;;  %4599 = vmatprep.subr.bf16.mxu1 %v6606_v16 }
 0x1a4   :  { %v6121_v61 = vpop.eup %6120  ;;  %v7484_v44 = vmax.f32 %v7394_v51, %v6119_v34  ;;  %v5980_v51 = vpack.i.bf16 %v1354_v17, %v1368_v49  ;;  %v1592_v17 = vsel %vm624_vm2, %v9884_v1, %v9883_v13 }
 0x1a5   :  { %v7487_v58 = vmax.f32 %v7397_v7, %v6121_v61 }
 0x1a6   :  { %4601 = vmatpush1.bf16.msra.mxu1 %v6636_v27 }
 0x1a7   :  { %v5970_v20 = vpack.i.bf16 %v7487_v58, %v7484_v44  ;;  %4603 = vmatprep.subr.bf16.mxu1 %v6640_v29 }
 0x1a9   :  { %v7499_v36 = vpop.eup %6122  ;;  %5971 = vrot.lane.b32.xlu1 %v5970_v20, %s6217_s30  ;;  %v5959_v20 = vunpack.i.h.bf16 %v7458_v19 }
 0x1aa   :  { %v7502_v7 = vpop.eup %6124  ;;  %4605 = vmatpush1.bf16.msra.mxu1 %v6658_v33  ;;  %v7506_v56 = vmax.f32 %v6119_v34, %v7499_v36  ;;  %v5995_v34 = vpack.i.bf16 %v1570_v10, %v1584_v3  ;;  %v5964_v10 = vunpack.i.h.bf16 %v7463_v11 }
 0x1ab   :  { %4607 = vmatprep.subr.bf16.mxu1 %v6662_v35  ;;  %v7510_v59 = vmax.f32 %v6121_v61, %v7502_v7  ;;  %v1578_v61 = vsel %vm624_vm2, %v7254_v40, %v9882_v60 }
 0x1ac   :  { %v6005_v49 = vpack.i.bf16 %v1578_v61, %v1592_v17  ;;  %v112_v61 = vld [vmem:[%s9547_s4 + $0x18] sm:$0xff] }
 0x1ad   :  { %9897 = vst [vmem:[#allocation17_spill] sm:$0xff] %v7510_v59  ;;  %5981 = vrot.lane.b32.xlu1 %v5980_v51, %s6216_s23  ;;  %v1681_v51 = vsel %vm738_vm3, %v7417_v0, %v7427_v43 }
 0x1ae   :  { %4609 = vmatpush1.bf16.msra.mxu1 %v6680_v54  ;;  %v1709_v3 = vsel %vm417_vm7, %v1681_v51, %v5959_v20  ;;  %v114_v20 = vld [vmem:[%s9547_s4 + $0x28] sm:$0xff]  ;;  %v116_v51 = vld [vmem:[%s9547_s4 + $0x38] sm:$0xff] }
 0x1af   :  { %4611 = vmatprep.subr.bf16.mxu1 %v6684_v55  ;;  %v1710_v19 = vsel %vm419_vm8, %v1709_v3, %v5964_v10 }
 0x1b1   :  { %5991 = vrot.lane.b32.xlu1 %v5990_v53, %s6217_s30  ;;  %v5969_v53 = vunpack.i.h.bf16 %v7467_v42  ;;  %v109_v42 = vld [vmem:[%s9547_s4] sm:$0xff] }
 0x1b2   :  { %4613 = vmatpush1.bf16.msra.mxu1 %v6700_v62 }
 0x1b3   :  { %4615 = vmatprep.subr.bf16.mxu1 %v9885_v57  ;;  %v1711_v11 = vsel %vm421_vm9, %v1710_v19, %v5969_v53  ;;  %v7575_v53 = vpack.c.bf16 %v116_v51, %v114_v20  ;;  %v113_v19 = vld [vmem:[%s9547_s4 + $0x20] sm:$0xff]  ;;  %v119_v51 = vld [vmem:[%s9547_s4 + $0x50] sm:$0xff] }
 0x1b4   :  { %v1717_v10 = vrot.slane %v1711_v11, 3  ;;  %v120_v11 = vld [vmem:[%s9547_s4 + $0x58] sm:$0xff]  ;;  %v117_v20 = vld [vmem:[%s9547_s4 + $0x40] sm:$0xff] }
 0x1b5   :  { %5996 = vrot.lane.b32.xlu1 %v5995_v34, %s6214_s13  ;;  %v110_v34 = vld [vmem:[%s9547_s4 + $0x8] sm:$0xff]  ;;  %9900 = vst [vmem:[#allocation25_spill] sm:$0xff] %v7575_v53 }
 0x1b6   :  { %4617 = vmatpush1.bf16.msra.mxu1 %v6720_v4  ;;  %v7557_v17 = vpack.c.bf16 %v112_v61, %v110_v34  ;;  %v115_v34 = vld [vmem:[%s9547_s4 + $0x30] sm:$0xff]  ;;  %v118_v61 = vld [vmem:[%s9547_s4 + $0x48] sm:$0xff] }
 0x1b7   :  { %4619 = vmatprep.subr.bf16.mxu1 %v6724_v5 }
 0x1b8   :  { %9898 = vst [vmem:[#allocation11_spill] sm:$0xff] %v7557_v17 }
 0x1b9   :  { %6006 = vrot.lane.b32.xlu1 %v6005_v49, %s6215_s14  ;;  %v111_v49 = vld [vmem:[%s9547_s4 + $0x10] sm:$0xff] }
 0x1ba   :  { %4621 = vmatpush1.bf16.msra.mxu1 %v6740_v25  ;;  %v7572_v3 = vpack.c.bf16 %v111_v49, %v109_v42  ;;  %v7590_v42 = vpack.c.bf16 %v115_v34, %v113_v19  ;;  %v7593_v49 = vpack.c.bf16 %v120_v11, %v118_v61  ;;  %v124_v19 = vld [vmem:[%s9547_s4 + $0x78] sm:$0xff]  ;;  %v7608_v34 = vpack.c.bf16 %v119_v51, %v117_v20  ;;  %v121_v11 = vld [vmem:[%s9547_s4 + $0x60] sm:$0xff] }
 0x1bb   :  { %4623 = vmatprep.subr.bf16.mxu1 %v6744_v26  ;;  %v128_v20 = vld [vmem:[%s9547_s4 + $0x98] sm:$0xff] }
 0x1bc   :  { %9899 = vst [vmem:[#allocation24_spill] sm:$0xff] %v7572_v3  ;;  %9901 = vst [vmem:[#allocation23_spill] sm:$0xff] %v7590_v42 }
 0x1bd   :  { %9902 = vst [vmem:[#allocation26_spill] sm:$0xff] %v7593_v49  ;;  %9903 = vst [vmem:[#allocation27_spill] sm:$0xff] %v7608_v34 }
 0x1be   :  { %4625 = vmatpush1.bf16.msra.mxu1 %v6766_v37 }
 0x1bf   :  { %4627 = vmatprep.subr.bf16.mxu1 %v6772_v45 }
 0x1c2   :  { %4629 = vmatpush1.bf16.msra.mxu1 %v6791_v12 }
 0x1c3   :  { %4631 = vmatprep.subr.bf16.mxu1 %v6797_v18  ;;  %v145_v18 = vld [vmem:[%s9547_s4 + $0x120] sm:$0xff] }
 0x1c6   :  { %4633 = vmatpush1.bf16.msra.mxu1 %v6814_v24 }
 0x1c7   :  { %4699 = vmatprep.subr.bf16.mxu1 %v7557_v17  ;;  %v129_v17 = vld [vmem:[%s9547_s4 + $0xa0] sm:$0xff] }
 0x1c9   :  { %1786 = vmatmul.mubr.f32.vlgmr.msra.gmra.mrb[10].mxu1 %v1717_v10  ;;  %v122_v10 = vld [vmem:[%s9547_s4 + $0x68] sm:$0xff] }
 0x1ca   :  { %4701 = vmatpush1.bf16.msra.mxu1 %v7572_v3  ;;  %v7611_v61 = vpack.c.bf16 %v124_v19, %v122_v10  ;;  %v126_v3 = vld [vmem:[%s9547_s4 + $0x88] sm:$0xff]  ;;  %v125_v19 = vld [vmem:[%s9547_s4 + $0x80] sm:$0xff] }
 0x1cb   :  { %4703 = vmatprep.subr.bf16.mxu1 %v7575_v53  ;;  %v123_v53 = vld [vmem:[%s9547_s4 + $0x70] sm:$0xff]  ;;  %v7629_v10 = vpack.c.bf16 %v128_v20, %v126_v3 }
 0x1cc   :  { %9904 = vst [vmem:[#allocation28_spill] sm:$0xff] %v7611_v61  ;;  %v7626_v51 = vpack.c.bf16 %v123_v53, %v121_v11  ;;  %v132_v53 = vld [vmem:[%s9547_s4 + $0xb8] sm:$0xff] }
 0x1cd   :  { %9906 = vst [vmem:[#allocation30_spill] sm:$0xff] %v7629_v10 }
 0x1ce   :  { %4705 = vmatpush1.bf16.msra.mxu1 %v7590_v42  ;;  %9905 = vst [vmem:[#allocation29_spill] sm:$0xff] %v7626_v51  ;;  %v130_v42 = vld [vmem:[%s9547_s4 + $0xa8] sm:$0xff] }
 0x1cf   :  { %4707 = vmatprep.subr.bf16.mxu1 %v7593_v49  ;;  %v127_v49 = vld [vmem:[%s9547_s4 + $0x90] sm:$0xff] }
 0x1d0   :  { %v7644_v3 = vpack.c.bf16 %v127_v49, %v125_v19  ;;  %v134_v49 = vld [vmem:[%s9547_s4 + $0xc8] sm:$0xff]  ;;  %v136_v19 = vld [vmem:[%s9547_s4 + $0xd8] sm:$0xff] }
 0x1d2   :  { %4709 = vmatpush1.bf16.msra.mxu1 %v7608_v34  ;;  %9907 = vst [vmem:[#allocation31_spill] sm:$0xff] %v7644_v3  ;;  %v7648_v34 = vpack.c.bf16 %v132_v53, %v130_v42  ;;  %v7664_v42 = vpack.c.bf16 %v131_v41, %v129_v17  ;;  %v7667_v53 = vpack.c.bf16 %v136_v19, %v134_v49  ;;  %v140_v41 = vld [vmem:[%s9547_s4 + $0xf8] sm:$0xff]  ;;  %v137_v19 = vld [vmem:[%s9547_s4 + $0xe0] sm:$0xff] }
 0x1d3   :  { %4711 = vmatprep.subr.bf16.mxu1 %v7611_v61 }
 0x1d4   :  { %9908 = vst [vmem:[#allocation32_spill] sm:$0xff] %v7648_v34  ;;  %9909 = vst [vmem:[#allocation33_spill] sm:$0xff] %v7664_v42 }
 0x1d5   :  { %9910 = vst [vmem:[#allocation34_spill] sm:$0xff] %v7667_v53 }
 0x1d6   :  { %v959_v11 = vpop.f32.mrb[4].mxu0  ;;  %4713 = vmatpush1.bf16.msra.mxu1 %v7626_v51 }
 0x1d7   :  { %v960_v20 = vadd.f32 %v959_v11, %v7355_v2  ;;  %v961_v61 = vpop.f32.mrb[5].mxu0  ;;  %4715 = vmatprep.subr.bf16.mxu1 %v7629_v10  ;;  %v135_v11 = vld [vmem:[%s9547_s4 + $0xd0] sm:$0xff] }
 0x1d8   :  { %v962_v21 = vadd.f32 %v961_v61, %v7362_v22  ;;  %v133_v61 = vld [vmem:[%s9547_s4 + $0xc0] sm:$0xff] }
 0x1d9   :  { %6126 = vtanh.f32 %v960_v20  ;;  %v7682_v20 = vpack.c.bf16 %v135_v11, %v133_v61  ;;  %v144_v61 = vld [vmem:[%s9547_s4 + $0x118] sm:$0xff] }
 0x1da   :  { %6128 = vtanh.f32 %v962_v21  ;;  %4717 = vmatpush1.bf16.msra.mxu1 %v7644_v3  ;;  %v138_v21 = vld [vmem:[%s9547_s4 + $0xe8] sm:$0xff] }
 0x1db   :  { %4719 = vmatprep.subr.bf16.mxu1 %v7648_v34  ;;  %9911 = vst [vmem:[#allocation35_spill] sm:$0xff] %v7682_v20  ;;  %v7685_v49 = vpack.c.bf16 %v140_v41, %v138_v21  ;;  %v139_v34 = vld [vmem:[%s9547_s4 + $0xf0] sm:$0xff]  ;;  %v142_v3 = vld [vmem:[%s9547_s4 + $0x108] sm:$0xff] }
 0x1dc   :  { %v1081_v10 = vpop.f32.mrb[4].mxu1  ;;  %v7700_v11 = vpack.c.bf16 %v139_v34, %v137_v19  ;;  %v7703_v41 = vpack.c.bf16 %v144_v61, %v142_v3  ;;  %v146_v34 = vld [vmem:[%s9547_s4 + $0x128] sm:$0xff]  ;;  %v148_v3 = vld [vmem:[%s9547_s4 + $0x138] sm:$0xff] }
 0x1dd   :  { %v1083_v17 = vpop.f32.mrb[5].mxu1  ;;  %9912 = vst [vmem:[#allocation36_spill] sm:$0xff] %v7685_v49  ;;  %v1082_v19 = vadd.f32 %v1081_v10, %v7355_v2  ;;  %v147_v10 = vld [vmem:[%s9547_s4 + $0x130] sm:$0xff] }
 0x1de   :  { %4721 = vmatpush1.bf16.msra.mxu1 %v7664_v42  ;;  %9913 = vst [vmem:[#allocation37_spill] sm:$0xff] %v7700_v11  ;;  %9914 = vst [vmem:[#allocation38_spill] sm:$0xff] %v7703_v41  ;;  %v143_v42 = vld [vmem:[%s9547_s4 + $0x110] sm:$0xff] }
 0x1df   :  { %4723 = vmatprep.subr.bf16.mxu1 %v7667_v53  ;;  %v141_v53 = vld [vmem:[%s9547_s4 + $0x100] sm:$0xff]  ;;  %6130 = vtanh.f32 %v1082_v19 }
 0x1e2   :  { %4725 = vmatpush1.bf16.msra.mxu1 %v7682_v20  ;;  %v7726_v20 = vpack.c.bf16 %v143_v42, %v141_v53  ;;  %v152_v42 = vld [vmem:[%s9547_s4 + $0x158] sm:$0xff]  ;;  %v7744_v53 = vpack.c.bf16 %v147_v10, %v145_v18 }
 0x1e3   :  { %v6127_v21 = vpop.eup %6126  ;;  %4727 = vmatprep.subr.bf16.mxu1 %v7685_v49  ;;  %v1084_v49 = vadd.f32 %v1083_v17, %v7362_v22  ;;  %v156_v18 = vld [vmem:[%s9547_s4 + $0x178] sm:$0xff] }
 0x1e4   :  { %v6129_v51 = vpop.eup %6128  ;;  %v7712_v24 = vmax.f32 %v7499_v36, %v6127_v21  ;;  %9915 = vst [vmem:[#allocation39_spill] sm:$0xff] %v7726_v20  ;;  %v7729_v36 = vpack.c.bf16 %v148_v3, %v146_v34  ;;  %9917 = vst [vmem:[#allocation41_spill] sm:$0xff] %v7744_v53  ;;  %v149_v34 = vld [vmem:[%s9547_s4 + $0x140] sm:$0xff]  ;;  %v151_v3 = vld [vmem:[%s9547_s4 + $0x150] sm:$0xff] }
 0x1e5   :  { %v7722_v61 = vmax.f32 %v7502_v7, %v6129_v51  ;;  %v150_v7 = vld [vmem:[%s9547_s4 + $0x148] sm:$0xff]  ;;  %6132 = vtanh.f32 %v1084_v49  ;;  %v7762_v19 = vpack.c.bf16 %v151_v3, %v149_v34  ;;  %v160_v34 = vld [vmem:[%s9547_s4 + $0x198] sm:$0xff] }
 0x1e6   :  { %4729 = vmatpush1.bf16.msra.mxu1 %v7700_v11  ;;  %9916 = vst [vmem:[#allocation40_spill] sm:$0xff] %v7729_v36  ;;  %v7747_v17 = vpack.c.bf16 %v152_v42, %v150_v7  ;;  %v154_v49 = vld [vmem:[%s9547_s4 + $0x168] sm:$0xff]  ;;  %v153_v7 = vld [vmem:[%s9547_s4 + $0x160] sm:$0xff]  ;;  %v155_v42 = vld [vmem:[%s9547_s4 + $0x170] sm:$0xff] }
 0x1e7   :  { %4731 = vmatprep.subr.bf16.mxu1 %v7703_v41  ;;  %9919 = vst [vmem:[#allocation43_spill] sm:$0xff] %v7762_v19  ;;  %v7765_v10 = vpack.c.bf16 %v156_v18, %v154_v49  ;;  %v7780_v3 = vpack.c.bf16 %v155_v42, %v153_v7  ;;  %v162_v7 = vld [vmem:[%s9547_s4 + $0x1a8] sm:$0xff]  ;;  %v164_v42 = vld [vmem:[%s9547_s4 + $0x1b8] sm:$0xff]  ;;  %v161_v41 = vld [vmem:[%s9547_s4 + $0x1a0] sm:$0xff] }
 0x1e8   :  { %9918 = vst [vmem:[#allocation42_spill] sm:$0xff] %v7747_v17 }
 0x1e9   :  { %9920 = vst [vmem:[#allocation44_spill] sm:$0xff] %v7765_v10  ;;  %9921 = vst [vmem:[#allocation45_spill] sm:$0xff] %v7780_v3  ;;  %v7782_v49 = vpop.eup %6130 }
 0x1ea   :  { %4733 = vmatpush1.bf16.msra.mxu1 %v7726_v20 }
 0x1eb   :  { %4735 = vmatprep.subr.bf16.mxu1 %v7729_v36  ;;  %v158_v36 = vld [vmem:[%s9547_s4 + $0x188] sm:$0xff] }
 0x1ec   :  { %v7785_v18 = vpack.c.bf16 %v160_v34, %v158_v36  ;;  %v7802_v36 = vmax.f32 %v6127_v21, %v7782_v49  ;;  %v163_v21 = vld [vmem:[%s9547_s4 + $0x1b0] sm:$0xff] }
 0x1ee   :  { %4737 = vmatpush1.bf16.msra.mxu1 %v7744_v53  ;;  %9922 = vst [vmem:[#allocation46_spill] sm:$0xff] %v7785_v18  ;;  %v159_v53 = vld [vmem:[%s9547_s4 + $0x190] sm:$0xff]  ;;  %9923 = vst [vmem:[#allocation47_spill] sm:$0xff] %v7802_v36 }
 0x1ef   :  { %4739 = vmatprep.subr.bf16.mxu1 %v7747_v17  ;;  %v157_v17 = vld [vmem:[%s9547_s4 + $0x180] sm:$0xff]  ;;  %v7793_v20 = vpop.eup %6132 }
 0x1f0   :  { %v7805_v34 = vmax.f32 %v6129_v51, %v7793_v20  ;;  %v166_v51 = vld [vmem:[%s9547_s4 + $0x1c8] sm:$0xff] }
 0x1f2   :  { %4741 = vmatpush1.bf16.msra.mxu1 %v7762_v19  ;;  %9924 = vst [vmem:[#allocation48_spill] sm:$0xff] %v7805_v34  ;;  %v7811_v19 = vpack.c.bf16 %v164_v42, %v162_v7  ;;  %v165_v42 = vld [vmem:[%s9547_s4 + $0x1c0] sm:$0xff]  ;;  %v1574_v34 = vsel %vm624_vm2, %v7243_v15, %v9878_v46 }
 0x1f3   :  { %4743 = vmatprep.subr.bf16.mxu1 %v7765_v10  ;;  %v7808_v10 = vpack.c.bf16 %v159_v53, %v157_v17  ;;  %v168_v53 = vld [vmem:[%s9547_s4 + $0x1d8] sm:$0xff]  ;;  %v7826_v17 = vpack.c.bf16 %v163_v21, %v161_v41 }
 0x1f4   :  { %9926 = vst [vmem:[#allocation50_spill] sm:$0xff] %v7811_v19  ;;  %v7829_v7 = vpack.c.bf16 %v168_v53, %v166_v51  ;;  %v172_v41 = vld [vmem:[%s9547_s4 + $0x1f8] sm:$0xff]  ;;  %v169_v53 = vld [vmem:[%s9547_s4 + $0x1e0] sm:$0xff] }
 0x1f5   :  { %9925 = vst [vmem:[#allocation49_spill] sm:$0xff] %v7808_v10  ;;  %9927 = vst [vmem:[#allocation51_spill] sm:$0xff] %v7826_v17 }
 0x1f6   :  { %4745 = vmatpush1.bf16.msra.mxu1 %v7780_v3  ;;  %9928 = vst [vmem:[#allocation52_spill] sm:$0xff] %v7829_v7  ;;  %v170_v3 = vld [vmem:[%s9547_s4 + $0x1e8] sm:$0xff] }
 0x1f7   :  { %4747 = vmatprep.subr.bf16.mxu1 %v7785_v18  ;;  %v167_v18 = vld [vmem:[%s9547_s4 + $0x1d0] sm:$0xff]  ;;  %v7847_v51 = vpack.c.bf16 %v172_v41, %v170_v3  ;;  %v174_v3 = vld [vmem:[%s9547_s4 + $0x208] sm:$0xff] }
 0x1f8   :  { %v7844_v21 = vpack.c.bf16 %v167_v18, %v165_v42  ;;  %v176_v18 = vld [vmem:[%s9547_s4 + $0x218] sm:$0xff] }
 0x1f9   :  { %9930 = vst [vmem:[#allocation54_spill] sm:$0xff] %v7847_v51  ;;  %v7866_v42 = vpack.c.bf16 %v176_v18, %v174_v3 }
 0x1fa   :  { %4749 = vmatpush1.bf16.msra.mxu1 %v7808_v10  ;;  %9929 = vst [vmem:[#allocation53_spill] sm:$0xff] %v7844_v21 }
 0x1fb   :  { %4751 = vmatprep.subr.bf16.mxu1 %v7811_v19  ;;  %v171_v19 = vld [vmem:[%s9547_s4 + $0x1f0] sm:$0xff]  ;;  %9932 = vst [vmem:[#allocation56_spill] sm:$0xff] %v7866_v42 }
 0x1fc   :  { %v7856_v10 = vpack.c.bf16 %v171_v19, %v169_v53 }
 0x1fe   :  { %4753 = vmatpush1.bf16.msra.mxu1 %v7826_v17  ;;  %9931 = vst [vmem:[#allocation55_spill] sm:$0xff] %v7856_v10 }
 0x1ff   :  { %4755 = vmatprep.subr.bf16.mxu1 %v7829_v7  ;;  %v1347_v7 = vsel %vm375_vm0, %v7417_v0, %v7427_v43 }
 0x202   :  { %4757 = vmatpush1.bf16.msra.mxu1 %v7844_v21  ;;  %v5977_v21 = vpop.permute.xlu0 %5976 }
 0x203   :  { %4759 = vmatprep.subr.bf16.mxu1 %v7847_v51  ;;  %v5978_v11 = vunpack.i.l.bf16 %v5977_v21 }
 0x206   :  { %4761 = vmatpush1.bf16.msra.mxu1 %v7856_v10  ;;  %v5979_v10 = vunpack.i.h.bf16 %v5977_v21 }
 0x207   :  { %4763 = vmatprep.subr.bf16.mxu1 %v7866_v42  ;;  %v5987_v42 = vpop.permute.xlu0 %5986 }
 0x208   :  { %v1376_v36 = vsel %vm417_vm7, %v1347_v7, %v5979_v10  ;;  %v1588_v10 = vsel %vm624_vm2, %v9881_v9, %v9880_v6 }
 0x216   :  { %v1199_v41 = vpop.f32.mrb[6].mxu0 }
 0x217   :  { %v1200_v19 = vadd.f32 %v1199_v41, %v7355_v2  ;;  %v1201_v53 = vpop.f32.mrb[7].mxu0  ;;  %v1362_v41 = vsel %vm375_vm0, %v7130_v48, %v7127_v8  ;;  %v1804_v8 = vsel %vm852_vm5, %v7254_v40, %v9882_v60 }
 0x218   :  { %v1202_v51 = vadd.f32 %v1201_v53, %v7362_v22  ;;  %v5988_v22 = vunpack.i.l.bf16 %v5987_v42 }
 0x219   :  { %6134 = vtanh.f32 %v1200_v19  ;;  %v1810_v19 = vsel %vm852_vm5, %v6762_v31, %v6759_v30  ;;  %v1379_v31 = vsel %vm417_vm7, %v1362_v41, %v5978_v11 }
 0x21a   :  { %6136 = vtanh.f32 %v1202_v51  ;;  %v1796_v51 = vsel %vm852_vm5, %v7077_v23, %v7228_v63  ;;  %v5989_v63 = vunpack.i.h.bf16 %v5987_v42  ;;  %v1818_v42 = vsel %vm852_vm5, %v9884_v1, %v9883_v13 }
 0x21b   :  { %v5972_v17 = vpop.permute.xlu1 %5971  ;;  %v6030_v60 = vpack.i.bf16 %v1804_v8, %v1818_v42  ;;  %v6010_v1 = vpack.i.bf16 %v7510_v59, %v7506_v56  ;;  %v173_v42 = vld [vmem:[%s9547_s4 + $0x200] sm:$0xff] }
 0x21c   :  { %v5974_v3 = vunpack.i.h.bf16 %v5972_v17  ;;  %v5973_v18 = vunpack.i.l.bf16 %v5972_v17  ;;  %v7884_v53 = vpop.f32.mrb[6].mxu1  ;;  %v177_v59 = vld [vmem:[%s9547_s4 + $0x220] sm:$0xff] }
 0x21d   :  { %v7894_v7 = vpop.f32.mrb[7].mxu1 }
 0x21e   :  { %v1933_v21 = vmax.f32 %v7487_v58, %v5974_v3  ;;  %v1929_v17 = vsel %vm1915_vm11, %v5973_v18, %v5974_v3  ;;  %v6020_v3 = vpack.i.bf16 %v1796_v51, %v1810_v19  ;;  %v6000_v18 = vpack.i.bf16 %v1574_v34, %v1588_v10  ;;  %v9934_v34 = vld [vmem:[#allocation7_spill] sm:$0xff]  ;;  %v9936_v10 = vld [vmem:[#allocation9_spill] sm:$0xff] }
 0x21f   :  { %v5982_v23 = vpop.permute.xlu1 %5981  ;;  %v1932_v30 = vmax.f32 %v7484_v44, %v1929_v17  ;;  %v9935_v17 = vld [vmem:[#allocation8_spill] sm:$0xff] }
 0x220   :  { %v5984_v58 = vunpack.i.h.bf16 %v5982_v23  ;;  %v5983_v48 = vunpack.i.l.bf16 %v5982_v23  ;;  %2068 = vrot.lane.b32.xlu1 %v1933_v21, %s6216_s23 }
 0x221   :  { %2066 = vrot.lane.b32.xlu0 %v1932_v30, %s6216_s23 }
 0x222   :  { %v1380_v44 = vsel %vm419_vm8, %v1379_v31, %v5983_v48  ;;  %v1377_v11 = vsel %vm419_vm8, %v1376_v36, %v5984_v58  ;;  %v6015_v48 = vpack.i.bf16 %v7722_v61, %v7712_v24 }
 0x223   :  { %v7908_v41 = vpop.eup %6134  ;;  %v1381_v21 = vsel %vm421_vm9, %v1380_v44, %v5988_v22  ;;  %v1378_v51 = vsel %vm421_vm9, %v1377_v11, %v5989_v63  ;;  %v1800_v22 = vsel %vm852_vm5, %v7243_v15, %v9878_v46  ;;  %v9937_v46 = vld [vmem:[#allocation10_spill] sm:$0xff]  ;;  %v9940_v15 = vld [vmem:[#allocation5_spill] sm:$0xff]  ;;  %v5992_v30 = vpop.permute.xlu1 %5991 }
 0x224   :  { %v7912_v19 = vpop.eup %6136  ;;  %1446 = vmatprep.mubr.f32.mxu0 %v1381_v21  ;;  %6021 = vrot.lane.b32.xlu1 %v6020_v3, %s6214_s13  ;;  %v7917_v40 = vmax.f32 %v7782_v49, %v7908_v41  ;;  %v9933_v49 = vld [vmem:[#allocation6_spill] sm:$0xff]  ;;  %v5994_v3 = vunpack.i.h.bf16 %v5992_v30 }
 0x225   :  { %1447 = vmatmul.mubr.f32.vlgmr.msra.gmra.mrb[8].mxu0 %v1378_v51  ;;  %6001 = vrot.lane.b32.xlu0 %v6000_v18, %s6216_s23  ;;  %v7922_v13 = vmax.f32 %v7793_v20, %v7912_v19  ;;  %v1814_v20 = vsel %vm852_vm5, %v9881_v9, %v9880_v6  ;;  %v9938_v6 = vld [vmem:[#allocation19_spill] sm:$0xff]  ;;  %v9939_v9 = vld [vmem:[#allocation21_spill] sm:$0xff]  ;;  %v5993_v18 = vunpack.i.l.bf16 %v5992_v30 }
 0x226   :  { %4509 = vmatpush1.bf16.msra.mxu0 %v6388_v38  ;;  %v6025_v36 = vpack.i.bf16 %v1800_v22, %v1814_v20  ;;  %v175_v44 = vld [vmem:[%s9547_s4 + $0x210] sm:$0xff]  ;;  %v178_v21 = vld [vmem:[%s9547_s4 + $0x228] sm:$0xff]  ;;  %v180_v51 = vld [vmem:[%s9547_s4 + $0x238] sm:$0xff] }
 0x227   :  { %4511 = vmatprep.subr.bf16.mxu0 %v6390_v39  ;;  %v6040_v8 = vpack.i.bf16 %v7922_v13, %v7917_v40  ;;  %v5997_v31 = vpop.permute.xlu1 %5996  ;;  %v1916_v11 = vsel %vm1915_vm11, %v5994_v3, %v5993_v18  ;;  %v7991_v22 = vpack.c.bf16 %v175_v44, %v173_v42  ;;  %v9945_v20 = vld [vmem:[#allocation15_spill] sm:$0xff]  ;;  %v7998_v3 = vpack.c.bf16 %v180_v51, %v178_v21 }
 0x228   :  { %6031 = vrot.lane.b32.xlu1 %v6030_v60, %s6215_s14  ;;  %v9943_v60 = vld [vmem:[#allocation16_spill] sm:$0xff]  ;;  %v5998_v42 = vunpack.i.l.bf16 %v5997_v31  ;;  %v1340_v44 = vadd.f32 %v7884_v53, %v7355_v2  ;;  %v1568_v51 = vsel %vm624_vm2, %v7417_v0, %v7427_v43  ;;  %v9949_v53 = vld [vmem:[#allocation22_spill] sm:$0xff] }
 0x229   :  { %6011 = vrot.lane.b32.xlu0 %v6010_v1, %s6217_s30  ;;  %v1920_v1 = vmax.f32 %v9943_v60, %v5993_v18  ;;  %9944 = vst [vmem:[#allocation8_spill] sm:$0xff] %v7991_v22  ;;  %9946 = vst [vmem:[#allocation9_spill] sm:$0xff] %v7998_v3  ;;  %v179_v18 = vld [vmem:[%s9547_s4 + $0x230] sm:$0xff]  ;;  %v5999_v60 = vunpack.i.h.bf16 %v5997_v31  ;;  %v184_v21 = vld [vmem:[%s9547_s4 + $0x258] sm:$0xff] }
 0x22a   :  { %4513 = vmatpush1.bf16.msra.mxu0 %v6413_v47  ;;  %v8025_v2 = vpack.c.bf16 %v179_v18, %v177_v59  ;;  %v181_v43 = vld [vmem:[%s9547_s4 + $0x240] sm:$0xff]  ;;  %v188_v59 = vld [vmem:[%s9547_s4 + $0x278] sm:$0xff]  ;;  %6138 = vtanh.f32 %v1340_v44 }
 0x22b   :  { %4515 = vmatprep.subr.bf16.mxu0 %v9933_v49  ;;  %v6007_v58 = vpop.permute.xlu1 %6006 }
 0x22c   :  { %6041 = vrot.lane.b32.xlu1 %v6040_v8, %s6217_s30  ;;  %9950 = vst [vmem:[#allocation10_spill] sm:$0xff] %v8025_v2 }
 0x22d   :  { %6016 = vrot.lane.b32.xlu0 %v6015_v48, %s6217_s30 }
 0x22e   :  { %4517 = vmatpush1.bf16.msra.mxu0 %v9934_v34 }
 0x22f   :  { %4519 = vmatprep.subr.bf16.mxu0 %v9935_v17 }
 0x231   :  { %6026 = vrot.lane.b32.xlu0 %v6025_v36, %s6216_s23  ;;  %v1919_v36 = vmax.f32 %v9945_v20, %v1916_v11  ;;  %v182_v11 = vld [vmem:[%s9547_s4 + $0x248] sm:$0xff]  ;;  %v1342_v20 = vadd.f32 %v7894_v7, %v9949_v53  ;;  %v183_v7 = vld [vmem:[%s9547_s4 + $0x250] sm:$0xff] }
 0x232   :  { %4521 = vmatpush1.bf16.msra.mxu0 %v9936_v10  ;;  %v8052_v53 = vpack.c.bf16 %v183_v7, %v181_v43 }
 0x233   :  { %4523 = vmatprep.subr.bf16.mxu0 %v9937_v46  ;;  %6140 = vtanh.f32 %v1342_v20 }
 0x234   :  { %9952 = vst [vmem:[#allocation16_spill] sm:$0xff] %v8052_v53 }
 0x236   :  { %4525 = vmatpush1.bf16.msra.mxu0 %v6503_v28 }
 0x237   :  { %4527 = vmatprep.subr.bf16.mxu0 %v6513_v32 }
 0x23a   :  { %4529 = vmatpush1.bf16.msra.mxu0 %v6563_v50 }
 0x23b   :  { %4531 = vmatprep.subr.bf16.mxu0 %v6570_v52 }
 0x23e   :  { %4533 = vmatpush1.bf16.msra.mxu0 %v6602_v14 }
 0x23f   :  { %4535 = vmatprep.subr.bf16.mxu0 %v6606_v16 }
 0x242   :  { %4537 = vmatpush1.bf16.msra.mxu0 %v6636_v27 }
 0x243   :  { %4539 = vmatprep.subr.bf16.mxu0 %v6640_v29 }
 0x246   :  { %4541 = vmatpush1.bf16.msra.mxu0 %v6658_v33 }
 0x247   :  { %4543 = vmatprep.subr.bf16.mxu0 %v6662_v35 }
 0x24a   :  { %4545 = vmatpush1.bf16.msra.mxu0 %v6680_v54 }
 0x24b   :  { %4547 = vmatprep.subr.bf16.mxu0 %v6684_v55 }
 0x24e   :  { %4549 = vmatpush1.bf16.msra.mxu0 %v6700_v62 }
 0x24f   :  { %4551 = vmatprep.subr.bf16.mxu0 %v9885_v57 }
 0x252   :  { %4553 = vmatpush1.bf16.msra.mxu0 %v6720_v4 }
 0x253   :  { %4555 = vmatprep.subr.bf16.mxu0 %v6724_v5 }
 0x256   :  { %4557 = vmatpush1.bf16.msra.mxu0 %v6740_v25 }
 0x257   :  { %4559 = vmatprep.subr.bf16.mxu0 %v6744_v26 }
 0x25a   :  { %4561 = vmatpush1.bf16.msra.mxu0 %v6766_v37 }
 0x25b   :  { %4563 = vmatprep.subr.bf16.mxu0 %v6772_v45 }
 0x25c   :  { %v7973_v23 = vpop.f32.mrb[8].mxu1 }
 0x25d   :  { %9941 = vst [vmem:[#allocation6_spill] sm:$0xff] %v7973_v23  ;;  %v7975_v63 = vpop.f32.mrb[9].mxu1 }
 0x25e   :  { %4565 = vmatpush1.bf16.msra.mxu0 %v6791_v12  ;;  %9942 = vst [vmem:[#allocation7_spill] sm:$0xff] %v7975_v63  ;;  %v6008_v63 = vunpack.i.l.bf16 %v6007_v58  ;;  %v8031_v12 = vpack.c.bf16 %v184_v21, %v182_v11 }
 0x25f   :  { %4567 = vmatprep.subr.bf16.mxu0 %v9938_v6 }
 0x260   :  { %9951 = vst [vmem:[#allocation5_spill] sm:$0xff] %v8031_v12 }
 0x262   :  { %4569 = vmatpush1.bf16.msra.mxu0 %v9939_v9 }
 0x263   :  { %4635 = vmatprep.subr.bf16.mxu0 %v9940_v15 }
 0x292   :  { %v2069_v8 = vpop.permute.xlu1 %2068 }
 0x293   :  { %v2067_v48 = vpop.permute.xlu0 %2066 }
 0x294   :  { %v7995_v15 = vsel %vm419_vm8, %v2067_v48, %v2069_v8  ;;  %v2082_v30 = vsel %vm419_vm8, %v1920_v1, %v2067_v48  ;;  %v9947_v1 = vld [vmem:[#allocation20_spill] sm:$0xff] }
 0x295   :  { %2159 = vmatprep.mubr.f32.mxu1 %v2082_v30  ;;  %v9948_v8 = vld [vmem:[#allocation12_spill] sm:$0xff]  ;;  %v6009_v30 = vunpack.i.h.bf16 %v6007_v58  ;;  %v186_v58 = vld [vmem:[%s9547_s4 + $0x268] sm:$0xff] }
 0x296   :  { %v1582_v31 = vsel %vm624_vm2, %v9948_v8, %v9947_v1  ;;  %v8020_v48 = vpop.permute.xlu1 %6021  ;;  %2160 = vmatmul.mubr.f32.vlgmr.msra.gmra.mrb[12].mxu1 %v1919_v36  ;;  %v1596_v36 = vsel %vm417_vm7, %v1568_v51, %v5999_v60  ;;  %v8055_v51 = vpack.c.bf16 %v188_v59, %v186_v58  ;;  %v190_v59 = vld [vmem:[%s9547_s4 + $0x288] sm:$0xff] }
 0x297   :  { %4765 = vmatpush1.bf16.msra.mxu1 %v7991_v22  ;;  %v6002_v23 = vpop.permute.xlu0 %6001 }
 0x298   :  { %v6004_v9 = vunpack.i.h.bf16 %v6002_v23  ;;  %v6003_v6 = vunpack.i.l.bf16 %v6002_v23  ;;  %4767 = vmatprep.subr.bf16.mxu1 %v7998_v3  ;;  %v1599_v23 = vsel %vm417_vm7, %v1582_v31, %v5998_v42  ;;  %9953 = vst [vmem:[#allocation15_spill] sm:$0xff] %v8055_v51 }
 0x29a   :  { %v1597_v18 = vsel %vm419_vm8, %v1596_v36, %v6004_v9  ;;  %v1600_v11 = vsel %vm419_vm8, %v1599_v23, %v6003_v6  ;;  %v8046_v21 = vpop.permute.xlu1 %6031  ;;  %v185_v9 = vld [vmem:[%s9547_s4 + $0x260] sm:$0xff]  ;;  %v187_v6 = vld [vmem:[%s9547_s4 + $0x270] sm:$0xff]  ;;  %v6023_v36 = vunpack.i.l.bf16 %v8020_v48 }
 0x29b   :  { %4769 = vmatpush1.bf16.msra.mxu1 %v8025_v2  ;;  %v8049_v3 = vpop.permute.xlu0 %6011  ;;  %v1601_v22 = vsel %vm421_vm9, %v1600_v11, %v6008_v63  ;;  %v1598_v60 = vsel %vm421_vm9, %v1597_v18, %v6009_v30  ;;  %v8073_v58 = vpack.c.bf16 %v187_v6, %v185_v9  ;;  %v1808_v9 = vsel %vm852_vm5, %v9948_v8, %v9947_v1 }
 0x29c   :  { %v9676_v42 = vunpack.i.h.bf16 %v8049_v3  ;;  %v6013_v44 = vunpack.i.l.bf16 %v8049_v3  ;;  %4771 = vmatprep.subr.bf16.mxu1 %v8031_v12  ;;  %v1605_v63 = vrot.slane %v1601_v22, 2  ;;  %v1604_v31 = vrot.slane %v1598_v60, 2  ;;  %v8066_v20 = vpop.f32.mrb[10].mxu1  ;;  %v192_v22 = vld [vmem:[%s9547_s4 + $0x298] sm:$0xff] }
 0x29d   :  { %9954 = vst [vmem:[#allocation20_spill] sm:$0xff] %v8066_v20  ;;  %v8068_v30 = vpop.f32.mrb[11].mxu1  ;;  %9956 = vst [vmem:[#allocation57_spill] sm:$0xff] %v8073_v58  ;;  %v8100_v1 = vpack.c.bf16 %v192_v22, %v190_v59  ;;  %v6033_v59 = vunpack.i.l.bf16 %v8046_v21  ;;  %v193_v22 = vld [vmem:[%s9547_s4 + $0x2a0] sm:$0xff]  ;;  %v10006_v20 = vld [vmem:[#allocation30_spill] sm:$0xff] }
 0x29e   :  { %9955 = vst [vmem:[#allocation12_spill] sm:$0xff] %v8068_v30  ;;  %v6042_v43 = vpop.permute.xlu1 %6041  ;;  %1672 = vmatprep.mubr.f32.mxu0 %v1605_v63  ;;  %v1942_v7 = vsel %vm1915_vm11, %v6013_v44, %v9676_v42  ;;  %v189_v63 = vld [vmem:[%s9547_s4 + $0x280] sm:$0xff]  ;;  %v8111_v42 = vpop.eup %6138  ;;  %v267_v30 = vld [vmem:[%s9547_s4 + $0x4f0] sm:$0xff] }
 0x29f   :  { %v6044_v23 = vunpack.i.h.bf16 %v6042_v43  ;;  %v6043_v18 = vunpack.i.l.bf16 %v6042_v43  ;;  %4773 = vmatpush1.bf16.msra.mxu1 %v8052_v53  ;;  %v6017_v11 = vpop.permute.xlu0 %6016  ;;  %1673 = vmatmul.mubr.f32.vlgmr.msra.gmra.mrb[10].mxu0 %v1604_v31  ;;  %v8084_v60 = vmax.f32 %v7506_v56, %v1942_v7  ;;  %v191_v31 = vld [vmem:[%s9547_s4 + $0x290] sm:$0xff]  ;;  %9957 = vst [vmem:[#allocation58_spill] sm:$0xff] %v8100_v1  ;;  %v194_v7 = vld [vmem:[%s9547_s4 + $0x2a8] sm:$0xff] }
 0x2a0   :  { %v6019_v6 = vunpack.i.h.bf16 %v6017_v11  ;;  %v6018_v44 = vunpack.i.l.bf16 %v6017_v11  ;;  %4637 = vmatpush1.bf16.msra.mxu0 %v6388_v38  ;;  %4775 = vmatprep.subr.bf16.mxu1 %v8055_v51  ;;  %v196_v11 = vld [vmem:[%s9547_s4 + $0x2b8] sm:$0xff] }
 0x2a1   :  { %2230 = vmatprep.mubr.f32.mxu1 %v8084_v60  ;;  %4639 = vmatprep.subr.bf16.mxu0 %v6390_v39  ;;  %v1981_v56 = vsel %vm1915_vm11, %v6043_v18, %v6044_v23  ;;  %v1825_v39 = vsel %vm417_vm7, %v1808_v9, %v6023_v36  ;;  %v195_v18 = vld [vmem:[%s9547_s4 + $0x2b0] sm:$0xff]  ;;  %v8134_v9 = vpack.c.bf16 %v196_v11, %v194_v7 }
 0x2a2   :  { %v1959_v38 = vmax.f32 %v7722_v61, %v6019_v6  ;;  %v1955_v8 = vsel %vm1915_vm11, %v6018_v44, %v6019_v6  ;;  %v1984_v43 = vmax.f32 %v7917_v40, %v1981_v56  ;;  %v8116_v61 = vpack.c.bf16 %v191_v31, %v189_v63  ;;  %v8127_v44 = vpop.eup %6140  ;;  %v198_v63 = vld [vmem:[%s9547_s4 + $0x2c8] sm:$0xff]  ;;  %v200_v31 = vld [vmem:[%s9547_s4 + $0x2d8] sm:$0xff] }
 0x2a3   :  { %4777 = vmatpush1.bf16.msra.mxu1 %v8073_v58  ;;  %v1958_v40 = vmax.f32 %v7712_v24, %v1955_v8  ;;  %v8125_v6 = vpop.permute.xlu0 %6026  ;;  %9959 = vst [vmem:[#allocation60_spill] sm:$0xff] %v8134_v9  ;;  %v8143_v56 = vpack.c.bf16 %v195_v18, %v193_v22  ;;  %v9965_v11 = vld [vmem:[#allocation47_spill] sm:$0xff]  ;;  %v201_v18 = vld [vmem:[%s9547_s4 + $0x2e0] sm:$0xff] }
 0x2a4   :  { %9958 = vst [vmem:[#allocation59_spill] sm:$0xff] %v8116_v61  ;;  %4641 = vmatpush1.bf16.msra.mxu0 %v6413_v47  ;;  %2312 = vrot.lane.b32.xlu1 %v1984_v43, %s6216_s23  ;;  %v6028_v36 = vunpack.i.l.bf16 %v8125_v6  ;;  %v1985_v47 = vmax.f32 %v7922_v13, %v6044_v23  ;;  %v8159_v13 = vpack.c.bf16 %v200_v31, %v198_v63  ;;  %v197_v23 = vld [vmem:[%s9547_s4 + $0x2c0] sm:$0xff] }
 0x2a5   :  { %4779 = vmatprep.subr.bf16.mxu1 %v8100_v1  ;;  %4643 = vmatprep.subr.bf16.mxu0 %v9933_v49  ;;  %v6035_v24 = vpack.i.bf16 %v1959_v38, %v1958_v40  ;;  %9960 = vst [vmem:[#allocation61_spill] sm:$0xff] %v8143_v56  ;;  %v8150_v49 = vmax.f32 %v7908_v41, %v8111_v42  ;;  %v199_v41 = vld [vmem:[%s9547_s4 + $0x2d0] sm:$0xff] }
 0x2a6   :  { %v1826_v8 = vsel %vm419_vm8, %v1825_v39, %v6028_v36  ;;  %v8154_v38 = vmax.f32 %v7912_v19, %v8127_v44  ;;  %9963 = vst [vmem:[#allocation64_spill] sm:$0xff] %v8159_v13  ;;  %v9964_v19 = vld [vmem:[#allocation48_spill] sm:$0xff]  ;;  %v202_v39 = vld [vmem:[%s9547_s4 + $0x2e8] sm:$0xff]  ;;  %v8179_v40 = vpack.c.bf16 %v199_v41, %v197_v23  ;;  %v203_v36 = vld [vmem:[%s9547_s4 + $0x2f0] sm:$0xff] }
 0x2a7   :  { %4781 = vmatpush1.bf16.msra.mxu1 %v8116_v61  ;;  %6036 = vrot.lane.b32.xlu0 %v6035_v24, %s6216_s23  ;;  %9961 = vst [vmem:[#allocation62_spill] sm:$0xff] %v8150_v49  ;;  %v1827_v43 = vsel %vm421_vm9, %v1826_v8, %v6033_v59  ;;  %v204_v59 = vld [vmem:[%s9547_s4 + $0x2f8] sm:$0xff]  ;;  %v206_v24 = vld [vmem:[%s9547_s4 + $0x308] sm:$0xff]  ;;  %v8202_v63 = vpack.c.bf16 %v203_v36, %v201_v18  ;;  %v211_v41 = vld [vmem:[%s9547_s4 + $0x330] sm:$0xff] }
 0x2a8   :  { %9962 = vst [vmem:[#allocation63_spill] sm:$0xff] %v8154_v38  ;;  %4645 = vmatpush1.bf16.msra.mxu0 %v9934_v34  ;;  %2314 = vrot.lane.b32.xlu1 %v1985_v47, %s6216_s23  ;;  %v1831_v7 = vrot.slane %v1827_v43, 4  ;;  %v6045_v34 = vpack.i.bf16 %v9965_v11, %v9964_v19  ;;  %9966 = vst [vmem:[#allocation48_spill] sm:$0xff] %v8179_v40  ;;  %v8185_v22 = vpack.c.bf16 %v204_v59, %v202_v39  ;;  %v207_v47 = vld [vmem:[%s9547_s4 + $0x310] sm:$0xff]  ;;  %v210_v8 = vld [vmem:[%s9547_s4 + $0x328] sm:$0xff] }
 0x2a9   :  { %4783 = vmatprep.subr.bf16.mxu1 %v8134_v9  ;;  %4647 = vmatprep.subr.bf16.mxu0 %v9935_v17  ;;  %v6050_v17 = vpack.i.bf16 %v8154_v38, %v8150_v49  ;;  %9968 = vst [vmem:[#allocation65_spill] sm:$0xff] %v8202_v63  ;;  %v215_v59 = vld [vmem:[%s9547_s4 + $0x350] sm:$0xff]  ;;  %v10002_v38 = vld [vmem:[#allocation28_spill] sm:$0xff] }
 0x2aa   :  { %1898 = vmatprep.mubr.f32.mxu0 %v1831_v7  ;;  %9967 = vst [vmem:[#allocation47_spill] sm:$0xff] %v8185_v22  ;;  %v214_v7 = vld [vmem:[%s9547_s4 + $0x348] sm:$0xff] }
 0x2ab   :  { %4785 = vmatpush1.bf16.msra.mxu1 %v8143_v56  ;;  %6046 = vrot.lane.b32.xlu0 %v6045_v34, %s6217_s30 }
 0x2ac   :  { %4649 = vmatpush1.bf16.msra.mxu0 %v9936_v10  ;;  %4787 = vmatprep.subr.bf16.mxu1 %v8159_v13  ;;  %v208_v10 = vld [vmem:[%s9547_s4 + $0x318] sm:$0xff] }
 0x2ad   :  { %4651 = vmatprep.subr.bf16.mxu0 %v9937_v46  ;;  %v8206_v31 = vpack.c.bf16 %v208_v10, %v206_v24  ;;  %v205_v46 = vld [vmem:[%s9547_s4 + $0x300] sm:$0xff]  ;;  %v219_v24 = vld [vmem:[%s9547_s4 + $0x370] sm:$0xff]  ;;  %v222_v10 = vld [vmem:[%s9547_s4 + $0x388] sm:$0xff] }
 0x2ae   :  { %v8222_v43 = vpack.c.bf16 %v207_v47, %v205_v46 }
 0x2af   :  { %4789 = vmatpush1.bf16.msra.mxu1 %v8179_v40  ;;  %6051 = vrot.lane.b32.xlu0 %v6050_v17, %s6217_s30  ;;  %9969 = vst [vmem:[#allocation66_spill] sm:$0xff] %v8206_v31  ;;  %v218_v17 = vld [vmem:[%s9547_s4 + $0x368] sm:$0xff] }
 0x2b0   :  { %4653 = vmatpush1.bf16.msra.mxu0 %v6503_v28  ;;  %4791 = vmatprep.subr.bf16.mxu1 %v8185_v22  ;;  %v212_v28 = vld [vmem:[%s9547_s4 + $0x338] sm:$0xff]  ;;  %9970 = vst [vmem:[#allocation67_spill] sm:$0xff] %v8222_v43 }
 0x2b1   :  { %4655 = vmatprep.subr.bf16.mxu0 %v6513_v32  ;;  %v8226_v23 = vpack.c.bf16 %v212_v28, %v210_v8  ;;  %v209_v32 = vld [vmem:[%s9547_s4 + $0x320] sm:$0xff]  ;;  %v223_v8 = vld [vmem:[%s9547_s4 + $0x390] sm:$0xff]  ;;  %v226_v28 = vld [vmem:[%s9547_s4 + $0x3a8] sm:$0xff] }
 0x2b2   :  { %v8242_v34 = vpack.c.bf16 %v211_v41, %v209_v32 }
 0x2b3   :  { %4793 = vmatpush1.bf16.msra.mxu1 %v8202_v63 }
 0x2b4   :  { %4657 = vmatpush1.bf16.msra.mxu0 %v6563_v50  ;;  %4795 = vmatprep.subr.bf16.mxu1 %v8206_v31  ;;  %v216_v50 = vld [vmem:[%s9547_s4 + $0x358] sm:$0xff] }
 0x2b5   :  { %4659 = vmatprep.subr.bf16.mxu0 %v6570_v52  ;;  %v8246_v39 = vpack.c.bf16 %v216_v50, %v214_v7  ;;  %v213_v52 = vld [vmem:[%s9547_s4 + $0x340] sm:$0xff]  ;;  %v227_v7 = vld [vmem:[%s9547_s4 + $0x3b0] sm:$0xff]  ;;  %v230_v50 = vld [vmem:[%s9547_s4 + $0x3c8] sm:$0xff] }
 0x2b6   :  { %v8262_v18 = vpack.c.bf16 %v215_v59, %v213_v52 }
 0x2b7   :  { %4797 = vmatpush1.bf16.msra.mxu1 %v8222_v43 }
 0x2b8   :  { %4661 = vmatpush1.bf16.msra.mxu0 %v6602_v14  ;;  %4799 = vmatprep.subr.bf16.mxu1 %v8226_v23  ;;  %v220_v14 = vld [vmem:[%s9547_s4 + $0x378] sm:$0xff] }
 0x2b9   :  { %4663 = vmatprep.subr.bf16.mxu0 %v6606_v16  ;;  %v8266_v36 = vpack.c.bf16 %v220_v14, %v218_v17  ;;  %v217_v16 = vld [vmem:[%s9547_s4 + $0x360] sm:$0xff]  ;;  %v231_v17 = vld [vmem:[%s9547_s4 + $0x3d0] sm:$0xff]  ;;  %v234_v14 = vld [vmem:[%s9547_s4 + $0x3e8] sm:$0xff] }
 0x2ba   :  { %v8282_v46 = vpack.c.bf16 %v219_v24, %v217_v16 }
 0x2bb   :  { %4801 = vmatpush1.bf16.msra.mxu1 %v8242_v34 }
 0x2bc   :  { %4665 = vmatpush1.bf16.msra.mxu0 %v6636_v27  ;;  %4803 = vmatprep.subr.bf16.mxu1 %v8246_v39  ;;  %v224_v27 = vld [vmem:[%s9547_s4 + $0x398] sm:$0xff]  ;;  %9971 = vst [vmem:[#allocation68_spill] sm:$0xff] %v8282_v46 }
 0x2bd   :  { %4667 = vmatprep.subr.bf16.mxu0 %v6640_v29  ;;  %v8286_v47 = vpack.c.bf16 %v224_v27, %v222_v10  ;;  %v221_v29 = vld [vmem:[%s9547_s4 + $0x380] sm:$0xff]  ;;  %v235_v10 = vld [vmem:[%s9547_s4 + $0x3f0] sm:$0xff]  ;;  %v238_v27 = vld [vmem:[%s9547_s4 + $0x408] sm:$0xff] }
 0x2be   :  { %v8302_v32 = vpack.c.bf16 %v223_v8, %v221_v29  ;;  %v6024_v29 = vunpack.i.h.bf16 %v8020_v48  ;;  %v6189_v8 = vld [vmem:[%s9543_s0 + $0x8] sm:$0xff]  ;;  %v237_v48 = vld [vmem:[%s9547_s4 + $0x400] sm:$0xff] }
 0x2bf   :  { %4805 = vmatpush1.bf16.msra.mxu1 %v8262_v18  ;;  %9972 = vst [vmem:[#allocation69_spill] sm:$0xff] %v8286_v47 }
 0x2c0   :  { %4669 = vmatpush1.bf16.msra.mxu0 %v6658_v33  ;;  %4807 = vmatprep.subr.bf16.mxu1 %v8266_v36  ;;  %v228_v33 = vld [vmem:[%s9547_s4 + $0x3b8] sm:$0xff]  ;;  %9973 = vst [vmem:[#allocation70_spill] sm:$0xff] %v8302_v32 }
 0x2c1   :  { %4671 = vmatprep.subr.bf16.mxu0 %v6662_v35  ;;  %v8306_v41 = vpack.c.bf16 %v228_v33, %v226_v28  ;;  %v225_v35 = vld [vmem:[%s9547_s4 + $0x3a0] sm:$0xff]  ;;  %v1794_v28 = vsel %vm852_vm5, %v7417_v0, %v6189_v8  ;;  %v6029_v0 = vunpack.i.h.bf16 %v8125_v6  ;;  %v252_v8 = vld [vmem:[%s9547_s4 + $0x478] sm:$0xff] }
 0x2c2   :  { %v8322_v52 = vpack.c.bf16 %v227_v7, %v225_v35  ;;  %v239_v35 = vld [vmem:[%s9547_s4 + $0x410] sm:$0xff]  ;;  %v244_v7 = vld [vmem:[%s9547_s4 + $0x438] sm:$0xff]  ;;  %v241_v6 = vld [vmem:[%s9547_s4 + $0x420] sm:$0xff] }
 0x2c3   :  { %4809 = vmatpush1.bf16.msra.mxu1 %v8282_v46  ;;  %9974 = vst [vmem:[#allocation71_spill] sm:$0xff] %v8306_v41 }
 0x2c4   :  { %4673 = vmatpush1.bf16.msra.mxu0 %v6680_v54  ;;  %4811 = vmatprep.subr.bf16.mxu1 %v8286_v47  ;;  %v232_v54 = vld [vmem:[%s9547_s4 + $0x3d8] sm:$0xff]  ;;  %9975 = vst [vmem:[#allocation72_spill] sm:$0xff] %v8322_v52 }
 0x2c5   :  { %4675 = vmatprep.subr.bf16.mxu0 %v6684_v55  ;;  %v8326_v59 = vpack.c.bf16 %v232_v54, %v230_v50  ;;  %v229_v55 = vld [vmem:[%s9547_s4 + $0x3c0] sm:$0xff]  ;;  %v1822_v50 = vsel %vm417_vm7, %v1794_v28, %v6024_v29  ;;  %v8390_v54 = vpack.c.bf16 %v239_v35, %v237_v48  ;;  %v250_v29 = vld [vmem:[%s9547_s4 + $0x468] sm:$0xff]  ;;  %v10042_v47 = vld [vmem:[#allocation43_spill] sm:$0xff] }
 0x2c6   :  { %v8342_v16 = vpack.c.bf16 %v231_v17, %v229_v55  ;;  %v6034_v55 = vunpack.i.h.bf16 %v8046_v21  ;;  %v243_v17 = vld [vmem:[%s9547_s4 + $0x430] sm:$0xff]  ;;  %v248_v21 = vld [vmem:[%s9547_s4 + $0x458] sm:$0xff]  ;;  %v9988_v35 = vld [vmem:[#allocation21_spill] sm:$0xff] }
 0x2c7   :  { %4813 = vmatpush1.bf16.msra.mxu1 %v8302_v32  ;;  %9976 = vst [vmem:[#allocation73_spill] sm:$0xff] %v8326_v59  ;;  %9981 = vst [vmem:[#allocation78_spill] sm:$0xff] %v8390_v54 }
 0x2c8   :  { %4677 = vmatpush1.bf16.msra.mxu0 %v6700_v62  ;;  %4815 = vmatprep.subr.bf16.mxu1 %v8306_v41  ;;  %v236_v62 = vld [vmem:[%s9547_s4 + $0x3f8] sm:$0xff]  ;;  %9977 = vst [vmem:[#allocation74_spill] sm:$0xff] %v8342_v16 }
 0x2c9   :  { %4679 = vmatprep.subr.bf16.mxu0 %v9885_v57  ;;  %v8346_v24 = vpack.c.bf16 %v236_v62, %v234_v14  ;;  %v233_v57 = vld [vmem:[%s9547_s4 + $0x3e0] sm:$0xff]  ;;  %v1823_v14 = vsel %vm419_vm8, %v1822_v50, %v6029_v0  ;;  %v8413_v62 = vpack.c.bf16 %v243_v17, %v241_v6  ;;  %v8438_v0 = vpack.c.bf16 %v252_v8, %v250_v29  ;;  %v9990_v50 = vld [vmem:[#allocation11_spill] sm:$0xff] }
 0x2ca   :  { %v256_v6 = vld [vmem:[%s9547_s4 + $0x498] sm:$0xff] }
 0x2cb   :  { %4817 = vmatpush1.bf16.msra.mxu1 %v8322_v52  ;;  %9978 = vst [vmem:[#allocation75_spill] sm:$0xff] %v8346_v24  ;;  %9983 = vst [vmem:[#allocation80_spill] sm:$0xff] %v8413_v62  ;;  %v9996_v29 = vld [vmem:[#allocation23_spill] sm:$0xff] }
 0x2cc   :  { %4681 = vmatpush1.bf16.msra.mxu0 %v6720_v4  ;;  %4819 = vmatprep.subr.bf16.mxu1 %v8326_v59  ;;  %v240_v4 = vld [vmem:[%s9547_s4 + $0x418] sm:$0xff]  ;;  %9989 = vst [vmem:[#allocation21_spill] sm:$0xff] %v8438_v0 }
 0x2cd   :  { %4683 = vmatprep.subr.bf16.mxu0 %v6724_v5  ;;  %v8368_v5 = vpack.c.bf16 %v235_v10, %v233_v57  ;;  %v8372_v33 = vpack.c.bf16 %v240_v4, %v238_v27  ;;  %v9984_v57 = vld [vmem:[#allocation18_spill] sm:$0xff]  ;;  %v1824_v10 = vsel %vm421_vm9, %v1823_v14, %v6034_v55  ;;  %v245_v27 = vld [vmem:[%s9547_s4 + $0x440] sm:$0xff]  ;;  %v9986_v4 = vld [vmem:[#allocation19_spill] sm:$0xff] }
 0x2ce   :  { %v1830_v28 = vrot.slane %v1824_v10, 4  ;;  %v254_v55 = vld [vmem:[%s9547_s4 + $0x488] sm:$0xff]  ;;  %v9992_v14 = vld [vmem:[#allocation24_spill] sm:$0xff] }
 0x2cf   :  { %4821 = vmatpush1.bf16.msra.mxu1 %v8342_v16  ;;  %9979 = vst [vmem:[#allocation76_spill] sm:$0xff] %v8368_v5  ;;  %9980 = vst [vmem:[#allocation77_spill] sm:$0xff] %v8372_v33  ;;  %v9994_v10 = vld [vmem:[#allocation25_spill] sm:$0xff]  ;;  %v291_v16 = vld [vmem:[%s9547_s4 + $0x5b0] sm:$0xff] }
 0x2d0   :  { %4685 = vmatpush1.bf16.msra.mxu0 %v6740_v25  ;;  %4823 = vmatprep.subr.bf16.mxu1 %v8346_v24  ;;  %v242_v25 = vld [vmem:[%s9547_s4 + $0x428] sm:$0xff]  ;;  %v289_v24 = vld [vmem:[%s9547_s4 + $0x5a0] sm:$0xff] }
 0x2d1   :  { %4687 = vmatprep.subr.bf16.mxu0 %v6744_v26  ;;  %v8395_v26 = vpack.c.bf16 %v244_v7, %v242_v25  ;;  %v249_v25 = vld [vmem:[%s9547_s4 + $0x460] sm:$0xff]  ;;  %v251_v7 = vld [vmem:[%s9547_s4 + $0x470] sm:$0xff]  ;;  %v8673_v41 = vpack.c.bf16 %v291_v16, %v289_v24  ;;  %v298_v24 = vld [vmem:[%s9547_s4 + $0x5e8] sm:$0xff] }
 0x2d2   :  { %v8454_v17 = vpack.c.bf16 %v251_v7, %v249_v25  ;;  %v9998_v25 = vld [vmem:[#allocation26_spill] sm:$0xff] }
 0x2d3   :  { %4825 = vmatpush1.bf16.msra.mxu1 %v8368_v5  ;;  %9982 = vst [vmem:[#allocation79_spill] sm:$0xff] %v8395_v26  ;;  %v262_v7 = vld [vmem:[%s9547_s4 + $0x4c8] sm:$0xff]  ;;  %v279_v5 = vld [vmem:[%s9547_s4 + $0x550] sm:$0xff]  ;;  %10040 = vst [vmem:[#allocation91_spill] sm:$0xff] %v8673_v41 }
 0x2d4   :  { %4689 = vmatpush1.bf16.msra.mxu0 %v6766_v37  ;;  %4827 = vmatprep.subr.bf16.mxu1 %v8372_v33  ;;  %v246_v37 = vld [vmem:[%s9547_s4 + $0x448] sm:$0xff]  ;;  %9991 = vst [vmem:[#allocation81_spill] sm:$0xff] %v8454_v17  ;;  %v277_v33 = vld [vmem:[%s9547_s4 + $0x540] sm:$0xff] }
 0x2d5   :  { %4691 = vmatprep.subr.bf16.mxu0 %v6772_v45  ;;  %v8418_v45 = vpack.c.bf16 %v248_v21, %v246_v37  ;;  %v8458_v37 = vpack.c.bf16 %v256_v6, %v254_v55  ;;  %v253_v21 = vld [vmem:[%s9547_s4 + $0x480] sm:$0xff]  ;;  %v264_v55 = vld [vmem:[%s9547_s4 + $0x4d8] sm:$0xff] }
 0x2d6   :  { %2231 = vmatmul.mubr.f32.vlgmr.msra.gmra.mrb[12].mxu1 %v7995_v15  ;;  %v247_v15 = vld [vmem:[%s9547_s4 + $0x450] sm:$0xff] }
 0x2d7   :  { %4829 = vmatpush1.bf16.msra.mxu1 %v8390_v54  ;;  %9985 = vst [vmem:[#allocation18_spill] sm:$0xff] %v8418_v45  ;;  %v8434_v48 = vpack.c.bf16 %v247_v15, %v245_v27  ;;  %9993 = vst [vmem:[#allocation24_spill] sm:$0xff] %v8458_v37  ;;  %v258_v27 = vld [vmem:[%s9547_s4 + $0x4a8] sm:$0xff]  ;;  %v260_v15 = vld [vmem:[%s9547_s4 + $0x4b8] sm:$0xff] }
 0x2d8   :  { %4693 = vmatpush1.bf16.msra.mxu0 %v9984_v57  ;;  %4831 = vmatprep.subr.bf16.mxu1 %v8395_v26  ;;  %v255_v57 = vld [vmem:[%s9547_s4 + $0x490] sm:$0xff]  ;;  %v8478_v8 = vpack.c.bf16 %v260_v15, %v258_v27  ;;  %v261_v27 = vld [vmem:[%s9547_s4 + $0x4c0] sm:$0xff] }
 0x2d9   :  { %4695 = vmatprep.subr.bf16.mxu0 %v9986_v4  ;;  %9987 = vst [vmem:[#allocation19_spill] sm:$0xff] %v8434_v48  ;;  %v8474_v4 = vpack.c.bf16 %v255_v57, %v253_v21  ;;  %v10000_v21 = vld [vmem:[#allocation27_spill] sm:$0xff]  ;;  %v8498_v57 = vpack.c.bf16 %v264_v55, %v262_v7  ;;  %v10004_v55 = vld [vmem:[#allocation29_spill] sm:$0xff] }
 0x2da   :  { %9997 = vst [vmem:[#allocation23_spill] sm:$0xff] %v8478_v8  ;;  %v263_v15 = vld [vmem:[%s9547_s4 + $0x4d0] sm:$0xff] }
 0x2db   :  { %4833 = vmatpush1.bf16.msra.mxu1 %v8413_v62  ;;  %9995 = vst [vmem:[#allocation25_spill] sm:$0xff] %v8474_v4  ;;  %10001 = vst [vmem:[#allocation27_spill] sm:$0xff] %v8498_v57  ;;  %v8514_v7 = vpack.c.bf16 %v263_v15, %v261_v27  ;;  %v270_v27 = vld [vmem:[%s9547_s4 + $0x508] sm:$0xff]  ;;  %v272_v15 = vld [vmem:[%s9547_s4 + $0x518] sm:$0xff] }
 0x2dc   :  { %4697 = vmatpush1.bf16.msra.mxu0 %v9988_v35  ;;  %4835 = vmatprep.subr.bf16.mxu1 %v8418_v45  ;;  %v259_v35 = vld [vmem:[%s9547_s4 + $0x4b0] sm:$0xff] }
 0x2dd   :  { %4891 = vmatprep.subr.bf16.mxu0 %v9990_v50  ;;  %10003 = vst [vmem:[#allocation28_spill] sm:$0xff] %v8514_v7  ;;  %v10015_v45 = vld [vmem:[#allocation6_spill] sm:$0xff]  ;;  %v10020_v54 = vld [vmem:[#allocation35_spill] sm:$0xff] }
 0x2df   :  { %1899 = vmatmul.mubr.f32.vlgmr.msra.gmra.mrb[12].mxu0 %v1830_v28  ;;  %4837 = vmatpush1.bf16.msra.mxu1 %v8434_v48  ;;  %v257_v28 = vld [vmem:[%s9547_s4 + $0x4a0] sm:$0xff]  ;;  %v10014_v48 = vld [vmem:[#allocation14_spill] sm:$0xff] }
 0x2e0   :  { %4893 = vmatpush1.bf16.msra.mxu0 %v9992_v14  ;;  %4839 = vmatprep.subr.bf16.mxu1 %v8438_v0  ;;  %v8494_v6 = vpack.c.bf16 %v259_v35, %v257_v28  ;;  %v266_v28 = vld [vmem:[%s9547_s4 + $0x4e8] sm:$0xff]  ;;  %v268_v35 = vld [vmem:[%s9547_s4 + $0x4f8] sm:$0xff]  ;;  %v275_v0 = vld [vmem:[%s9547_s4 + $0x530] sm:$0xff]  ;;  %v1562_v62 = vadd.f32 %v10015_v45, %v10014_v48 }
 0x2e1   :  { %4895 = vmatprep.subr.bf16.mxu0 %v9994_v10 }
 0x2e2   :  { %9999 = vst [vmem:[#allocation26_spill] sm:$0xff] %v8494_v6  ;;  %6142 = vtanh.f32 %v1562_v62  ;;  %v8600_v62 = vpack.c.bf16 %v279_v5, %v277_v33  ;;  %v286_v5 = vld [vmem:[%s9547_s4 + $0x588] sm:$0xff]  ;;  %v288_v33 = vld [vmem:[%s9547_s4 + $0x598] sm:$0xff] }
 0x2e3   :  { %4841 = vmatpush1.bf16.msra.mxu1 %v8454_v17  ;;  %v10010_v17 = vld [vmem:[#allocation32_spill] sm:$0xff] }
 0x2e4   :  { %4897 = vmatpush1.bf16.msra.mxu0 %v9996_v29  ;;  %4843 = vmatprep.subr.bf16.mxu1 %v8458_v37  ;;  %v271_v37 = vld [vmem:[%s9547_s4 + $0x510] sm:$0xff] }
 0x2e5   :  { %4899 = vmatprep.subr.bf16.mxu0 %v9998_v25 }
 0x2e7   :  { %4845 = vmatpush1.bf16.msra.mxu1 %v8474_v4  ;;  %v265_v4 = vld [vmem:[%s9547_s4 + $0x4e0] sm:$0xff] }
 0x2e8   :  { %4901 = vmatpush1.bf16.msra.mxu0 %v10000_v21  ;;  %4847 = vmatprep.subr.bf16.mxu1 %v8478_v8  ;;  %v8518_v8 = vpack.c.bf16 %v268_v35, %v266_v28  ;;  %v8534_v28 = vpack.c.bf16 %v267_v30, %v265_v4  ;;  %v10008_v35 = vld [vmem:[#allocation31_spill] sm:$0xff]  ;;  %v274_v30 = vld [vmem:[%s9547_s4 + $0x528] sm:$0xff] }
 0x2e9   :  { %4903 = vmatprep.subr.bf16.mxu0 %v10002_v38  ;;  %v276_v4 = vld [vmem:[%s9547_s4 + $0x538] sm:$0xff] }
 0x2ea   :  { %10005 = vst [vmem:[#allocation29_spill] sm:$0xff] %v8518_v8  ;;  %10007 = vst [vmem:[#allocation30_spill] sm:$0xff] %v8534_v28 }
 0x2eb   :  { %4849 = vmatpush1.bf16.msra.mxu1 %v8494_v6  ;;  %v269_v6 = vld [vmem:[%s9547_s4 + $0x500] sm:$0xff] }
 0x2ec   :  { %4905 = vmatpush1.bf16.msra.mxu0 %v10004_v55  ;;  %4851 = vmatprep.subr.bf16.mxu1 %v8498_v57  ;;  %v8538_v57 = vpack.c.bf16 %v272_v15, %v270_v27  ;;  %v8554_v27 = vpack.c.bf16 %v271_v37, %v269_v6  ;;  %v10012_v15 = vld [vmem:[#allocation33_spill] sm:$0xff]  ;;  %v280_v6 = vld [vmem:[%s9547_s4 + $0x558] sm:$0xff] }
 0x2ed   :  { %4907 = vmatprep.subr.bf16.mxu0 %v10006_v20  ;;  %v278_v37 = vld [vmem:[%s9547_s4 + $0x548] sm:$0xff] }
 0x2ee   :  { %10009 = vst [vmem:[#allocation31_spill] sm:$0xff] %v8538_v57  ;;  %10011 = vst [vmem:[#allocation32_spill] sm:$0xff] %v8554_v27  ;;  %v8582_v49 = vpack.c.bf16 %v280_v6, %v278_v37  ;;  %v284_v37 = vld [vmem:[%s9547_s4 + $0x578] sm:$0xff] }
 0x2ef   :  { %4853 = vmatpush1.bf16.msra.mxu1 %v8514_v7  ;;  %v273_v7 = vld [vmem:[%s9547_s4 + $0x520] sm:$0xff] }
 0x2f0   :  { %4909 = vmatpush1.bf16.msra.mxu0 %v10008_v35  ;;  %4855 = vmatprep.subr.bf16.mxu1 %v8518_v8  ;;  %v8558_v8 = vpack.c.bf16 %v276_v4, %v274_v30  ;;  %v10017_v30 = vld [vmem:[#allocation22_spill] sm:$0xff]  ;;  %v10018_v4 = vld [vmem:[#allocation7_spill] sm:$0xff]  ;;  %v8578_v26 = vpack.c.bf16 %v275_v0, %v273_v7  ;;  %v10022_v7 = vld [vmem:[#allocation36_spill] sm:$0xff] }
 0x2f1   :  { %4911 = vmatprep.subr.bf16.mxu0 %v10010_v17  ;;  %10023 = vst [vmem:[#allocation7_spill] sm:$0xff] %v8600_v62 }
 0x2f2   :  { %10013 = vst [vmem:[#allocation33_spill] sm:$0xff] %v8558_v8  ;;  %10019 = vst [vmem:[#allocation6_spill] sm:$0xff] %v8578_v26 }
 0x2f3   :  { %4857 = vmatpush1.bf16.msra.mxu1 %v8534_v28  ;;  %v10016_v28 = vld [vmem:[#allocation34_spill] sm:$0xff] }
 0x2f4   :  { %4913 = vmatpush1.bf16.msra.mxu0 %v10012_v15  ;;  %4859 = vmatprep.subr.bf16.mxu1 %v8538_v57  ;;  %v1564_v57 = vadd.f32 %v10018_v4, %v10017_v30  ;;  %10021 = vst [vmem:[#allocation34_spill] sm:$0xff] %v8582_v49 }
 0x2f5   :  { %4915 = vmatprep.subr.bf16.mxu0 %v10016_v28 }
 0x2f6   :  { %6144 = vtanh.f32 %v1564_v57  ;;  %v283_v57 = vld [vmem:[%s9547_s4 + $0x570] sm:$0xff] }
 0x2f7   :  { %4861 = vmatpush1.bf16.msra.mxu1 %v8554_v27 }
 0x2f8   :  { %4917 = vmatpush1.bf16.msra.mxu0 %v10020_v54  ;;  %v1448_v45 = vpop.f32.mrb[8].mxu0  ;;  %4863 = vmatprep.subr.bf16.mxu1 %v8558_v8  ;;  %v282_v8 = vld [vmem:[%s9547_s4 + $0x568] sm:$0xff] }
 0x2f9   :  { %v1449_v4 = vadd.f32 %v1448_v45, %v10014_v48  ;;  %v1450_v0 = vpop.f32.mrb[9].mxu0  ;;  %4919 = vmatprep.subr.bf16.mxu0 %v10022_v7  ;;  %v10024_v45 = vld [vmem:[#allocation37_spill] sm:$0xff]  ;;  %v8604_v27 = vpack.c.bf16 %v284_v37, %v282_v8  ;;  %v8624_v37 = vpack.c.bf16 %v288_v33, %v286_v5  ;;  %v8639_v5 = vpop.eup %6142 }
 0x2fa   :  { %v1451_v6 = vadd.f32 %v1450_v0, %v10017_v30  ;;  %v281_v48 = vld [vmem:[%s9547_s4 + $0x560] sm:$0xff]  ;;  %v10028_v0 = vld [vmem:[#allocation39_spill] sm:$0xff]  ;;  %10031 = vst [vmem:[#allocation84_spill] sm:$0xff] %v8639_v5 }
 0x2fb   :  { %6146 = vtanh.f32 %v1449_v4  ;;  %4865 = vmatpush1.bf16.msra.mxu1 %v8578_v26  ;;  %10025 = vst [vmem:[#allocation35_spill] sm:$0xff] %v8604_v27  ;;  %v10026_v4 = vld [vmem:[#allocation38_spill] sm:$0xff]  ;;  %v8620_v8 = vpack.c.bf16 %v283_v57, %v281_v48  ;;  %10029 = vst [vmem:[#allocation83_spill] sm:$0xff] %v8624_v37  ;;  %v10030_v26 = vld [vmem:[#allocation40_spill] sm:$0xff] }
 0x2fc   :  { %6148 = vtanh.f32 %v1451_v6  ;;  %4921 = vmatpush1.bf16.msra.mxu0 %v10024_v45  ;;  %4867 = vmatprep.subr.bf16.mxu1 %v8582_v49  ;;  %v285_v6 = vld [vmem:[%s9547_s4 + $0x580] sm:$0xff]  ;;  %v287_v49 = vld [vmem:[%s9547_s4 + $0x590] sm:$0xff]  ;;  %v290_v48 = vld [vmem:[%s9547_s4 + $0x5a8] sm:$0xff] }
 0x2fd   :  { %4923 = vmatprep.subr.bf16.mxu0 %v10026_v4  ;;  %10027 = vst [vmem:[#allocation82_spill] sm:$0xff] %v8620_v8  ;;  %v292_v57 = vld [vmem:[%s9547_s4 + $0x5b8] sm:$0xff]  ;;  %v8642_v33 = vpack.c.bf16 %v287_v49, %v285_v6  ;;  %v294_v49 = vld [vmem:[%s9547_s4 + $0x5c8] sm:$0xff] }
 0x2fe   :  { %v8648_v30 = vpack.c.bf16 %v292_v57, %v290_v48  ;;  %v296_v6 = vld [vmem:[%s9547_s4 + $0x5d8] sm:$0xff] }
 0x2ff   :  { %4869 = vmatpush1.bf16.msra.mxu1 %v8600_v62  ;;  %10032 = vst [vmem:[#allocation85_spill] sm:$0xff] %v8642_v33  ;;  %v10034_v62 = vld [vmem:[#allocation41_spill] sm:$0xff]  ;;  %v8680_v46 = vpack.c.bf16 %v296_v6, %v294_v49  ;;  %v300_v49 = vld [vmem:[%s9547_s4 + $0x5f8] sm:$0xff] }
 0x300   :  { %4925 = vmatpush1.bf16.msra.mxu0 %v10028_v0  ;;  %4871 = vmatprep.subr.bf16.mxu1 %v8604_v27  ;;  %v8644_v27 = vpop.eup %6144  ;;  %10035 = vst [vmem:[#allocation87_spill] sm:$0xff] %v8648_v30 }
 0x301   :  { %4927 = vmatprep.subr.bf16.mxu0 %v10030_v26  ;;  %10033 = vst [vmem:[#allocation86_spill] sm:$0xff] %v8644_v27  ;;  %10043 = vst [vmem:[#allocation93_spill] sm:$0xff] %v8680_v46 }
 0x303   :  { %4873 = vmatpush1.bf16.msra.mxu1 %v8620_v8  ;;  %v10036_v8 = vld [vmem:[#allocation42_spill] sm:$0xff] }
 0x304   :  { %4929 = vmatpush1.bf16.msra.mxu0 %v10034_v62  ;;  %4875 = vmatprep.subr.bf16.mxu1 %v8624_v37 }
 0x305   :  { %v6147_v59 = vpop.eup %6146  ;;  %4931 = vmatprep.subr.bf16.mxu0 %v10036_v8 }
 0x306   :  { %v6149_v48 = vpop.eup %6148  ;;  %v8664_v57 = vmax.f32 %v8111_v42, %v6147_v59  ;;  %v8667_v37 = vmax.f32 %v6147_v59, %v8639_v5  ;;  %v293_v42 = vld [vmem:[%s9547_s4 + $0x5c0] sm:$0xff]  ;;  %v10058_v5 = vld [vmem:[#allocation55_spill] sm:$0xff] }
 0x307   :  { %v8670_v52 = vmax.f32 %v8127_v44, %v6149_v48  ;;  %4877 = vmatpush1.bf16.msra.mxu1 %v8642_v33  ;;  %v8676_v32 = vmax.f32 %v6149_v48, %v8644_v27  ;;  %v295_v44 = vld [vmem:[%s9547_s4 + $0x5d0] sm:$0xff]  ;;  %v10044_v59 = vld [vmem:[#allocation44_spill] sm:$0xff]  ;;  %v10046_v48 = vld [vmem:[#allocation45_spill] sm:$0xff] }
 0x308   :  { %10037 = vst [vmem:[#allocation88_spill] sm:$0xff] %v8664_v57  ;;  %10038 = vst [vmem:[#allocation89_spill] sm:$0xff] %v8667_v37  ;;  %4933 = vmatpush1.bf16.msra.mxu0 %v10042_v47  ;;  %4879 = vmatprep.subr.bf16.mxu1 %v8648_v30  ;;  %v8699_v6 = vpack.c.bf16 %v295_v44, %v293_v42  ;;  %v8703_v30 = vpack.c.bf16 %v300_v49, %v298_v24  ;;  %v297_v33 = vld [vmem:[%s9547_s4 + $0x5e0] sm:$0xff]  ;;  %v299_v37 = vld [vmem:[%s9547_s4 + $0x5f0] sm:$0xff] }
 0x309   :  { %10039 = vst [vmem:[#allocation90_spill] sm:$0xff] %v8670_v52  ;;  %10041 = vst [vmem:[#allocation92_spill] sm:$0xff] %v8676_v32  ;;  %4935 = vmatprep.subr.bf16.mxu0 %v10044_v59  ;;  %v6055_v16 = vpack.i.bf16 %v8670_v52, %v8664_v57  ;;  %v10048_v32 = vld [vmem:[#allocation46_spill] sm:$0xff]  ;;  %v8713_v42 = vpack.c.bf16 %v299_v37, %v297_v33  ;;  %v10050_v44 = vld [vmem:[#allocation49_spill] sm:$0xff]  ;;  %v10056_v37 = vunpack.i.h.bf16 %v8049_v3 }
 0x30a   :  { %10045 = vst [vmem:[#allocation94_spill] sm:$0xff] %v8699_v6  ;;  %10047 = vst [vmem:[#allocation95_spill] sm:$0xff] %v8703_v30  ;;  %v10052_v24 = vld [vmem:[#allocation51_spill] sm:$0xff]  ;;  %v10053_v49 = vld [vmem:[#allocation52_spill] sm:$0xff] }
 0x30b   :  { %6056 = vrot.lane.b32.xlu0 %v6055_v16, %s6217_s30  ;;  %4881 = vmatpush1.bf16.msra.mxu1 %v8673_v41  ;;  %10049 = vst [vmem:[#allocation96_spill] sm:$0xff] %v8713_v42  ;;  %v10051_v16 = vld [vmem:[#allocation50_spill] sm:$0xff]  ;;  %v10057_v33 = vld [vmem:[#allocation17_spill] sm:$0xff] }
 0x30c   :  { %4937 = vmatpush1.bf16.msra.mxu0 %v10046_v48  ;;  %4883 = vmatprep.subr.bf16.mxu1 %v8680_v46  ;;  %v10054_v46 = vld [vmem:[#allocation53_spill] sm:$0xff]  ;;  %v1946_v27 = vmax.f32 %v10057_v33, %v10056_v37  ;;  %v10067_v37 = vld [vmem:[#allocation72_spill] sm:$0xff] }
 0x30d   :  { %4939 = vmatprep.subr.bf16.mxu0 %v10048_v32  ;;  %v10068_v33 = vld [vmem:[#allocation52_spill] sm:$0xff] }
 0x30f   :  { %4885 = vmatpush1.bf16.msra.mxu1 %v8699_v6  ;;  %v10055_v6 = vld [vmem:[#allocation54_spill] sm:$0xff] }
 0x310   :  { %4941 = vmatpush1.bf16.msra.mxu0 %v10050_v44  ;;  %4887 = vmatprep.subr.bf16.mxu1 %v8703_v30 }
 0x311   :  { %4943 = vmatprep.subr.bf16.mxu0 %v10051_v16 }
 0x313   :  { %4889 = vmatpush1.bf16.msra.mxu1 %v8713_v42 }
 0x314   :  { %4945 = vmatpush1.bf16.msra.mxu0 %v10052_v24  ;;  %5083 = vmatprep.subr.bf16.mxu1 %v9990_v50 }
 0x315   :  { %4947 = vmatprep.subr.bf16.mxu0 %v10053_v49 }
 0x318   :  { %4949 = vmatpush1.bf16.msra.mxu0 %v10054_v46 }
 0x319   :  { %v6037_v41 = vpop.permute.xlu0 %6036  ;;  %4951 = vmatprep.subr.bf16.mxu0 %v10055_v6  ;;  %v10059_v6 = vld [vmem:[#allocation56_spill] sm:$0xff] }
 0x31a   :  { %v6039_v30 = vunpack.i.h.bf16 %v6037_v41  ;;  %v6038_v57 = vunpack.i.l.bf16 %v6037_v41  ;;  %v10060_v41 = vld [vmem:[#allocation8_spill] sm:$0xff] }
 0x31c   :  { %4953 = vmatpush1.bf16.msra.mxu0 %v10058_v5  ;;  %v8729_v42 = vsel %vm419_vm8, %v6038_v57, %v6039_v30  ;;  %v2083_v50 = vsel %vm419_vm8, %v1946_v27, %v6038_v57  ;;  %v8740_v30 = vpop.permute.xlu1 %2312  ;;  %v10061_v57 = vld [vmem:[#allocation9_spill] sm:$0xff] }
 0x31d   :  { %v6047_v52 = vpop.permute.xlu0 %6046  ;;  %2301 = vmatprep.mubr.f32.mxu1 %v8729_v42  ;;  %2384 = vmatprep.mubr.f32.mxu0 %v2083_v50 }
 0x31e   :  { %v6049_v46 = vunpack.i.h.bf16 %v6047_v52  ;;  %v6048_v49 = vunpack.i.l.bf16 %v6047_v52  ;;  %2302 = vmatmul.mubr.f32.vlgmr.msra.gmra.mrb[12].mxu1 %v2083_v50  ;;  %4955 = vmatprep.subr.bf16.mxu0 %v10059_v6  ;;  %v10065_v50 = vld [vmem:[#allocation71_spill] sm:$0xff] }
 0x31f   :  { %2385 = vmatmul.mubr.f32.vlgmr.msra.gmra.mrb[14].mxu0 %v8084_v60  ;;  %5085 = vmatpush1.bf16.msra.mxu1 %v9992_v14 }
 0x320   :  { %v1972_v3 = vmax.f32 %v9964_v19, %v6048_v49  ;;  %4957 = vmatpush1.bf16.msra.mxu0 %v10060_v41  ;;  %5087 = vmatprep.subr.bf16.mxu1 %v9994_v10  ;;  %v1968_v27 = vsel %vm1915_vm11, %v6049_v46, %v6048_v49  ;;  %v10062_v19 = vld [vmem:[#allocation68_spill] sm:$0xff]  ;;  %v10064_v46 = vld [vmem:[#allocation70_spill] sm:$0xff] }
 0x321   :  { %4959 = vmatprep.subr.bf16.mxu0 %v10061_v57  ;;  %v8744_v52 = vmax.f32 %v9965_v11, %v1968_v27  ;;  %v10063_v11 = vld [vmem:[#allocation69_spill] sm:$0xff]  ;;  %v8801_v49 = vpop.permute.xlu0 %6051 }
 0x322   :  { %v8748_v60 = vsel %vm419_vm8, %v1972_v3, %v8740_v30  ;;  %10066 = vst [vmem:[#allocation17_spill] sm:$0xff] %v8801_v49  ;;  %v10069_v3 = vld [vmem:[#allocation73_spill] sm:$0xff]  ;;  %v9780_v27 = vunpack.i.h.bf16 %v8801_v49 }
 0x323   :  { %5089 = vmatpush1.bf16.msra.mxu1 %v9996_v29  ;;  %2455 = vmatprep.mubr.f32.mxu0 %v8744_v52 }
 0x324   :  { %4961 = vmatpush1.bf16.msra.mxu0 %v8025_v2  ;;  %2609 = vmatprep.mubr.f32.mxu1 %v8748_v60 }
 0x325   :  { %5091 = vmatprep.subr.bf16.mxu1 %v9998_v25  ;;  %4963 = vmatprep.subr.bf16.mxu0 %v8031_v12 }
 0x327   :  { %5093 = vmatpush1.bf16.msra.mxu1 %v10000_v21 }
 0x328   :  { %4965 = vmatpush1.bf16.msra.mxu0 %v8052_v53  ;;  %5095 = vmatprep.subr.bf16.mxu1 %v10002_v38 }
 0x329   :  { %4967 = vmatprep.subr.bf16.mxu0 %v8055_v51 }
 0x32b   :  { %5097 = vmatpush1.bf16.msra.mxu1 %v10004_v55 }
 0x32c   :  { %4969 = vmatpush1.bf16.msra.mxu0 %v8073_v58  ;;  %5099 = vmatprep.subr.bf16.mxu1 %v10006_v20 }
 0x32d   :  { %4971 = vmatprep.subr.bf16.mxu0 %v8100_v1 }
 0x32f   :  { %5101 = vmatpush1.bf16.msra.mxu1 %v10008_v35 }
 0x330   :  { %4973 = vmatpush1.bf16.msra.mxu0 %v8116_v61  ;;  %5103 = vmatprep.subr.bf16.mxu1 %v10010_v17 }
 0x331   :  { %4975 = vmatprep.subr.bf16.mxu0 %v8134_v9 }
 0x333   :  { %5105 = vmatpush1.bf16.msra.mxu1 %v10012_v15 }
 0x334   :  { %4977 = vmatpush1.bf16.msra.mxu0 %v8143_v56  ;;  %5107 = vmatprep.subr.bf16.mxu1 %v10016_v28 }
 0x335   :  { %4979 = vmatprep.subr.bf16.mxu0 %v8159_v13 }
 0x337   :  { %5109 = vmatpush1.bf16.msra.mxu1 %v10020_v54 }
 0x338   :  { %4981 = vmatpush1.bf16.msra.mxu0 %v8179_v40  ;;  %5111 = vmatprep.subr.bf16.mxu1 %v10022_v7 }
 0x339   :  { %4983 = vmatprep.subr.bf16.mxu0 %v8185_v22 }
 0x33b   :  { %5113 = vmatpush1.bf16.msra.mxu1 %v10024_v45  ;;  %v10102_v45 = vld [vmem:[#allocation88_spill] sm:$0xff] }
 0x33c   :  { %4985 = vmatpush1.bf16.msra.mxu0 %v8202_v63  ;;  %5115 = vmatprep.subr.bf16.mxu1 %v10026_v4 }
 0x33d   :  { %4987 = vmatprep.subr.bf16.mxu0 %v8206_v31 }
 0x33f   :  { %5117 = vmatpush1.bf16.msra.mxu1 %v10028_v0  ;;  %v10099_v0 = vld [vmem:[#allocation32_spill] sm:$0xff] }
 0x340   :  { %4989 = vmatpush1.bf16.msra.mxu0 %v8222_v43  ;;  %5119 = vmatprep.subr.bf16.mxu1 %v10030_v26 }
 0x341   :  { %4991 = vmatprep.subr.bf16.mxu0 %v8226_v23 }
 0x343   :  { %5121 = vmatpush1.bf16.msra.mxu1 %v10034_v62 }
 0x344   :  { %4993 = vmatpush1.bf16.msra.mxu0 %v8242_v34  ;;  %5123 = vmatprep.subr.bf16.mxu1 %v10036_v8  ;;  %v10075_v8 = vld [vmem:[#allocation77_spill] sm:$0xff] }
 0x345   :  { %4995 = vmatprep.subr.bf16.mxu0 %v8246_v39 }
 0x347   :  { %5125 = vmatpush1.bf16.msra.mxu1 %v10042_v47  ;;  %v2315_v47 = vpop.permute.xlu1 %2314 }
 0x348   :  { %4997 = vmatpush1.bf16.msra.mxu0 %v8262_v18  ;;  %5127 = vmatprep.subr.bf16.mxu1 %v10044_v59  ;;  %v10073_v59 = vld [vmem:[#allocation75_spill] sm:$0xff] }
 0x349   :  { %4999 = vmatprep.subr.bf16.mxu0 %v8266_v36 }
 0x34b   :  { %5129 = vmatpush1.bf16.msra.mxu1 %v10046_v48  ;;  %v10071_v48 = vld [vmem:[#allocation74_spill] sm:$0xff] }
 0x34c   :  { %5001 = vmatpush1.bf16.msra.mxu0 %v10062_v19  ;;  %5131 = vmatprep.subr.bf16.mxu1 %v10048_v32  ;;  %v10070_v32 = vld [vmem:[#allocation53_spill] sm:$0xff] }
 0x34d   :  { %5003 = vmatprep.subr.bf16.mxu0 %v10063_v11 }
 0x34f   :  { %5133 = vmatpush1.bf16.msra.mxu1 %v10050_v44  ;;  %v6053_v44 = vunpack.i.l.bf16 %v8801_v49  ;;  %v10078_v49 = vld [vmem:[#allocation78_spill] sm:$0xff] }
 0x350   :  { %5005 = vmatpush1.bf16.msra.mxu0 %v10064_v46  ;;  %5135 = vmatprep.subr.bf16.mxu1 %v10051_v16  ;;  %v10072_v16 = vld [vmem:[#allocation54_spill] sm:$0xff] }
 0x351   :  { %5007 = vmatprep.subr.bf16.mxu0 %v10065_v50 }
 0x353   :  { %5137 = vmatpush1.bf16.msra.mxu1 %v10052_v24  ;;  %v10074_v24 = vld [vmem:[#allocation76_spill] sm:$0xff] }
 0x354   :  { %5009 = vmatpush1.bf16.msra.mxu0 %v10067_v37  ;;  %5139 = vmatprep.subr.bf16.mxu1 %v10068_v33  ;;  %v1994_v33 = vsel %vm1915_vm11, %v6053_v44, %v9780_v27  ;;  %v8829_v44 = vsel %vm419_vm8, %v8740_v30, %v2315_v47  ;;  %v10083_v47 = vld [vmem:[#allocation21_spill] sm:$0xff]  ;;  %v10085_v27 = vld [vmem:[#allocation24_spill] sm:$0xff] }
 0x355   :  { %5011 = vmatprep.subr.bf16.mxu0 %v10069_v3  ;;  %v10084_v30 = vld [vmem:[#allocation81_spill] sm:$0xff] }
 0x357   :  { %5141 = vmatpush1.bf16.msra.mxu1 %v10070_v32  ;;  %v10076_v32 = vld [vmem:[#allocation62_spill] sm:$0xff] }
 0x358   :  { %5013 = vmatpush1.bf16.msra.mxu0 %v10071_v48  ;;  %5143 = vmatprep.subr.bf16.mxu1 %v10072_v16  ;;  %v8821_v62 = vmax.f32 %v10076_v32, %v1994_v33  ;;  %v10080_v32 = vld [vmem:[#allocation80_spill] sm:$0xff]  ;;  %v10082_v33 = vld [vmem:[#allocation19_spill] sm:$0xff]  ;;  %v10098_v16 = vld [vmem:[#allocation90_spill] sm:$0xff] }
 0x359   :  { %5015 = vmatprep.subr.bf16.mxu0 %v10073_v59 }
 0x35a   :  { %10077 = vst [vmem:[#allocation69_spill] sm:$0xff] %v8821_v62 }
 0x35b   :  { %5145 = vmatpush1.bf16.msra.mxu1 %v10058_v5 }
 0x35c   :  { %5017 = vmatpush1.bf16.msra.mxu0 %v10074_v24  ;;  %5147 = vmatprep.subr.bf16.mxu1 %v10059_v6  ;;  %v10090_v6 = vld [vmem:[#allocation25_spill] sm:$0xff] }
 0x35d   :  { %5019 = vmatprep.subr.bf16.mxu0 %v10075_v8 }
 0x35e   :  { %2610 = vmatmul.mubr.f32.vlgmr.msra.gmra.mrb[14].mxu1 %v8744_v52  ;;  %v10079_v52 = vld [vmem:[#allocation79_spill] sm:$0xff] }
 0x35f   :  { %2456 = vmatmul.mubr.f32.vlgmr.msra.gmra.mrb[14].mxu0 %v8729_v42  ;;  %5149 = vmatpush1.bf16.msra.mxu1 %v10060_v41  ;;  %v10081_v42 = vld [vmem:[#allocation18_spill] sm:$0xff]  ;;  %v10089_v41 = vld [vmem:[#allocation12_spill] sm:$0xff] }
 0x360   :  { %2680 = vmatprep.mubr.f32.mxu1 %v8821_v62  ;;  %5021 = vmatpush1.bf16.msra.mxu0 %v10078_v49 }
 0x361   :  { %2526 = vmatprep.mubr.f32.mxu0 %v8829_v44  ;;  %5151 = vmatprep.subr.bf16.mxu1 %v10061_v57 }
 0x362   :  { %5023 = vmatprep.subr.bf16.mxu0 %v10079_v52 }
 0x363   :  { %5153 = vmatpush1.bf16.msra.mxu1 %v8025_v2  ;;  %v10086_v2 = vld [vmem:[#allocation14_spill] sm:$0xff] }
 0x364   :  { %5025 = vmatpush1.bf16.msra.mxu0 %v10080_v32  ;;  %5155 = vmatprep.subr.bf16.mxu1 %v8031_v12  ;;  %v10087_v12 = vld [vmem:[#allocation20_spill] sm:$0xff] }
 0x365   :  { %5027 = vmatprep.subr.bf16.mxu0 %v10081_v42  ;;  %v1788_v57 = vadd.f32 %v10087_v12, %v10086_v2 }
 0x367   :  { %5157 = vmatpush1.bf16.msra.mxu1 %v8052_v53  ;;  %v10088_v53 = vld [vmem:[#allocation22_spill] sm:$0xff]  ;;  %6150 = vtanh.f32 %v1788_v57  ;;  %v10097_v57 = vld [vmem:[#allocation31_spill] sm:$0xff] }
 0x368   :  { %5029 = vmatpush1.bf16.msra.mxu0 %v10082_v33  ;;  %5159 = vmatprep.subr.bf16.mxu1 %v8055_v51  ;;  %v1790_v62 = vadd.f32 %v10089_v41, %v10088_v53  ;;  %v10091_v51 = vld [vmem:[#allocation23_spill] sm:$0xff] }
 0x369   :  { %5031 = vmatprep.subr.bf16.mxu0 %v10083_v47  ;;  %v10093_v41 = vld [vmem:[#allocation27_spill] sm:$0xff] }
 0x36a   :  { %6152 = vtanh.f32 %v1790_v62  ;;  %v10096_v62 = vld [vmem:[#allocation30_spill] sm:$0xff] }
 0x36b   :  { %5161 = vmatpush1.bf16.msra.mxu1 %v8073_v58 }
 0x36c   :  { %5033 = vmatpush1.bf16.msra.mxu0 %v10084_v30  ;;  %5163 = vmatprep.subr.bf16.mxu1 %v8100_v1 }
 0x36d   :  { %5035 = vmatprep.subr.bf16.mxu0 %v10085_v27 }
 0x36f   :  { %5165 = vmatpush1.bf16.msra.mxu1 %v8116_v61  ;;  %v10092_v61 = vld [vmem:[#allocation26_spill] sm:$0xff] }
 0x370   :  { %5037 = vmatpush1.bf16.msra.mxu0 %v10090_v6  ;;  %5167 = vmatprep.subr.bf16.mxu1 %v8134_v9  ;;  %v10094_v9 = vld [vmem:[#allocation28_spill] sm:$0xff] }
 0x371   :  { %5039 = vmatprep.subr.bf16.mxu0 %v10091_v51 }
 0x372   :  { %v1674_v58 = vpop.f32.mrb[10].mxu0 }
 0x373   :  { %v1675_v1 = vadd.f32 %v1674_v58, %v10086_v2  ;;  %5169 = vmatpush1.bf16.msra.mxu1 %v8143_v56  ;;  %v1676_v5 = vpop.f32.mrb[11].mxu0  ;;  %v10095_v58 = vld [vmem:[#allocation29_spill] sm:$0xff] }
 0x374   :  { %v1677_v12 = vadd.f32 %v1676_v5, %v10088_v53  ;;  %5041 = vmatpush1.bf16.msra.mxu0 %v10092_v61  ;;  %5171 = vmatprep.subr.bf16.mxu1 %v8159_v13  ;;  %v8867_v5 = vpop.eup %6150 }
 0x375   :  { %6154 = vtanh.f32 %v1675_v1  ;;  %5043 = vmatprep.subr.bf16.mxu0 %v10093_v41 }
 0x376   :  { %6156 = vtanh.f32 %v1677_v12  ;;  %v8870_v12 = vpop.eup %6152 }
 0x377   :  { %5173 = vmatpush1.bf16.msra.mxu1 %v8179_v40 }
 0x378   :  { %5045 = vmatpush1.bf16.msra.mxu0 %v10094_v9  ;;  %5175 = vmatprep.subr.bf16.mxu1 %v8185_v22 }
 0x379   :  { %5047 = vmatprep.subr.bf16.mxu0 %v10095_v58 }
 0x37b   :  { %5177 = vmatpush1.bf16.msra.mxu1 %v8202_v63 }
 0x37c   :  { %5049 = vmatpush1.bf16.msra.mxu0 %v10096_v62  ;;  %5179 = vmatprep.subr.bf16.mxu1 %v8206_v31  ;;  %v10100_v31 = vld [vmem:[#allocation84_spill] sm:$0xff] }
 0x37d   :  { %v6057_v1 = vpop.permute.xlu0 %6056  ;;  %5051 = vmatprep.subr.bf16.mxu0 %v10097_v57  ;;  %v10101_v57 = vld [vmem:[#allocation33_spill] sm:$0xff] }
 0x37e   :  { %v6059_v40 = vunpack.i.h.bf16 %v6057_v1  ;;  %v6058_v13 = vunpack.i.l.bf16 %v6057_v1  ;;  %v10103_v1 = vld [vmem:[#allocation86_spill] sm:$0xff] }
 0x37f   :  { %v6155_v56 = vpop.eup %6154  ;;  %5181 = vmatpush1.bf16.msra.mxu1 %v8222_v43 }
 0x380   :  { %v6157_v22 = vpop.eup %6156  ;;  %v2011_v26 = vmax.f32 %v10098_v16, %v6059_v40  ;;  %v2007_v63 = vsel %vm1915_vm11, %v6058_v13, %v6059_v40  ;;  %5053 = vmatpush1.bf16.msra.mxu0 %v10099_v0  ;;  %5183 = vmatprep.subr.bf16.mxu1 %v8226_v23  ;;  %v8878_v4 = vmax.f32 %v10100_v31, %v6155_v56  ;;  %v10106_v31 = vld [vmem:[#allocation6_spill] sm:$0xff] }
 0x381   :  { %5055 = vmatprep.subr.bf16.mxu0 %v10101_v57  ;;  %v2010_v62 = vmax.f32 %v10102_v45, %v2007_v63  ;;  %v8883_v7 = vmax.f32 %v10103_v1, %v6157_v22  ;;  %v8886_v43 = vmax.f32 %v6155_v56, %v8867_v5  ;;  %v8889_v16 = vmax.f32 %v6157_v22, %v8870_v12  ;;  %v10107_v63 = vld [vmem:[#allocation34_spill] sm:$0xff]  ;;  %v10108_v56 = vld [vmem:[#allocation92_spill] sm:$0xff]  ;;  %v10109_v22 = vld [vmem:[#allocation89_spill] sm:$0xff] }
 0x382   :  { %v6070_v45 = vpack.i.bf16 %v10109_v22, %v10108_v56  ;;  %v10110_v1 = vld [vmem:[#allocation7_spill] sm:$0xff]  ;;  %v10114_v56 = vld [vmem:[#allocation85_spill] sm:$0xff] }
 0x383   :  { %10104 = vst [vmem:[#allocation70_spill] sm:$0xff] %v8886_v43  ;;  %10105 = vst [vmem:[#allocation73_spill] sm:$0xff] %v8889_v16  ;;  %5185 = vmatpush1.bf16.msra.mxu1 %v8242_v34  ;;  %v6060_v13 = vpack.i.bf16 %v2011_v26, %v2010_v62  ;;  %v6065_v40 = vpack.i.bf16 %v8883_v7, %v8878_v4  ;;  %v10111_v26 = vld [vmem:[#allocation35_spill] sm:$0xff]  ;;  %v6075_v62 = vpack.i.bf16 %v8889_v16, %v8886_v43  ;;  %v10117_v16 = vld [vmem:[#allocation93_spill] sm:$0xff] }
 0x384   :  { %5057 = vmatpush1.bf16.msra.mxu0 %v10106_v31  ;;  %5187 = vmatprep.subr.bf16.mxu1 %v8246_v39  ;;  %v10119_v43 = vld [vmem:[#allocation95_spill] sm:$0xff] }
 0x385   :  { %6061 = vrot.lane.b32.xlu1 %v6060_v13, %s6216_s23  ;;  %6066 = vrot.lane.b32.xlu0 %v6065_v40, %s6217_s30  ;;  %v10112_v13 = vld [vmem:[#allocation82_spill] sm:$0xff]  ;;  %v10113_v40 = vld [vmem:[#allocation83_spill] sm:$0xff] }
 0x386   :  { %5059 = vmatprep.subr.bf16.mxu0 %v10107_v63 }
 0x387   :  { %5189 = vmatpush1.bf16.msra.mxu1 %v8262_v18 }
 0x388   :  { %5061 = vmatpush1.bf16.msra.mxu0 %v10110_v1  ;;  %5191 = vmatprep.subr.bf16.mxu1 %v8266_v36 }
 0x389   :  { %6071 = vrot.lane.b32.xlu1 %v6070_v45, %s6217_s30  ;;  %5063 = vmatprep.subr.bf16.mxu0 %v10111_v26  ;;  %v10115_v45 = vld [vmem:[#allocation87_spill] sm:$0xff] }
 0x38b   :  { %5193 = vmatpush1.bf16.msra.mxu1 %v10062_v19  ;;  %v10116_v19 = vld [vmem:[#allocation91_spill] sm:$0xff] }
 0x38c   :  { %5065 = vmatpush1.bf16.msra.mxu0 %v10112_v13  ;;  %5195 = vmatprep.subr.bf16.mxu1 %v10063_v11 }
 0x38d   :  { %6076 = vrot.lane.b32.xlu1 %v6075_v62, %s6217_s30  ;;  %5067 = vmatprep.subr.bf16.mxu0 %v10113_v40  ;;  %v10118_v62 = vld [vmem:[#allocation94_spill] sm:$0xff] }
 0x38f   :  { %5197 = vmatpush1.bf16.msra.mxu1 %v10064_v46 }
 0x390   :  { %5069 = vmatpush1.bf16.msra.mxu0 %v10114_v56  ;;  %5199 = vmatprep.subr.bf16.mxu1 %v10065_v50  ;;  %v10120_v50 = vld [vmem:[#allocation96_spill] sm:$0xff] }
 0x391   :  { %5071 = vmatprep.subr.bf16.mxu0 %v10115_v45 }
 0x393   :  { %5201 = vmatpush1.bf16.msra.mxu1 %v10067_v37  ;;  %v10121_v37 = vld [vmem:[#allocation11_spill] sm:$0xff] }
 0x394   :  { %5073 = vmatpush1.bf16.msra.mxu0 %v10116_v19  ;;  %5203 = vmatprep.subr.bf16.mxu1 %v10069_v3 }
 0x395   :  { %5075 = vmatprep.subr.bf16.mxu0 %v10117_v16 }
 0x397   :  { %5205 = vmatpush1.bf16.msra.mxu1 %v10071_v48 }
 0x398   :  { %5077 = vmatpush1.bf16.msra.mxu0 %v10118_v62  ;;  %5207 = vmatprep.subr.bf16.mxu1 %v10073_v59 }
 0x399   :  { %5079 = vmatprep.subr.bf16.mxu0 %v10119_v43 }
 0x39b   :  { %5209 = vmatpush1.bf16.msra.mxu1 %v10074_v24 }
 0x39c   :  { %5081 = vmatpush1.bf16.msra.mxu0 %v10120_v50  ;;  %5211 = vmatprep.subr.bf16.mxu1 %v10075_v8 }
 0x39d   :  { %5275 = vmatprep.subr.bf16.mxu0 %v10121_v37 }
 0x39e   :  { %2681 = vmatmul.mubr.f32.vlgmr.msra.gmra.mrb[14].mxu1 %v8829_v44 }
 0x39f   :  { %2527 = vmatmul.mubr.f32.vlgmr.msra.gmra.mrb[14].mxu0 %v8748_v60  ;;  %5213 = vmatpush1.bf16.msra.mxu1 %v10078_v49 }
 0x3a0   :  { %5277 = vmatpush1.bf16.msra.mxu0 %v9992_v14  ;;  %5215 = vmatprep.subr.bf16.mxu1 %v10079_v52 }
 0x3a1   :  { %5279 = vmatprep.subr.bf16.mxu0 %v9994_v10 }
 0x3a3   :  { %5217 = vmatpush1.bf16.msra.mxu1 %v10080_v32 }
 0x3a4   :  { %5281 = vmatpush1.bf16.msra.mxu0 %v9996_v29  ;;  %5219 = vmatprep.subr.bf16.mxu1 %v10081_v42 }
 0x3a5   :  { %5283 = vmatprep.subr.bf16.mxu0 %v9998_v25 }
 0x3a7   :  { %5221 = vmatpush1.bf16.msra.mxu1 %v10082_v33 }
 0x3a8   :  { %5285 = vmatpush1.bf16.msra.mxu0 %v10000_v21  ;;  %5223 = vmatprep.subr.bf16.mxu1 %v10083_v47 }
 0x3a9   :  { %5287 = vmatprep.subr.bf16.mxu0 %v10002_v38 }
 0x3ab   :  { %5225 = vmatpush1.bf16.msra.mxu1 %v10084_v30 }
 0x3ac   :  { %5289 = vmatpush1.bf16.msra.mxu0 %v10004_v55  ;;  %5227 = vmatprep.subr.bf16.mxu1 %v10085_v27 }
 0x3ad   :  { %5291 = vmatprep.subr.bf16.mxu0 %v10006_v20 }
 0x3af   :  { %5229 = vmatpush1.bf16.msra.mxu1 %v10090_v6 }
 0x3b0   :  { %5293 = vmatpush1.bf16.msra.mxu0 %v10008_v35  ;;  %5231 = vmatprep.subr.bf16.mxu1 %v10091_v51  ;;  %v10129_v51 = vld [vmem:[#allocation41_spill] sm:$0xff] }
 0x3b1   :  { %5295 = vmatprep.subr.bf16.mxu0 %v10010_v17 }
 0x3b2   :  { %v1900_v60 = vpop.f32.mrb[12].mxu0 }
 0x3b3   :  { %v1901_v44 = vadd.f32 %v1900_v60, %v10086_v2  ;;  %v1902_v47 = vpop.f32.mrb[13].mxu0  ;;  %5233 = vmatpush1.bf16.msra.mxu1 %v10092_v61  ;;  %v10122_v2 = vld [vmem:[#allocation36_spill] sm:$0xff]  ;;  %v10123_v60 = vld [vmem:[#allocation30_spill] sm:$0xff]  ;;  %v10124_v61 = vld [vmem:[#allocation37_spill] sm:$0xff] }
 0x3b4   :  { %v1903_v30 = vadd.f32 %v1902_v47, %v10088_v53  ;;  %5297 = vmatpush1.bf16.msra.mxu0 %v10012_v15  ;;  %5235 = vmatprep.subr.bf16.mxu1 %v10093_v41  ;;  %v10125_v53 = vld [vmem:[#allocation31_spill] sm:$0xff]  ;;  %v10126_v47 = vld [vmem:[#allocation38_spill] sm:$0xff] }
 0x3b5   :  { %6158 = vtanh.f32 %v1901_v44  ;;  %5299 = vmatprep.subr.bf16.mxu0 %v10016_v28  ;;  %v10127_v41 = vld [vmem:[#allocation39_spill] sm:$0xff] }
 0x3b6   :  { %6160 = vtanh.f32 %v1903_v30 }
 0x3b7   :  { %5237 = vmatpush1.bf16.msra.mxu1 %v10094_v9 }
 0x3b8   :  { %5301 = vmatpush1.bf16.msra.mxu0 %v10020_v54  ;;  %5239 = vmatprep.subr.bf16.mxu1 %v10095_v58 }
 0x3b9   :  { %5303 = vmatprep.subr.bf16.mxu0 %v10122_v2 }
 0x3bb   :  { %5241 = vmatpush1.bf16.msra.mxu1 %v10123_v60  ;;  %v10128_v60 = vld [vmem:[#allocation40_spill] sm:$0xff] }
 0x3bc   :  { %5305 = vmatpush1.bf16.msra.mxu0 %v10124_v61  ;;  %5243 = vmatprep.subr.bf16.mxu1 %v10125_v53 }
 0x3bd   :  { %5307 = vmatprep.subr.bf16.mxu0 %v10126_v47 }
 0x3bf   :  { %v6159_v44 = vpop.eup %6158  ;;  %5245 = vmatpush1.bf16.msra.mxu1 %v10099_v0  ;;  %v10146_v0 = vld [vmem:[#allocation63_spill] sm:$0xff] }
 0x3c0   :  { %v6161_v30 = vpop.eup %6160  ;;  %v8967_v9 = vmax.f32 %v8867_v5, %v6159_v44  ;;  %5309 = vmatpush1.bf16.msra.mxu0 %v10127_v41  ;;  %5247 = vmatprep.subr.bf16.mxu1 %v10101_v57  ;;  %v10130_v5 = vld [vmem:[#allocation42_spill] sm:$0xff]  ;;  %v10131_v44 = vld [vmem:[#allocation43_spill] sm:$0xff]  ;;  %v10144_v57 = vld [vmem:[#allocation17_spill] sm:$0xff] }
 0x3c1   :  { %v8972_v58 = vmax.f32 %v8870_v12, %v6161_v30  ;;  %5311 = vmatprep.subr.bf16.mxu0 %v10128_v60  ;;  %v10132_v12 = vld [vmem:[#allocation44_spill] sm:$0xff]  ;;  %v10133_v30 = vld [vmem:[#allocation45_spill] sm:$0xff] }
 0x3c3   :  { %v6080_v53 = vpack.i.bf16 %v8972_v58, %v8967_v9  ;;  %5249 = vmatpush1.bf16.msra.mxu1 %v10106_v31  ;;  %v10134_v31 = vld [vmem:[#allocation46_spill] sm:$0xff] }
 0x3c4   :  { %5313 = vmatpush1.bf16.msra.mxu0 %v10129_v51  ;;  %5251 = vmatprep.subr.bf16.mxu1 %v10107_v63 }
 0x3c5   :  { %6081 = vrot.lane.b32.xlu1 %v6080_v53, %s6217_s30  ;;  %5315 = vmatprep.subr.bf16.mxu0 %v10130_v5  ;;  %v10135_v53 = vld [vmem:[#allocation49_spill] sm:$0xff] }
 0x3c7   :  { %5253 = vmatpush1.bf16.msra.mxu1 %v10110_v1  ;;  %v10136_v1 = vld [vmem:[#allocation50_spill] sm:$0xff] }
 0x3c8   :  { %5317 = vmatpush1.bf16.msra.mxu0 %v10131_v44  ;;  %5255 = vmatprep.subr.bf16.mxu1 %v10111_v26  ;;  %v10137_v26 = vld [vmem:[#allocation51_spill] sm:$0xff] }
 0x3c9   :  { %5319 = vmatprep.subr.bf16.mxu0 %v10132_v12 }
 0x3cb   :  { %5257 = vmatpush1.bf16.msra.mxu1 %v10112_v13  ;;  %v10138_v13 = vld [vmem:[#allocation52_spill] sm:$0xff] }
 0x3cc   :  { %5321 = vmatpush1.bf16.msra.mxu0 %v10133_v30  ;;  %5259 = vmatprep.subr.bf16.mxu1 %v10113_v40  ;;  %v10139_v40 = vld [vmem:[#allocation53_spill] sm:$0xff] }
 0x3cd   :  { %5323 = vmatprep.subr.bf16.mxu0 %v10134_v31 }
 0x3cf   :  { %5261 = vmatpush1.bf16.msra.mxu1 %v10114_v56  ;;  %v10140_v56 = vld [vmem:[#allocation54_spill] sm:$0xff] }
 0x3d0   :  { %5325 = vmatpush1.bf16.msra.mxu0 %v10135_v53  ;;  %5263 = vmatprep.subr.bf16.mxu1 %v10115_v45  ;;  %v10141_v45 = vld [vmem:[#allocation55_spill] sm:$0xff] }
 0x3d1   :  { %5327 = vmatprep.subr.bf16.mxu0 %v10136_v1 }
 0x3d3   :  { %5265 = vmatpush1.bf16.msra.mxu1 %v10116_v19  ;;  %v10142_v19 = vld [vmem:[#allocation56_spill] sm:$0xff] }
 0x3d4   :  { %5329 = vmatpush1.bf16.msra.mxu0 %v10137_v26  ;;  %5267 = vmatprep.subr.bf16.mxu1 %v10117_v16 }
 0x3d5   :  { %5331 = vmatprep.subr.bf16.mxu0 %v10138_v13 }
 0x3d7   :  { %5269 = vmatpush1.bf16.msra.mxu1 %v10118_v62  ;;  %v10145_v62 = vunpack.i.h.bf16 %v10144_v57 }
 0x3d8   :  { %5333 = vmatpush1.bf16.msra.mxu0 %v10139_v40  ;;  %5271 = vmatprep.subr.bf16.mxu1 %v10119_v43 }
 0x3d9   :  { %5335 = vmatprep.subr.bf16.mxu0 %v10140_v56  ;;  %v1998_v6 = vmax.f32 %v10146_v0, %v10145_v62  ;;  %v10151_v62 = vld [vmem:[#allocation5_spill] sm:$0xff] }
 0x3db   :  { %5273 = vmatpush1.bf16.msra.mxu1 %v10120_v50 }
 0x3dc   :  { %5337 = vmatpush1.bf16.msra.mxu0 %v10141_v45  ;;  %5467 = vmatprep.subr.bf16.mxu1 %v10121_v37 }
 0x3dd   :  { %5339 = vmatprep.subr.bf16.mxu0 %v10142_v19 }
 0x3f1   :  { %v9006_v63 = vpop.f32.mrb[12].mxu1 }
 0x3f2   :  { %10143 = vst [vmem:[#allocation74_spill] sm:$0xff] %v9006_v63  ;;  %v9008_v16 = vpop.f32.mrb[13].mxu1 }
 0x3f7   :  { %v6062_v27 = vpop.permute.xlu1 %6061  ;;  %v6067_v43 = vpop.permute.xlu0 %6066 }
 0x3f8   :  { %v6064_v33 = vunpack.i.h.bf16 %v6062_v27  ;;  %v6063_v42 = vunpack.i.l.bf16 %v6062_v27  ;;  %v6069_v32 = vunpack.i.h.bf16 %v6067_v43  ;;  %v6068_v50 = vunpack.i.l.bf16 %v6067_v43  ;;  %v10147_v43 = vld [vmem:[#allocation69_spill] sm:$0xff] }
 0x3fa   :  { %v9014_v52 = vsel %vm419_vm8, %v6063_v42, %v6064_v33  ;;  %v2544_v37 = vsel %vm419_vm8, %v1998_v6, %v6063_v42  ;;  %v2033_v49 = vsel %vm1915_vm11, %v6068_v50, %v6069_v32  ;;  %v10148_v33 = vld [vmem:[#allocation8_spill] sm:$0xff]  ;;  %v10149_v6 = vld [vmem:[#allocation9_spill] sm:$0xff]  ;;  %v10150_v42 = vld [vmem:[#allocation10_spill] sm:$0xff] }
 0x3fb   :  { %v9018_v63 = vpop.permute.xlu1 %6071  ;;  %2751 = vmatprep.mubr.f32.mxu1 %v9014_v52  ;;  %2834 = vmatprep.mubr.f32.mxu0 %v2544_v37  ;;  %v2036_v0 = vmax.f32 %v8878_v4, %v2033_v49  ;;  %v2037_v49 = vmax.f32 %v8883_v7, %v6069_v32  ;;  %v10155_v7 = vld [vmem:[#allocation58_spill] sm:$0xff]  ;;  %v10156_v32 = vld [vmem:[#allocation59_spill] sm:$0xff] }
 0x3fc   :  { %v6074_v57 = vunpack.i.h.bf16 %v9018_v63  ;;  %v9855_v27 = vunpack.i.l.bf16 %v9018_v63  ;;  %2752 = vmatmul.mubr.f32.vlgmr.msra.gmra.mrb[14].mxu1 %v2544_v37  ;;  %2835 = vmatmul.mubr.f32.vlgmr.msra.gmra.mrb[16].mxu0 %v10147_v43  ;;  %v10183_v37 = vld [vmem:[#allocation30_spill] sm:$0xff]  ;;  %v10186_v43 = vld [vmem:[#allocation33_spill] sm:$0xff] }
 0x3fd   :  { %5341 = vmatpush1.bf16.msra.mxu0 %v10148_v33  ;;  %2762 = vrot.lane.b32.xlu0 %v2036_v0, %s6216_s23  ;;  %v10184_v0 = vld [vmem:[#allocation31_spill] sm:$0xff] }
 0x3fe   :  { %5343 = vmatprep.subr.bf16.mxu0 %v10149_v6  ;;  %v2020_v50 = vsel %vm1915_vm11, %v6074_v57, %v9855_v27  ;;  %5469 = vmatpush1.bf16.msra.mxu1 %v9992_v14  ;;  %v10152_v14 = vld [vmem:[#allocation16_spill] sm:$0xff]  ;;  %v10193_v27 = vld [vmem:[#allocation13_spill] sm:$0xff] }
 0x3ff   :  { %v9033_v4 = vmax.f32 %v10109_v22, %v2020_v50  ;;  %5471 = vmatprep.subr.bf16.mxu1 %v9994_v10  ;;  %v10153_v22 = vld [vmem:[#allocation15_spill] sm:$0xff]  ;;  %v10154_v10 = vld [vmem:[#allocation57_spill] sm:$0xff]  ;;  %v10185_v57 = vld [vmem:[#allocation32_spill] sm:$0xff] }
 0x400   :  { %v10187_v50 = vld [vmem:[#allocation6_spill] sm:$0xff] }
 0x401   :  { %5345 = vmatpush1.bf16.msra.mxu0 %v10150_v42  ;;  %2905 = vmatprep.mubr.f32.mxu0 %v9033_v4 }
 0x402   :  { %2764 = vrot.lane.b32.xlu0 %v2037_v49, %s6216_s23  ;;  %5347 = vmatprep.subr.bf16.mxu0 %v10151_v62  ;;  %v10188_v49 = vld [vmem:[#allocation34_spill] sm:$0xff] }
 0x403   :  { %5473 = vmatpush1.bf16.msra.mxu1 %v9996_v29  ;;  %v10157_v29 = vld [vmem:[#allocation60_spill] sm:$0xff] }
 0x404   :  { %5475 = vmatprep.subr.bf16.mxu1 %v9998_v25  ;;  %v10158_v25 = vld [vmem:[#allocation61_spill] sm:$0xff] }
 0x405   :  { %5349 = vmatpush1.bf16.msra.mxu0 %v10152_v14 }
 0x406   :  { %5351 = vmatprep.subr.bf16.mxu0 %v10153_v22 }
 0x407   :  { %5477 = vmatpush1.bf16.msra.mxu1 %v10000_v21  ;;  %v10159_v21 = vld [vmem:[#allocation64_spill] sm:$0xff] }
 0x408   :  { %5479 = vmatprep.subr.bf16.mxu1 %v10002_v38  ;;  %v10160_v38 = vld [vmem:[#allocation48_spill] sm:$0xff] }
 0x409   :  { %5353 = vmatpush1.bf16.msra.mxu0 %v10154_v10 }
 0x40a   :  { %5355 = vmatprep.subr.bf16.mxu0 %v10155_v7 }
 0x40b   :  { %5481 = vmatpush1.bf16.msra.mxu1 %v10004_v55  ;;  %v10161_v55 = vld [vmem:[#allocation47_spill] sm:$0xff] }
 0x40c   :  { %5483 = vmatprep.subr.bf16.mxu1 %v10006_v20  ;;  %v10162_v20 = vld [vmem:[#allocation65_spill] sm:$0xff] }
 0x40d   :  { %5357 = vmatpush1.bf16.msra.mxu0 %v10156_v32 }
 0x40e   :  { %5359 = vmatprep.subr.bf16.mxu0 %v10157_v29 }
 0x40f   :  { %5485 = vmatpush1.bf16.msra.mxu1 %v10008_v35  ;;  %v10163_v35 = vld [vmem:[#allocation66_spill] sm:$0xff] }
 0x410   :  { %5487 = vmatprep.subr.bf16.mxu1 %v10010_v17  ;;  %v10164_v17 = vld [vmem:[#allocation67_spill] sm:$0xff] }
 0x411   :  { %5361 = vmatpush1.bf16.msra.mxu0 %v10158_v25 }
 0x412   :  { %5363 = vmatprep.subr.bf16.mxu0 %v10159_v21 }
 0x413   :  { %5489 = vmatpush1.bf16.msra.mxu1 %v10012_v15 }
 0x414   :  { %5491 = vmatprep.subr.bf16.mxu1 %v10016_v28  ;;  %v9089_v28 = vpop.permute.xlu1 %6076 }
 0x415   :  { %5365 = vmatpush1.bf16.msra.mxu0 %v10160_v38  ;;  %10168 = vst [vmem:[#allocation75_spill] sm:$0xff] %v9089_v28 }
 0x416   :  { %5367 = vmatprep.subr.bf16.mxu0 %v10161_v55 }
 0x417   :  { %5493 = vmatpush1.bf16.msra.mxu1 %v10020_v54  ;;  %v10167_v54 = vld [vmem:[#allocation72_spill] sm:$0xff] }
 0x418   :  { %5495 = vmatprep.subr.bf16.mxu1 %v10122_v2 }
 0x419   :  { %5369 = vmatpush1.bf16.msra.mxu0 %v10162_v20 }
 0x41a   :  { %5371 = vmatprep.subr.bf16.mxu0 %v10163_v35 }
 0x41b   :  { %5497 = vmatpush1.bf16.msra.mxu1 %v10124_v61  ;;  %v10165_v61 = vld [vmem:[#allocation68_spill] sm:$0xff] }
 0x41c   :  { %5499 = vmatprep.subr.bf16.mxu1 %v10126_v47  ;;  %v10173_v47 = vld [vmem:[#allocation19_spill] sm:$0xff] }
 0x41d   :  { %5373 = vmatpush1.bf16.msra.mxu0 %v10164_v17 }
 0x41e   :  { %5375 = vmatprep.subr.bf16.mxu0 %v8226_v23 }
 0x41f   :  { %5501 = vmatpush1.bf16.msra.mxu1 %v10127_v41 }
 0x420   :  { %5503 = vmatprep.subr.bf16.mxu1 %v10128_v60  ;;  %v10172_v60 = vld [vmem:[#allocation18_spill] sm:$0xff] }
 0x421   :  { %5377 = vmatpush1.bf16.msra.mxu0 %v8242_v34 }
 0x422   :  { %5379 = vmatprep.subr.bf16.mxu0 %v8246_v39 }
 0x423   :  { %5505 = vmatpush1.bf16.msra.mxu1 %v10129_v51  ;;  %v10166_v51 = vld [vmem:[#allocation71_spill] sm:$0xff] }
 0x424   :  { %5507 = vmatprep.subr.bf16.mxu1 %v10130_v5  ;;  %v10178_v5 = vld [vmem:[#allocation23_spill] sm:$0xff] }
 0x425   :  { %5381 = vmatpush1.bf16.msra.mxu0 %v8262_v18 }
 0x426   :  { %5383 = vmatprep.subr.bf16.mxu0 %v8266_v36 }
 0x427   :  { %5509 = vmatpush1.bf16.msra.mxu1 %v10131_v44  ;;  %v10179_v44 = vld [vmem:[#allocation26_spill] sm:$0xff] }
 0x428   :  { %5511 = vmatprep.subr.bf16.mxu1 %v10132_v12  ;;  %v10180_v12 = vld [vmem:[#allocation27_spill] sm:$0xff] }
 0x429   :  { %5385 = vmatpush1.bf16.msra.mxu0 %v10165_v61 }
 0x42a   :  { %5387 = vmatprep.subr.bf16.mxu0 %v10063_v11 }
 0x42b   :  { %5513 = vmatpush1.bf16.msra.mxu1 %v10133_v30  ;;  %v10181_v30 = vld [vmem:[#allocation28_spill] sm:$0xff] }
 0x42c   :  { %5515 = vmatprep.subr.bf16.mxu1 %v10134_v31 }
 0x42d   :  { %5389 = vmatpush1.bf16.msra.mxu0 %v10064_v46 }
 0x42e   :  { %5391 = vmatprep.subr.bf16.mxu0 %v10166_v51 }
 0x42f   :  { %5517 = vmatpush1.bf16.msra.mxu1 %v10135_v53  ;;  %v10182_v53 = vld [vmem:[#allocation29_spill] sm:$0xff] }
 0x430   :  { %5519 = vmatprep.subr.bf16.mxu1 %v10136_v1 }
 0x431   :  { %5393 = vmatpush1.bf16.msra.mxu0 %v10167_v54 }
 0x432   :  { %5395 = vmatprep.subr.bf16.mxu0 %v10069_v3 }
 0x433   :  { %5521 = vmatpush1.bf16.msra.mxu1 %v10137_v26 }
 0x434   :  { %5523 = vmatprep.subr.bf16.mxu1 %v10138_v13  ;;  %v10169_v13 = vld [vmem:[#allocation78_spill] sm:$0xff] }
 0x435   :  { %5397 = vmatpush1.bf16.msra.mxu0 %v10071_v48 }
 0x436   :  { %5399 = vmatprep.subr.bf16.mxu0 %v10073_v59 }
 0x437   :  { %v6082_v15 = vpop.permute.xlu1 %6081  ;;  %5525 = vmatpush1.bf16.msra.mxu1 %v10139_v40 }
 0x438   :  { %v6084_v41 = vunpack.i.h.bf16 %v6082_v15  ;;  %v6083_v31 = vunpack.i.l.bf16 %v6082_v15  ;;  %5527 = vmatprep.subr.bf16.mxu1 %v10140_v56  ;;  %v10170_v56 = vld [vmem:[#allocation79_spill] sm:$0xff] }
 0x439   :  { %5401 = vmatpush1.bf16.msra.mxu0 %v10074_v24  ;;  %v10189_v15 = vld [vmem:[#allocation7_spill] sm:$0xff] }
 0x43a   :  { %v2063_v1 = vmax.f32 %v8972_v58, %v6084_v41  ;;  %v2059_v2 = vsel %vm1915_vm11, %v6083_v31, %v6084_v41  ;;  %5403 = vmatprep.subr.bf16.mxu0 %v10075_v8  ;;  %v10171_v58 = vld [vmem:[#allocation80_spill] sm:$0xff]  ;;  %v10190_v41 = vld [vmem:[#allocation35_spill] sm:$0xff] }
 0x43b   :  { %v2062_v26 = vmax.f32 %v8967_v9, %v2059_v2  ;;  %5529 = vmatpush1.bf16.msra.mxu1 %v10141_v45  ;;  %v10174_v9 = vld [vmem:[#allocation21_spill] sm:$0xff]  ;;  %v301_v31 = vld [vmem:[%s9548_s5] sm:$0x3]  ;;  %v6079_v2 = vunpack.i.h.bf16 %v9089_v28 }
 0x43c   :  { %2906 = vmatmul.mubr.f32.vlgmr.msra.gmra.mrb[16].mxu0 %v9014_v52  ;;  %5531 = vmatprep.subr.bf16.mxu1 %v10142_v19  ;;  %v10175_v45 = vld [vmem:[#allocation81_spill] sm:$0xff]  ;;  %v10176_v52 = vld [vmem:[#allocation24_spill] sm:$0xff] }
 0x43d   :  { %5405 = vmatpush1.bf16.msra.mxu0 %v10169_v13  ;;  %v6085_v40 = vpack.i.bf16 %v2063_v1, %v2062_v26  ;;  %v10177_v19 = vld [vmem:[#allocation25_spill] sm:$0xff]  ;;  %v10191_v1 = vld [vmem:[#allocation82_spill] sm:$0xff]  ;;  %v6078_v26 = vunpack.i.l.bf16 %v9089_v28 }
 0x43e   :  { %5407 = vmatprep.subr.bf16.mxu0 %v10170_v56  ;;  %v10203_v28 = vld [vmem:[#allocation93_spill] sm:$0xff] }
 0x43f   :  { %6086 = vrot.lane.b32.xlu0 %v6085_v40, %s6216_s23  ;;  %v10192_v40 = vld [vmem:[#allocation83_spill] sm:$0xff] }
 0x441   :  { %5409 = vmatpush1.bf16.msra.mxu0 %v10171_v58 }
 0x442   :  { %5411 = vmatprep.subr.bf16.mxu0 %v10172_v60 }
 0x445   :  { %5413 = vmatpush1.bf16.msra.mxu0 %v10173_v47 }
 0x446   :  { %5415 = vmatprep.subr.bf16.mxu0 %v10174_v9 }
 0x449   :  { %5417 = vmatpush1.bf16.msra.mxu0 %v10175_v45 }
 0x44a   :  { %5419 = vmatprep.subr.bf16.mxu0 %v10176_v52 }
 0x44d   :  { %5421 = vmatpush1.bf16.msra.mxu0 %v10177_v19 }
 0x44e   :  { %5423 = vmatprep.subr.bf16.mxu0 %v10178_v5 }
 0x451   :  { %5425 = vmatpush1.bf16.msra.mxu0 %v10179_v44 }
 0x452   :  { %5427 = vmatprep.subr.bf16.mxu0 %v10180_v12 }
 0x455   :  { %5429 = vmatpush1.bf16.msra.mxu0 %v10181_v30 }
 0x456   :  { %5431 = vmatprep.subr.bf16.mxu0 %v10182_v53  ;;  %v10200_v53 = vld [vmem:[#allocation74_spill] sm:$0xff] }
 0x459   :  { %5433 = vmatpush1.bf16.msra.mxu0 %v10183_v37  ;;  %v10199_v37 = vld [vmem:[#allocation87_spill] sm:$0xff] }
 0x45a   :  { %5435 = vmatprep.subr.bf16.mxu0 %v10184_v0  ;;  %v10198_v0 = vld [vmem:[#allocation92_spill] sm:$0xff] }
 0x45d   :  { %5437 = vmatpush1.bf16.msra.mxu0 %v10185_v57  ;;  %v10197_v57 = vunpack.i.l.bf16 %v9018_v63  ;;  %v10202_v63 = vld [vmem:[#allocation70_spill] sm:$0xff] }
 0x45e   :  { %5439 = vmatprep.subr.bf16.mxu0 %v10186_v43 }
 0x461   :  { %5441 = vmatpush1.bf16.msra.mxu0 %v10187_v50  ;;  %v10194_v50 = vsub.s32 0, %v10193_v27 }
 0x462   :  { %5443 = vmatprep.subr.bf16.mxu0 %v10188_v49 }
 0x463   :  { %v9137_v43 = vrot.slane %v301_v31, %v10194_v50 }
 0x465   :  { %5445 = vmatpush1.bf16.msra.mxu0 %v10189_v15  ;;  %v10195_v15 = vsub.s32 1, %v10193_v27  ;;  %v5760_v50 = vadd.f32 %v10200_v53, %v9137_v43 }
 0x466   :  { %5447 = vmatprep.subr.bf16.mxu0 %v10190_v41  ;;  %v10196_v41 = vld [vmem:[#allocation85_spill] sm:$0xff] }
 0x467   :  { %v9141_v49 = vrot.slane %v301_v31, %v10195_v15  ;;  %v10201_v31 = vld [vmem:[#allocation91_spill] sm:$0xff]  ;;  %6162 = vtanh.f32 %v5760_v50 }
 0x468   :  { %v10205_v50 = vld [vmem:[#allocation95_spill] sm:$0xff] }
 0x469   :  { %5449 = vmatpush1.bf16.msra.mxu0 %v10191_v1  ;;  %v2024_v1 = vmax.f32 %v10198_v0, %v10197_v57  ;;  %v5761_v27 = vadd.f32 %v9008_v16, %v9141_v49 }
 0x46a   :  { %5451 = vmatprep.subr.bf16.mxu0 %v10192_v40  ;;  %v2046_v40 = vsel %vm1915_vm11, %v6078_v26, %v6079_v2 }
 0x46b   :  { %v2049_v0 = vmax.f32 %v10202_v63, %v2046_v40  ;;  %6164 = vtanh.f32 %v5761_v27  ;;  %v10204_v40 = vld [vmem:[#allocation94_spill] sm:$0xff]  ;;  %v6218_v63 = vmov 0.0|0.0  }
 0x46c   :  { %v303_v27 = vld [vmem:[%s9549_s6 + $0x8] sm:$0xff] }
 0x46d   :  { %5453 = vmatpush1.bf16.msra.mxu0 %v10196_v41 }
 0x46e   :  { %5455 = vmatprep.subr.bf16.mxu0 %v10199_v37 }
 0x46f   :  { %v2763_v30 = vpop.permute.xlu0 %2762 }
 0x470   :  { %v2769_v15 = vsel %vm419_vm8, %v2024_v1, %v2763_v30 }
 0x471   :  { %5457 = vmatpush1.bf16.msra.mxu0 %v10201_v31  ;;  %3059 = vmatprep.mubr.f32.mxu1 %v2769_v15 }
 0x472   :  { %v2528_v57 = vpop.f32.mrb[14].mxu0  ;;  %3060 = vmatmul.mubr.f32.vlgmr.msra.gmra.mrb[16].mxu1 %v9033_v4  ;;  %5459 = vmatprep.subr.bf16.mxu0 %v10203_v28 }
 0x473   :  { %v5762_v26 = vadd.f32 %v2528_v57, %v9137_v43  ;;  %v2530_v53 = vpop.f32.mrb[15].mxu0  ;;  %5533 = vmatpush1.bf16.msra.mxu1 %v10148_v33  ;;  %3130 = vmatprep.mubr.f32.mxu1 %v2049_v0  ;;  %v302_v33 = vld [vmem:[%s9549_s6] sm:$0xff]  ;;  %v304_v0 = vld [vmem:[%s9549_s6 + $0x10] sm:$0xff]  ;;  %v305_v57 = vld [vmem:[%s9549_s6 + $0x18] sm:$0xff] }
 0x474   :  { %v5763_v16 = vadd.f32 %v2530_v53, %v9141_v49  ;;  %v2765_v1 = vpop.permute.xlu0 %2764  ;;  %5535 = vmatprep.subr.bf16.mxu1 %v10149_v6  ;;  %v10206_v6 = vld [vmem:[#allocation96_spill] sm:$0xff] }
 0x475   :  { %6166 = vtanh.f32 %v5762_v26  ;;  %5461 = vmatpush1.bf16.msra.mxu0 %v10204_v40  ;;  %v9166_v4 = vsel %vm419_vm8, %v2763_v30, %v2765_v1  ;;  %v5659_v30 = vpack.c.bf16 %v303_v27, %v302_v33  ;;  %v6220_v26 = vmov 0.0  }
 0x476   :  { %6168 = vtanh.f32 %v5763_v16  ;;  %2976 = vmatprep.mubr.f32.mxu0 %v9166_v4  ;;  %5463 = vmatprep.subr.bf16.mxu0 %v10205_v50  ;;  %v306_v16 = vld [vmem:[%s9549_s6 + $0x20] sm:$0xff] }
 0x477   :  { %5537 = vmatpush1.bf16.msra.mxu1 %v10150_v42  ;;  %v6163_v42 = vpop.eup %6162 }
 0x478   :  { %5539 = vmatprep.subr.bf16.mxu1 %v10151_v62  ;;  %v5662_v62 = vpack.c.bf16 %v305_v57, %v304_v0  ;;  %v6165_v53 = vpop.eup %6164  ;;  %v310_v57 = vld [vmem:[%s9549_s6 + $0x40] sm:$0xff] }
 0x479   :  { %5465 = vmatpush1.bf16.msra.mxu0 %v10206_v6 }
 0x47a   :  { %5658 = vmatprep.subr.bf16.mxu0 %v6218_v63 }
 0x47b   :  { %5541 = vmatpush1.bf16.msra.mxu1 %v10152_v14  ;;  %v307_v14 = vld [vmem:[%s9549_s6 + $0x28] sm:$0xff] }
 0x47c   :  { %2977 = vmatmul.mubr.f32.vlgmr.msra.gmra.mrb[16].mxu0 %v2769_v15  ;;  %5543 = vmatprep.subr.bf16.mxu1 %v10153_v22  ;;  %v5665_v27 = vpack.c.bf16 %v307_v14, %v306_v16  ;;  %v317_v16 = vld [vmem:[%s9549_s6 + $0x78] sm:$0xff] }
 0x47d   :  { %5660 = vmatpush3.bf16.msra.mxu0 %v5659_v30  ;;  %3747 = vmatprep.mubr.msk.f32.mxu0 %vm6219_vm12, %v6220_v26  ;;  %v308_v30 = vld [vmem:[%s9549_s6 + $0x30] sm:$0xff]  ;;  %v321_v14 = vld [vmem:[%s9549_s6 + $0x98] sm:$0xff] }
 0x47e   :  { %5661 = vmatprep.subr.bf16.mxu0 %v6218_v63 }
 0x47f   :  { %v9197_v22 = vpop.eup %6166  ;;  %5545 = vmatpush1.bf16.msra.mxu1 %v10154_v10  ;;  %v309_v10 = vld [vmem:[%s9549_s6 + $0x38] sm:$0xff] }
 0x480   :  { %v9200_v15 = vpop.eup %6168  ;;  %5547 = vmatprep.subr.bf16.mxu1 %v10155_v7  ;;  %v9204_v1 = vmax.f32 %v6163_v42, %v9197_v22  ;;  %v5668_v0 = vpack.c.bf16 %v309_v10, %v308_v30  ;;  %v311_v42 = vld [vmem:[%s9549_s6 + $0x48] sm:$0xff]  ;;  %v325_v30 = vld [vmem:[%s9549_s6 + $0xb8] sm:$0xff] }
 0x481   :  { %v3211_v33 = vmax.f32 %v6165_v53, %v9200_v15  ;;  %5663 = vmatpush3.bf16.msra.mxu0 %v5662_v62  ;;  %v313_v62 = vld [vmem:[%s9549_s6 + $0x58] sm:$0xff]  ;;  %v315_v53 = vld [vmem:[%s9549_s6 + $0x68] sm:$0xff] }
 0x482   :  { %5664 = vmatprep.subr.bf16.mxu0 %v6218_v63 }
 0x483   :  { %5549 = vmatpush1.bf16.msra.mxu1 %v10156_v32  ;;  %v6090_v7 = vpack.i.bf16 %v3211_v33, %v9204_v1  ;;  %v5671_v32 = vpack.c.bf16 %v311_v42, %v310_v57  ;;  %v328_v42 = vld [vmem:[%s9549_s6 + $0xd0] sm:$0xff] }
 0x484   :  { %5551 = vmatprep.subr.bf16.mxu1 %v10157_v29  ;;  %v312_v29 = vld [vmem:[%s9549_s6 + $0x50] sm:$0xff] }
 0x485   :  { %6091 = vrot.lane.b32.xlu1 %v6090_v7, %s6215_s14  ;;  %5666 = vmatpush3.bf16.msra.mxu0 %v5665_v27  ;;  %v324_v27 = vld [vmem:[%s9549_s6 + $0xb0] sm:$0xff]  ;;  %v326_v7 = vld [vmem:[%s9549_s6 + $0xc0] sm:$0xff] }
 0x486   :  { %5667 = vmatprep.subr.bf16.mxu0 %v6218_v63  ;;  %v5692_v10 = vpack.c.bf16 %v325_v30, %v324_v27 }
 0x487   :  { %5553 = vmatpush1.bf16.msra.mxu1 %v10158_v25  ;;  %v5674_v25 = vpack.c.bf16 %v313_v62, %v312_v29  ;;  %v330_v62 = vld [vmem:[%s9549_s6 + $0xe0] sm:$0xff] }
 0x488   :  { %5555 = vmatprep.subr.bf16.mxu1 %v10159_v21  ;;  %v314_v21 = vld [vmem:[%s9549_s6 + $0x60] sm:$0xff] }
 0x489   :  { %5669 = vmatpush3.bf16.msra.mxu0 %v5668_v0  ;;  %v327_v0 = vld [vmem:[%s9549_s6 + $0xc8] sm:$0xff] }
 0x48a   :  { %5670 = vmatprep.subr.bf16.mxu0 %v6218_v63  ;;  %v5695_v57 = vpack.c.bf16 %v327_v0, %v326_v7  ;;  %v351_v7 = vld [vmem:[%s9549_s6 + $0x188] sm:$0xff] }
 0x48b   :  { %5557 = vmatpush1.bf16.msra.mxu1 %v10160_v38  ;;  %v5677_v38 = vpack.c.bf16 %v315_v53, %v314_v21  ;;  %v332_v53 = vld [vmem:[%s9549_s6 + $0xf0] sm:$0xff] }
 0x48c   :  { %5559 = vmatprep.subr.bf16.mxu1 %v10161_v55  ;;  %v316_v55 = vld [vmem:[%s9549_s6 + $0x70] sm:$0xff] }
 0x48d   :  { %5672 = vmatpush3.bf16.msra.mxu0 %v5671_v32  ;;  %v329_v32 = vld [vmem:[%s9549_s6 + $0xd8] sm:$0xff] }
 0x48e   :  { %5673 = vmatprep.subr.bf16.mxu0 %v6218_v63  ;;  %v5698_v29 = vpack.c.bf16 %v329_v32, %v328_v42 }
 0x48f   :  { %5561 = vmatpush1.bf16.msra.mxu1 %v10162_v20  ;;  %v5680_v20 = vpack.c.bf16 %v317_v16, %v316_v55 }
 0x490   :  { %5563 = vmatprep.subr.bf16.mxu1 %v10163_v35  ;;  %v10211_v35 = vld [vmem:[#allocation32_spill] sm:$0xff] }
 0x491   :  { %5675 = vmatpush3.bf16.msra.mxu0 %v5674_v25  ;;  %v331_v25 = vld [vmem:[%s9549_s6 + $0xe8] sm:$0xff] }
 0x492   :  { %5676 = vmatprep.subr.bf16.mxu0 %v6218_v63  ;;  %v5701_v21 = vpack.c.bf16 %v331_v25, %v330_v62  ;;  %v353_v62 = vld [vmem:[%s9549_s6 + $0x198] sm:$0xff] }
 0x493   :  { %5565 = vmatpush1.bf16.msra.mxu1 %v10164_v17  ;;  %v10212_v17 = vld [vmem:[#allocation33_spill] sm:$0xff] }
 0x494   :  { %5567 = vmatprep.subr.bf16.mxu1 %v8226_v23 }
 0x495   :  { %5678 = vmatpush3.bf16.msra.mxu0 %v5677_v38  ;;  %v333_v38 = vld [vmem:[%s9549_s6 + $0xf8] sm:$0xff] }
 0x496   :  { %5679 = vmatprep.subr.bf16.mxu0 %v6218_v63  ;;  %v5704_v55 = vpack.c.bf16 %v333_v38, %v332_v53  ;;  %v355_v53 = vld [vmem:[%s9549_s6 + $0x1a8] sm:$0xff] }
 0x497   :  { %5569 = vmatpush1.bf16.msra.mxu1 %v8242_v34 }
 0x498   :  { %5571 = vmatprep.subr.bf16.mxu1 %v8246_v39 }
 0x499   :  { %5681 = vmatpush3.bf16.msra.mxu0 %v5680_v20 }
 0x49a   :  { %5682 = vmatprep.subr.bf16.mxu0 %v6218_v63 }
 0x49b   :  { %5573 = vmatpush1.bf16.msra.mxu1 %v8262_v18 }
 0x49c   :  { %5575 = vmatprep.subr.bf16.mxu1 %v8266_v36  ;;  %v10207_v36 = vld [vmem:[#allocation28_spill] sm:$0xff] }
 0x49f   :  { %5577 = vmatpush1.bf16.msra.mxu1 %v10165_v61  ;;  %v10213_v61 = vld [vmem:[#allocation6_spill] sm:$0xff] }
 0x4a0   :  { %5579 = vmatprep.subr.bf16.mxu1 %v10063_v11 }
 0x4a3   :  { %5581 = vmatpush1.bf16.msra.mxu1 %v10064_v46  ;;  %v10210_v46 = vld [vmem:[#allocation31_spill] sm:$0xff] }
 0x4a4   :  { %5583 = vmatprep.subr.bf16.mxu1 %v10166_v51  ;;  %v10214_v51 = vld [vmem:[#allocation34_spill] sm:$0xff] }
 0x4a7   :  { %5585 = vmatpush1.bf16.msra.mxu1 %v10167_v54  ;;  %v10215_v54 = vld [vmem:[#allocation7_spill] sm:$0xff] }
 0x4a8   :  { %5587 = vmatprep.subr.bf16.mxu1 %v10069_v3 }
 0x4ab   :  { %5589 = vmatpush1.bf16.msra.mxu1 %v10071_v48 }
 0x4ac   :  { %5591 = vmatprep.subr.bf16.mxu1 %v10073_v59  ;;  %v10209_v59 = vld [vmem:[#allocation30_spill] sm:$0xff] }
 0x4af   :  { %5593 = vmatpush1.bf16.msra.mxu1 %v10074_v24 }
 0x4b0   :  { %5595 = vmatprep.subr.bf16.mxu1 %v10075_v8  ;;  %v10208_v8 = vld [vmem:[#allocation29_spill] sm:$0xff] }
 0x4b1   :  { %v6087_v23 = vpop.permute.xlu0 %6086 }
 0x4b2   :  { %v6089_v34 = vunpack.i.h.bf16 %v6087_v23  ;;  %v6088_v39 = vunpack.i.l.bf16 %v6087_v23  ;;  %3131 = vmatmul.mubr.f32.vlgmr.msra.gmra.mrb[16].mxu1 %v9166_v4 }
 0x4b3   :  { %5597 = vmatpush1.bf16.msra.mxu1 %v10169_v13 }
 0x4b4   :  { %v2991_v18 = vsel %vm419_vm8, %v6088_v39, %v6089_v34  ;;  %5599 = vmatprep.subr.bf16.mxu1 %v10170_v56  ;;  %v10216_v56 = vld [vmem:[#allocation35_spill] sm:$0xff] }
 0x4b5   :  { %3201 = vmatprep.mubr.f32.mxu1 %v2991_v18  ;;  %v334_v18 = vld [vmem:[%s9549_s6 + $0x100] sm:$0xff] }
 0x4b7   :  { %5601 = vmatpush1.bf16.msra.mxu1 %v10171_v58 }
 0x4b8   :  { %5603 = vmatprep.subr.bf16.mxu1 %v10172_v60 }
 0x4bb   :  { %5605 = vmatpush1.bf16.msra.mxu1 %v10173_v47 }
 0x4bc   :  { %5607 = vmatprep.subr.bf16.mxu1 %v10174_v9  ;;  %v10217_v9 = vld [vmem:[#allocation82_spill] sm:$0xff] }
 0x4bf   :  { %5609 = vmatpush1.bf16.msra.mxu1 %v10175_v45  ;;  %v10218_v45 = vld [vmem:[#allocation83_spill] sm:$0xff] }
 0x4c0   :  { %5611 = vmatprep.subr.bf16.mxu1 %v10176_v52 }
 0x4c3   :  { %5613 = vmatpush1.bf16.msra.mxu1 %v10177_v19 }
 0x4c4   :  { %5615 = vmatprep.subr.bf16.mxu1 %v10178_v5  ;;  %v10220_v5 = vld [vmem:[#allocation73_spill] sm:$0xff] }
 0x4c7   :  { %5617 = vmatpush1.bf16.msra.mxu1 %v10179_v44  ;;  %v2050_v44 = vmax.f32 %v10220_v5, %v6079_v2 }
 0x4c8   :  { %5619 = vmatprep.subr.bf16.mxu1 %v10180_v12 }
 0x4c9   :  { %v2994_v12 = vsel %vm419_vm8, %v2050_v44, %v6088_v39  ;;  %v344_v44 = vld [vmem:[%s9549_s6 + $0x150] sm:$0xff] }
 0x4cb   :  { %5621 = vmatpush1.bf16.msra.mxu1 %v10207_v36  ;;  %v335_v36 = vld [vmem:[%s9549_s6 + $0x108] sm:$0xff] }
 0x4cc   :  { %5623 = vmatprep.subr.bf16.mxu1 %v10208_v8 }
 0x4cf   :  { %5625 = vmatpush1.bf16.msra.mxu1 %v10209_v59  ;;  %v2753_v48 = vpop.f32.mrb[14].mxu1 }
 0x4d0   :  { %v5764_v24 = vadd.f32 %v2753_v48, %v9137_v43  ;;  %v2755_v11 = vpop.f32.mrb[15].mxu1  ;;  %5627 = vmatprep.subr.bf16.mxu1 %v10210_v46  ;;  %v336_v46 = vld [vmem:[%s9549_s6 + $0x110] sm:$0xff] }
 0x4d1   :  { %v5765_v3 = vadd.f32 %v2755_v11, %v9141_v49 }
 0x4d2   :  { %6170 = vtanh.f32 %v5764_v24  ;;  %v5707_v24 = vpack.c.bf16 %v335_v36, %v334_v18  ;;  %v360_v18 = vld [vmem:[%s9549_s6 + $0x1d0] sm:$0xff]  ;;  %v361_v36 = vld [vmem:[%s9549_s6 + $0x1d8] sm:$0xff] }
 0x4d3   :  { %6172 = vtanh.f32 %v5765_v3  ;;  %5629 = vmatpush1.bf16.msra.mxu1 %v10211_v35  ;;  %v337_v3 = vld [vmem:[%s9549_s6 + $0x118] sm:$0xff] }
 0x4d4   :  { %5631 = vmatprep.subr.bf16.mxu1 %v10212_v17  ;;  %v5710_v35 = vpack.c.bf16 %v337_v3, %v336_v46  ;;  %v365_v46 = vld [vmem:[%s9549_s6 + $0x1f8] sm:$0xff] }
 0x4d7   :  { %5633 = vmatpush1.bf16.msra.mxu1 %v10213_v61  ;;  %v338_v61 = vld [vmem:[%s9549_s6 + $0x120] sm:$0xff] }
 0x4d8   :  { %5635 = vmatprep.subr.bf16.mxu1 %v10214_v51  ;;  %v339_v51 = vld [vmem:[%s9549_s6 + $0x128] sm:$0xff] }
 0x4db   :  { %5637 = vmatpush1.bf16.msra.mxu1 %v10215_v54 }
 0x4dc   :  { %v9295_v13 = vpop.eup %6170  ;;  %5639 = vmatprep.subr.bf16.mxu1 %v10216_v56 }
 0x4dd   :  { %v9298_v58 = vpop.eup %6172  ;;  %v9302_v60 = vmax.f32 %v9197_v22, %v9295_v13 }
 0x4de   :  { %v3299_v47 = vmax.f32 %v9200_v15, %v9298_v58  ;;  %v322_v15 = vld [vmem:[%s9549_s6 + $0xa0] sm:$0xff] }
 0x4df   :  { %5641 = vmatpush1.bf16.msra.mxu1 %v10217_v9 }
 0x4e0   :  { %5643 = vmatprep.subr.bf16.mxu1 %v10218_v45  ;;  %v6095_v52 = vpack.i.bf16 %v3299_v47, %v9302_v60  ;;  %v5713_v47 = vpack.c.bf16 %v339_v51, %v338_v61  ;;  %v340_v45 = vld [vmem:[%s9549_s6 + $0x130] sm:$0xff] }
 0x4e2   :  { %6096 = vrot.lane.b32.xlu0 %v6095_v52, %s6215_s14  ;;  %v341_v52 = vld [vmem:[%s9549_s6 + $0x138] sm:$0xff] }
 0x4e3   :  { %5645 = vmatpush1.bf16.msra.mxu1 %v10196_v41  ;;  %v5716_v19 = vpack.c.bf16 %v341_v52, %v340_v45  ;;  %v370_v45 = vld [vmem:[%s9551_s8 + $0x18] sm:$0xff] }
 0x4e4   :  { %5647 = vmatprep.subr.bf16.mxu1 %v10199_v37  ;;  %v318_v37 = vld [vmem:[%s9549_s6 + $0x80] sm:$0xff] }
 0x4e7   :  { %5649 = vmatpush1.bf16.msra.mxu1 %v10201_v31 }
 0x4e8   :  { %5651 = vmatprep.subr.bf16.mxu1 %v10203_v28  ;;  %v319_v28 = vld [vmem:[%s9549_s6 + $0x88] sm:$0xff] }
 0x4eb   :  { %5653 = vmatpush1.bf16.msra.mxu1 %v10204_v40 }
 0x4ec   :  { %5655 = vmatprep.subr.bf16.mxu1 %v10205_v50  ;;  %v5683_v50 = vpack.c.bf16 %v319_v28, %v318_v37  ;;  %v346_v37 = vld [vmem:[%s9549_s6 + $0x160] sm:$0xff]  ;;  %v347_v28 = vld [vmem:[%s9549_s6 + $0x168] sm:$0xff] }
 0x4ef   :  { %5657 = vmatpush1.bf16.msra.mxu1 %v10206_v6  ;;  %v320_v6 = vld [vmem:[%s9549_s6 + $0x90] sm:$0xff] }
 0x4f0   :  { %v5686_v22 = vpack.c.bf16 %v321_v14, %v320_v6 }
 0x4f2   :  { %3202 = vmatmul.mubr.f32.vlgmr.msra.gmra.mrb[16].mxu1 %v2994_v12  ;;  %v345_v12 = vld [vmem:[%s9549_s6 + $0x158] sm:$0xff] }
 0x4f7   :  { %v6092_v41 = vpop.permute.xlu1 %6091 }
 0x4f8   :  { %v6094_v31 = vunpack.i.h.bf16 %v6092_v41  ;;  %v6093_v40 = vunpack.i.l.bf16 %v6092_v41  ;;  %v5722_v41 = vpack.c.bf16 %v345_v12, %v344_v44  ;;  %v3640_v44 = vld [vmem:[%s9552_s9] ss:$0 sm:$0xff] }
 0x4fa   :  { %v3218_v4 = vsel %vm421_vm9, %v6093_v40, %v6094_v31  ;;  %v5725_v31 = vpack.c.bf16 %v347_v28, %v346_v37  ;;  %v348_v40 = vld [vmem:[%s9549_s6 + $0x170] sm:$0xff] }
 0x4fb   :  { %v3220_v2 = vmax.f32 %v9204_v1, %v3218_v4  ;;  %v323_v1 = vld [vmem:[%s9549_s6 + $0xa8] sm:$0xff]  ;;  %v349_v4 = vld [vmem:[%s9549_s6 + $0x178] sm:$0xff] }
 0x4fc   :  { %v5689_v33 = vpack.c.bf16 %v323_v1, %v322_v15 }
 0x4fd   :  { %3748 = vmatmul.mubr.f32.vlgmr.msra.gmra.mrb[18].mxu0 %v3220_v2 }
 0x4fe   :  { %5684 = vmatpush3.bf16.msra.mxu0 %v5683_v50  ;;  %3782 = vmatprep.mubr.msk.f32.mxu0 %vm6219_vm12, %v6220_v26  ;;  %v5728_v50 = vpack.c.bf16 %v349_v4, %v348_v40 }
 0x4ff   :  { %5685 = vmatprep.subr.bf16.mxu0 %v6218_v63 }
 0x502   :  { %5687 = vmatpush3.bf16.msra.mxu0 %v5686_v22 }
 0x503   :  { %5688 = vmatprep.subr.bf16.mxu0 %v6218_v63 }
 0x506   :  { %5690 = vmatpush3.bf16.msra.mxu0 %v5689_v33 }
 0x507   :  { %5691 = vmatprep.subr.bf16.mxu0 %v6218_v63 }
 0x50a   :  { %5693 = vmatpush3.bf16.msra.mxu0 %v5692_v10  ;;  %v350_v10 = vld [vmem:[%s9549_s6 + $0x180] sm:$0xff] }
 0x50b   :  { %5694 = vmatprep.subr.bf16.mxu0 %v6218_v63  ;;  %v5731_v42 = vpack.c.bf16 %v351_v7, %v350_v10 }
 0x50e   :  { %5696 = vmatpush3.bf16.msra.mxu0 %v5695_v57 }
 0x50f   :  { %5697 = vmatprep.subr.bf16.mxu0 %v6218_v63 }
 0x512   :  { %5699 = vmatpush3.bf16.msra.mxu0 %v5698_v29  ;;  %v352_v29 = vld [vmem:[%s9549_s6 + $0x190] sm:$0xff] }
 0x513   :  { %5700 = vmatprep.subr.bf16.mxu0 %v6218_v63  ;;  %v5734_v25 = vpack.c.bf16 %v353_v62, %v352_v29 }
 0x516   :  { %5702 = vmatpush3.bf16.msra.mxu0 %v5701_v21  ;;  %v354_v21 = vld [vmem:[%s9549_s6 + $0x1a0] sm:$0xff] }
 0x517   :  { %5703 = vmatprep.subr.bf16.mxu0 %v6218_v63  ;;  %v5737_v38 = vpack.c.bf16 %v355_v53, %v354_v21 }
 0x51a   :  { %5705 = vmatpush3.bf16.msra.mxu0 %v5704_v55  ;;  %v356_v55 = vld [vmem:[%s9549_s6 + $0x1b0] sm:$0xff] }
 0x51b   :  { %5706 = vmatprep.subr.bf16.mxu0 %v6218_v63 }
 0x54f   :  { %v2978_v16 = vpop.f32.mrb[16].mxu0 }
 0x550   :  { %v5766_v20 = vadd.f32 %v2978_v16, %v9137_v43  ;;  %v2980_v23 = vpop.f32.mrb[17].mxu0  ;;  %v357_v16 = vld [vmem:[%s9549_s6 + $0x1b8] sm:$0xff] }
 0x551   :  { %v5767_v34 = vadd.f32 %v2980_v23, %v9141_v49  ;;  %v358_v23 = vld [vmem:[%s9549_s6 + $0x1c0] sm:$0xff] }
 0x552   :  { %6174 = vtanh.f32 %v5766_v20  ;;  %v5740_v20 = vpack.c.bf16 %v357_v16, %v356_v55 }
 0x553   :  { %6176 = vtanh.f32 %v5767_v34  ;;  %v359_v34 = vld [vmem:[%s9549_s6 + $0x1c8] sm:$0xff] }
 0x554   :  { %v6097_v39 = vpop.permute.xlu0 %6096 }
 0x555   :  { %v6099_v8 = vunpack.i.h.bf16 %v6097_v39  ;;  %v6098_v59 = vunpack.i.l.bf16 %v6097_v39  ;;  %v5743_v39 = vpack.c.bf16 %v359_v34, %v358_v23 }
 0x557   :  { %v3306_v48 = vsel %vm421_vm9, %v6098_v59, %v6099_v8  ;;  %v5746_v8 = vpack.c.bf16 %v361_v36, %v360_v18  ;;  %v362_v59 = vld [vmem:[%s9549_s6 + $0x1e0] sm:$0xff] }
 0x558   :  { %v3308_v11 = vmax.f32 %v9302_v60, %v3306_v48  ;;  %v363_v48 = vld [vmem:[%s9549_s6 + $0x1e8] sm:$0xff] }
 0x55a   :  { %3783 = vmatmul.mubr.f32.vlgmr.msra.gmra.mrb[18].mxu0 %v3308_v11  ;;  %v364_v11 = vld [vmem:[%s9549_s6 + $0x1f0] sm:$0xff] }
 0x55b   :  { %5708 = vmatpush3.bf16.msra.mxu0 %v5707_v24  ;;  %3817 = vmatprep.mubr.msk.f32.mxu0 %vm6219_vm12, %v6220_v26  ;;  %v5749_v24 = vpack.c.bf16 %v363_v48, %v362_v59  ;;  %v5752_v3 = vpack.c.bf16 %v365_v46, %v364_v11 }
 0x55c   :  { %v6175_v17 = vpop.eup %6174  ;;  %5709 = vmatprep.subr.bf16.mxu0 %v6218_v63 }
 0x55d   :  { %v6177_v54 = vpop.eup %6176  ;;  %v3380_v56 = vmax.f32 %v9295_v13, %v6175_v17  ;;  %v342_v13 = vld [vmem:[%s9549_s6 + $0x140] sm:$0xff] }
 0x55e   :  { %v3381_v60 = vmax.f32 %v9298_v58, %v6177_v54  ;;  %v343_v58 = vld [vmem:[%s9549_s6 + $0x148] sm:$0xff] }
 0x55f   :  { %5711 = vmatpush3.bf16.msra.mxu0 %v5710_v35  ;;  %v5719_v5 = vpack.c.bf16 %v343_v58, %v342_v13 }
 0x560   :  { %v6100_v9 = vpack.i.bf16 %v3381_v60, %v3380_v56  ;;  %5712 = vmatprep.subr.bf16.mxu0 %v6218_v63  ;;  %v368_v60 = vld [vmem:[%s9551_s8 + $0x8] sm:$0xff] }
 0x562   :  { %6101 = vrot.lane.b32.xlu1 %v6100_v9, %s6215_s14 }
 0x563   :  { %5714 = vmatpush3.bf16.msra.mxu0 %v5713_v47  ;;  %v369_v47 = vld [vmem:[%s9551_s8 + $0x10] sm:$0xff] }
 0x564   :  { %5715 = vmatprep.subr.bf16.mxu0 %v6218_v63  ;;  %v5758_v52 = vpack.c.bf16 %v370_v45, %v369_v47 }
 0x567   :  { %5717 = vmatpush3.bf16.msra.mxu0 %v5716_v19 }
 0x568   :  { %5718 = vmatprep.subr.bf16.mxu0 %v6218_v63 }
 0x56b   :  { %5720 = vmatpush3.bf16.msra.mxu0 %v5719_v5 }
 0x56c   :  { %5721 = vmatprep.subr.bf16.mxu0 %v6218_v63 }
 0x56f   :  { %5723 = vmatpush3.bf16.msra.mxu0 %v5722_v41 }
 0x570   :  { %5724 = vmatprep.subr.bf16.mxu0 %v6218_v63 }
 0x573   :  { %5726 = vmatpush3.bf16.msra.mxu0 %v5725_v31 }
 0x574   :  { %5727 = vmatprep.subr.bf16.mxu0 %v6218_v63 }
 0x577   :  { %5729 = vmatpush3.bf16.msra.mxu0 %v5728_v50 }
 0x578   :  { %5730 = vmatprep.subr.bf16.mxu0 %v6218_v63 }
 0x5c5   :  { %v3203_v2 = vpop.f32.mrb[16].mxu1 }
 0x5c6   :  { %v5768_v6 = vadd.f32 %v3203_v2, %v9137_v43  ;;  %v3205_v14 = vpop.f32.mrb[17].mxu1 }
 0x5c7   :  { %v5769_v22 = vadd.f32 %v3205_v14, %v9141_v49 }
 0x5c8   :  { %6178 = vtanh.f32 %v5768_v6 }
 0x5c9   :  { %6180 = vtanh.f32 %v5769_v22 }
 0x5d2   :  { %v6179_v15 = vpop.eup %6178 }
 0x5d3   :  { %v6181_v1 = vpop.eup %6180  ;;  %v3462_v33 = vmax.f32 %v6175_v17, %v6179_v15 }
 0x5d4   :  { %v6102_v27 = vpop.permute.xlu1 %6101  ;;  %v3463_v30 = vmax.f32 %v6177_v54, %v6181_v1 }
 0x5d5   :  { %v6104_v0 = vunpack.i.h.bf16 %v6102_v27  ;;  %v6103_v43 = vunpack.i.l.bf16 %v6102_v27 }
 0x5d6   :  { %v6105_v57 = vpack.i.bf16 %v3463_v30, %v3462_v33 }
 0x5d7   :  { %v3388_v49 = vsel %vm421_vm9, %v6103_v43, %v6104_v0 }
 0x5d8   :  { %v3390_v32 = vmax.f32 %v3380_v56, %v3388_v49  ;;  %6106 = vrot.lane.b32.xlu0 %v6105_v57, %s6215_s14  ;;  %v367_v56 = vld [vmem:[%s9551_s8] sm:$0xff]  ;;  %s6221_s8 = smov [#allocation2]  }
 0x5d9   :  { %v5755_v9 = vpack.c.bf16 %v368_v60, %v367_v56  ;;  %s3631_s1 = sshll.u32 %s6221_s8, 4  ;;  %s3632_s1 = int_to_ptr.vmem [resolvable:$true] %s3631_s1 }
 0x5da   :  { %3818 = vmatmul.mubr.f32.vlgmr.msra.gmra.mrb[18].mxu0 %v3390_v32  ;;  %s6190_s28 = scalar_lea.vmem %s3632_s1, 32  ;;  %p6195_p1 = scmp.lt.s32.totalorder %s3632_s1, %s3632_s1 }
 0x5db   :  { %5732 = vmatpush3.bf16.msra.mxu0 %v5731_v42  ;;  %3852 = vmatprep.mubr.msk.f32.mxu0 %vm6219_vm12, %v6220_v26  ;;  %p6191_p0 = scmp.ne.s32.totalorder %s3632_s1, %s6190_s28  ;;  %p6196_p2 = scmp.lt.s32.totalorder %s6190_s28, %s6190_s28 }
 0x5dc   :  { %5733 = vmatprep.subr.bf16.mxu0 %v6218_v63 }
 0x5dd   :  { %p6197_p3 = por %p6196_p2, %p6195_p1 }
 0x5df   :  { %5735 = vmatpush3.bf16.msra.mxu0 %v5734_v25  ;;  %p6198_p4 = pnand %p6197_p3, %p6191_p0 }
 0x5e0   :  { %5736 = vmatprep.subr.bf16.mxu0 %v6218_v63 }
 0x5e3   :  { %5738 = vmatpush3.bf16.msra.mxu0 %v5737_v38 }
 0x5e4   :  { %5739 = vmatprep.subr.bf16.mxu0 %v6218_v63 }
 0x5e7   :  { %5741 = vmatpush3.bf16.msra.mxu0 %v5740_v20 }
 0x5e8   :  { %5742 = vmatprep.subr.bf16.mxu0 %v6218_v63 }
 0x5eb   :  { %5744 = vmatpush3.bf16.msra.mxu0 %v5743_v39 }
 0x5ec   :  { %5745 = vmatprep.subr.bf16.mxu0 %v6218_v63 }
 0x5ef   :  { %5747 = vmatpush3.bf16.msra.mxu0 %v5746_v8 }
 0x5f0   :  { %5748 = vmatprep.subr.bf16.mxu0 %v6218_v63 }
 0x5f3   :  { %5750 = vmatpush3.bf16.msra.mxu0 %v5749_v24 }
 0x5f4   :  { %5751 = vmatprep.subr.bf16.mxu0 %v6218_v63 }
 0x5f7   :  { %5753 = vmatpush3.bf16.msra.mxu0 %v5752_v3 }
 0x5f8   :  { %5754 = vmatprep.subr.bf16.mxu0 %v6218_v63 }
 0x64a   :  { %v6107_v35 = vpop.permute.xlu0 %6106 }
 0x64b   :  { %v6109_v17 = vunpack.i.h.bf16 %v6107_v35  ;;  %v6108_v61 = vunpack.i.l.bf16 %v6107_v35 }
 0x64d   :  { %v3470_v51 = vsel %vm421_vm9, %v6108_v61, %v6109_v17 }
 0x64e   :  { %v3472_v54 = vmax.f32 %v3462_v33, %v3470_v51 }
 0x650   :  { %3853 = vmatmul.mubr.f32.vlgmr.msra.gmra.mrb[18].mxu0 %v3472_v54 }
 0x651   :  { %3863 = vmatprep.mubr.msk.f32.mxu0 %vm6219_vm12, %v6220_v26  ;;  %5756 = vmatpush3.bf16.msra.mxu0 %v5755_v9  ;;  %v3639_v26 = vld [vmem:[%s9550_s7] ss:$0 sm:$0xff] }
 0x652   :  { %5757 = vmatprep.subr.bf16.mxu0 %v6218_v63 }
 0x655   :  { %5759 = vmatpush3.bf16.msra.mxu0 %v5758_v52 }
 0x723   :  { %v3539_v19 = vpop.f32.mrb[18].mxu0 }
 0x724   :  { %v5770_v13 = vadd.f32 %v3639_v26, %v3539_v19  ;;  %v3854_v58 = vpop.f32.mrb[19].mxu0 }
 0x726   :  { %6182 = vtanh.f32 %v5770_v13 }
 0x730   :  { %v6183_v5 = vpop.eup %6182 }
 0x731   :  { %3864 = vmatmul.mubr.msk.f32.vlgmr.msra.gmra.mrb[20].mxu0 %vm417_vm7, %v6183_v5 }
 0x804   :  { %v3620_v12 = vpop.f32.mrb[20].mxu0 }
 0x805   :  { %v3621_v63 = vadd.f32 %v3640_v44, %v3620_v12  ;;  %v3865_v41 = vpop.f32.mrb[21].mxu0 }
 0x807   :  { %3624 = vst [vmem:[#allocation2] sm:$0x3] %v3621_v63 }
 0x808   :  { %6201 = shalt.err (!%p6198_p4)
}
 0x809   :  { %s6202_s13 = scalar_lea.hbm %s9553_s10, 32 }
 0x80a   :  { %p6203_p5 = scmp.ne.s32.totalorder %s9553_s10, %s6202_s13  ;;  %p6206_p6 = scmp.lt.u32.totalorder %s6202_s13, %s9553_s10 }
 0x80c   :  { %p6208_p7 = pnand %p6206_p6, %p6203_p5 }
 0x80e   :  { %6211 = shalt.err (!%p6208_p7)
}
 0x80f   :  { %3634 = dma.vmem_to_hbm [thread:$0]  %s3632_s1, 32, %s9553_s10, [#allocation3]  }
 0x810   :  { %6212 = dma.done.wait [#allocation3], 32  }
 0x811   :  { %6213 = vsyncadd [#allocation3], 4294967264 }
 0x812   :  { %3638 = vsyncpa [#allocation3], 1 }

</bundles_post_ra>
